<compile_context>
chip_gen: v7x
topology: tpu7x:2x2x1
jax: 0.10.0
libtpu: 0.0.40
codegen_flags: <defaults>
</compile_context>

<pallas_src>
import functools

import jax
import jax.numpy as jnp
from jax.experimental import pallas as pl
from jax.experimental.pallas import tpu as pltpu


def _pointnet_kernel(x_ref,
                     w1_ref, b1_ref,
                     w2_ref, b2_ref,
                     w3_ref, b3_ref,
                     w4_ref, b4_ref,
                     w5_ref, b5_ref,
                     pwf_ref, gf_ref):
    """Grid = (batch, point tiles).

    x_ref:   (1, C_pad, TILE_N)  bf16 input tile (NCL, channel-major)
    wK_ref:  (C_out_k, C_in_k)   bf16 BN-folded 1x1-conv weight (full array)
    bK_ref:  (C_out_k, 1)        f32 BN-folded bias (full array)
    pwf_ref: (1, 1024, TILE_N)   point-wise feature tile (NCL), bf16 by default
    gf_ref:  (1, 1024, 1)        f32 global feature (running max across N tiles)
    """
    nt = pl.program_id(1)

    def pfcn(w_ref, h_bf16, b_ref):
        # (C_out, C_in) @ (C_in, TILE_N) on the MXU, f32 accumulation.
        y = jnp.dot(w_ref[...], h_bf16, preferred_element_type=jnp.float32)
        return jnp.maximum(y + b_ref[...], 0.0)               # (C_out, TILE_N) f32

    h = x_ref[0]                                               # (C_pad, TILE_N) bf16
    h = pfcn(w1_ref, h, b1_ref).astype(jnp.bfloat16)           # (64,   TILE_N)
    h = pfcn(w2_ref, h, b2_ref).astype(jnp.bfloat16)           # (64,   TILE_N)
    h = pfcn(w3_ref, h, b3_ref).astype(jnp.bfloat16)           # (64,   TILE_N)
    h = pfcn(w4_ref, h, b4_ref).astype(jnp.bfloat16)           # (128,  TILE_N)
    h = pfcn(w5_ref, h, b5_ref)                                # (1024, TILE_N) f32

    # Point-wise feature: already in NCL layout -> lane-dense store, no transpose.
    pwf_ref[0] = h.astype(pwf_ref.dtype)

    # MaxPool1d(kernel_size=point_num) == running max over point tiles
    # (XLU lane reduce).  Post-ReLU h >= 0, so a zero-init would also be safe.
    tile_max = jnp.max(h, axis=1, keepdims=True)               # (1024, 1) f32

    @pl.when(nt == 0)
    def _():
        gf_ref[0] = tile_max

    @pl.when(nt > 0)
    def _():
        gf_ref[0] = jnp.maximum(gf_ref[0], tile_max)


def _const_spec(arr):
    """Full-array BlockSpec, constant across the (b, nt) grid (VMEM-resident)."""
    zeros = (0,) * arr.ndim
    return pl.BlockSpec(arr.shape, lambda b, nt, zeros=zeros: zeros)


def pointnet_common_pallas(x_ncl, params, *, tile_n=None, pwf_dtype=jnp.bfloat16):
    """x_ncl: (B, C_in, N) float32, NCL layout like the PyTorch module.

    Returns (global_feature (B, 1024) f32,
             point_wise_feature (B, 1024, N) pwf_dtype,
             end_points {}).
    """
    B, C_in, N = x_ncl.shape
    (w1, b1), (w2, b2), (w3, b3), (w4, b4), (w5, b5) = params
    assert w5.shape[0] == 1024, w5.shape

    # ---- layout prep (wrapper-side, cheap) --------------------------------
    # Keep x in NCL (no transpose); pad input channels to the bf16 sublane
    # tile (16) with zero rows/cols so the math is unchanged; cast to bf16.
    c_pad = max(16, ((C_in + 15) // 16) * 16)
    x = x_ncl
    if c_pad != C_in:
        x = jnp.pad(x, ((0, 0), (0, c_pad - C_in), (0, 0)))
        w1 = jnp.pad(w1, ((0, 0), (0, c_pad - C_in)))          # zero input-channel cols
    x = x.astype(jnp.bfloat16)
    w1, w2, w3, w4, w5 = (w.astype(jnp.bfloat16) for w in (w1, w2, w3, w4, w5))
    b1, b2, b3, b4, b5 = (b.astype(jnp.float32) for b in (b1, b2, b3, b4, b5))

    # ---- point-axis tiling ------------------------------------------------
    if tile_n is None:
        tile_n = next((t for t in (1024, 512, 256, 128) if N % t == 0), None)
        if tile_n is None:
            if N <= 1024:
                tile_n = N      # single (possibly sub-lane-width) tile; legal full-dim block
            else:
                # TODO(synk): ragged N needs zero-padding + masking of padded
                # points in pwf (gf is safe since post-ReLU values are >= 0).
                raise ValueError(f"point_num={N} must be divisible by 128")
    assert N % tile_n == 0, (N, tile_n)
    num_tiles = N // tile_n

    out_shapes = (
        jax.ShapeDtypeStruct((B, 1024, N), pwf_dtype),         # point-wise feature (NCL)
        jax.ShapeDtypeStruct((B, 1024, 1), jnp.float32),       # global feature (+dummy lane)
    )

    # TODO(synk): on v7x with B == 1, emit per-TensorCore partial maxes for gf
    # (extra core axis, reduced in the wrapper) so the nt axis can be "parallel".
    pwf, gf = pl.pallas_call(
        _pointnet_kernel,
        out_shape=out_shapes,
        grid_spec=pltpu.PrefetchScalarGridSpec(
            num_scalar_prefetch=0,
            grid=(B, num_tiles),
            in_specs=[
                pl.BlockSpec((1, c_pad, tile_n), lambda b, nt: (b, 0, nt)),
                _const_spec(w1), _const_spec(b1),
                _const_spec(w2), _const_spec(b2),
                _const_spec(w3), _const_spec(b3),
                _const_spec(w4), _const_spec(b4),
                _const_spec(w5), _const_spec(b5),
            ],
            out_specs=[
                pl.BlockSpec((1, 1024, tile_n), lambda b, nt: (b, 0, nt)),
                pl.BlockSpec((1, 1024, 1), lambda b, nt: (b, 0, 0)),  # resident across nt
            ],
        ),
        compiler_params=pltpu.CompilerParams(
            dimension_semantics=("parallel", "arbitrary"),
            vmem_limit_bytes=48 * 1024 * 1024),   # > v5e/v6e scoped defaults, < v7x physical
    )(x, w1, b1, w2, b2, w3, b3, w4, b4, w5, b5)

    gf = gf[:, :, 0]                              # (B, 1024)
    end_points = {}                               # input/feature transforms disabled (defaults)
    return gf, pwf, end_points


def _make_pfcn_params(key, c_in, c_out, eps=1e-5):
    """Deterministic Conv1d(1x1) + BatchNorm1d(eval) params folded into (W, b).

    Returns W of shape (c_out, c_in) and b of shape (c_out, 1), matching the
    channel-major (transposed) kernel formulation.
    """
    k1, k2, k3, k4, k5, k6 = jax.random.split(key, 6)
    w_conv = jax.random.normal(k1, (c_out, c_in), jnp.float32) * 0.1
    b_conv = jax.random.normal(k2, (c_out,), jnp.float32) * 0.1
    gamma = 1.0 + 0.1 * jax.random.normal(k3, (c_out,), jnp.float32)
    beta = 0.1 * jax.random.normal(k4, (c_out,), jnp.float32)
    running_mean = 0.1 * jax.random.normal(k5, (c_out,), jnp.float32)
    running_var = jnp.abs(1.0 + 0.1 * jax.random.normal(k6, (c_out,), jnp.float32))

    scale = gamma / jnp.sqrt(running_var + eps)                # (c_out,)
    w_eff = w_conv * scale[:, None]                            # (c_out, c_in)
    b_eff = scale * (b_conv - running_mean) + beta             # (c_out,)
    return w_eff.astype(jnp.float32), b_eff.reshape(c_out, 1).astype(jnp.float32)


def _reference_jax(x_ncl, params):
    """Pure-JAX reference mirroring the kernel's bf16-matmul / f32-accum precision."""
    h = x_ncl.astype(jnp.bfloat16)                             # (B, C_in, N)
    y = None
    for (w, b) in params:                                      # w: (C_out, C_in), b: (C_out, 1)
        y = jnp.einsum("dc,bcn->bdn", w.astype(jnp.bfloat16), h,
                       preferred_element_type=jnp.float32)
        y = jnp.maximum(y + b[None], 0.0)                      # f32
        h = y.astype(jnp.bfloat16)
    pwf = y                                                    # (B, 1024, N)
    gf = jnp.max(y, axis=2)                                    # (B, 1024)
    return gf, pwf


if __name__ == "__main__":
    # Small shapes consistent with the module: PointNetCommon(in_channels=3, point_num=256).
    # tile_n=128 -> 2 point tiles per batch element, exercising the gf running max.
    B, C_IN, POINT_NUM, TILE_N = 2, 3, 256, 128

    key = jax.random.PRNGKey(0)
    kx, k1, k2, k3, k4, k5 = jax.random.split(key, 6)

    x = jax.random.normal(kx, (B, C_IN, POINT_NUM), jnp.float32)   # NCL like PyTorch

    params = (
        _make_pfcn_params(k1, C_IN, 64),
        _make_pfcn_params(k2, 64, 64),
        _make_pfcn_params(k3, 64, 64),
        _make_pfcn_params(k4, 64, 128),
        _make_pfcn_params(k5, 128, 1024),
    )

    fn = jax.jit(functools.partial(pointnet_common_pallas, params=params, tile_n=TILE_N))
    gf, pwf, end_points = jax.block_until_ready(fn(x))

    gf_ref, pwf_ref = _reference_jax(x, params)

    assert gf.shape == (B, 1024), gf.shape
    assert gf.dtype == jnp.float32, gf.dtype
    assert pwf.shape == (B, 1024, POINT_NUM), pwf.shape
    assert pwf.dtype == jnp.bfloat16, pwf.dtype
    assert end_points == {}
    assert jnp.allclose(gf, gf_ref, atol=1e-2, rtol=1e-2), \
        float(jnp.max(jnp.abs(gf - gf_ref)))
    pwf_f32 = pwf.astype(jnp.float32)
    assert jnp.allclose(pwf_f32, pwf_ref, atol=2e-2, rtol=2e-2), \
        float(jnp.max(jnp.abs(pwf_f32 - pwf_ref)))

    print("KERNEL_OK")
</pallas_src>

<mosaic_0001>
module attributes {stable_mosaic.version = 11 : i64} {
  func.func @_pointnet_kernel(%arg0: i32, %arg1: i32, %arg2: memref<1x16x128xbf16, #tpu.memory_space<vmem>>, %arg3: memref<64x16xbf16, #tpu.memory_space<vmem>>, %arg4: memref<64x1xf32, #tpu.memory_space<vmem>>, %arg5: memref<64x64xbf16, #tpu.memory_space<vmem>>, %arg6: memref<64x1xf32, #tpu.memory_space<vmem>>, %arg7: memref<64x64xbf16, #tpu.memory_space<vmem>>, %arg8: memref<64x1xf32, #tpu.memory_space<vmem>>, %arg9: memref<128x64xbf16, #tpu.memory_space<vmem>>, %arg10: memref<128x1xf32, #tpu.memory_space<vmem>>, %arg11: memref<1024x128xbf16, #tpu.memory_space<vmem>>, %arg12: memref<1024x1xf32, #tpu.memory_space<vmem>>, %arg13: memref<1x1024x128xbf16, #tpu.memory_space<vmem>>, %arg14: memref<1x1024x1xf32, #tpu.memory_space<vmem>>) attributes {dimension_semantics = [#tpu.dimension_semantics<parallel>, #tpu.dimension_semantics<arbitrary>], iteration_bounds = array<i64: 2, 2>, scalar_prefetch = 0 : i64, scratch_operands = 0 : i64, tpu.core_type = #tpu.core_type<tc>, window_params = [{transform_indices = @transform_0, window_bounds = array<i64: 1, 16, 128>}, {pipeline_mode = #tpu.pipeline_mode<synchronous>, transform_indices = @transform_1, window_bounds = array<i64: 64, 16>}, {pipeline_mode = #tpu.pipeline_mode<synchronous>, transform_indices = @transform_2, window_bounds = array<i64: 64, 1>}, {pipeline_mode = #tpu.pipeline_mode<synchronous>, transform_indices = @transform_3, window_bounds = array<i64: 64, 64>}, {pipeline_mode = #tpu.pipeline_mode<synchronous>, transform_indices = @transform_4, window_bounds = array<i64: 64, 1>}, {pipeline_mode = #tpu.pipeline_mode<synchronous>, transform_indices = @transform_5, window_bounds = array<i64: 64, 64>}, {pipeline_mode = #tpu.pipeline_mode<synchronous>, transform_indices = @transform_6, window_bounds = array<i64: 64, 1>}, {pipeline_mode = #tpu.pipeline_mode<synchronous>, transform_indices = @transform_7, window_bounds = array<i64: 128, 64>}, {pipeline_mode = #tpu.pipeline_mode<synchronous>, transform_indices = @transform_8, window_bounds = array<i64: 128, 1>}, {pipeline_mode = #tpu.pipeline_mode<synchronous>, transform_indices = @transform_9, window_bounds = array<i64: 1024, 128>}, {pipeline_mode = #tpu.pipeline_mode<synchronous>, transform_indices = @transform_10, window_bounds = array<i64: 1024, 1>}, {transform_indices = @transform_11, window_bounds = array<i64: 1, 1024, 128>}, {transform_indices = @transform_12, window_bounds = array<i64: 1, 1024, 1>}]} {
    %c0 = arith.constant 0 : index
    %c0_0 = arith.constant 0 : index
    %c0_1 = arith.constant 0 : index
    %0 = vector.load %arg2[%c0, %c0_0, %c0_1] : memref<1x16x128xbf16, #tpu.memory_space<vmem>>, vector<1x16x128xbf16>
    %1 = vector.shape_cast %0 : vector<1x16x128xbf16> to vector<16x128xbf16>
    %c0_2 = arith.constant 0 : index
    %c0_3 = arith.constant 0 : index
    %2 = vector.load %arg3[%c0_2, %c0_3] : memref<64x16xbf16, #tpu.memory_space<vmem>>, vector<64x16xbf16>
    %cst = arith.constant dense<0.000000e+00> : vector<64x128xf32>
    %3 = tpu.matmul %2, %1, %cst {dimension_numbers = #tpu.dot_dimension_numbers<[1], [0], [0], [1], [0, 0, 1, 1], [], []>} : vector<64x16xbf16>, vector<16x128xbf16>, vector<64x128xf32> -> vector<64x128xf32>
    %c0_4 = arith.constant 0 : index
    %c0_5 = arith.constant 0 : index
    %4 = vector.load %arg4[%c0_4, %c0_5] : memref<64x1xf32, #tpu.memory_space<vmem>>, vector<64x1xf32>
    %5 = vector.broadcast %4 : vector<64x1xf32> to vector<64x128xf32>
    %6 = arith.addf %3, %5 : vector<64x128xf32>
    %cst_6 = arith.constant 0.000000e+00 : f32
    %7 = vector.broadcast %cst_6 : f32 to vector<64x128xf32>
    %8 = arith.maximumf %6, %7 : vector<64x128xf32>
    %9 = arith.truncf %8 : vector<64x128xf32> to vector<64x128xbf16>
    %c0_7 = arith.constant 0 : index
    %c0_8 = arith.constant 0 : index
    %10 = vector.load %arg5[%c0_7, %c0_8] : memref<64x64xbf16, #tpu.memory_space<vmem>>, vector<64x64xbf16>
    %cst_9 = arith.constant dense<0.000000e+00> : vector<64x128xf32>
    %11 = tpu.matmul %10, %9, %cst_9 {dimension_numbers = #tpu.dot_dimension_numbers<[1], [0], [0], [1], [0, 0, 1, 1], [], []>} : vector<64x64xbf16>, vector<64x128xbf16>, vector<64x128xf32> -> vector<64x128xf32>
    %c0_10 = arith.constant 0 : index
    %c0_11 = arith.constant 0 : index
    %12 = vector.load %arg6[%c0_10, %c0_11] : memref<64x1xf32, #tpu.memory_space<vmem>>, vector<64x1xf32>
    %13 = vector.broadcast %12 : vector<64x1xf32> to vector<64x128xf32>
    %14 = arith.addf %11, %13 : vector<64x128xf32>
    %cst_12 = arith.constant 0.000000e+00 : f32
    %15 = vector.broadcast %cst_12 : f32 to vector<64x128xf32>
    %16 = arith.maximumf %14, %15 : vector<64x128xf32>
    %17 = arith.truncf %16 : vector<64x128xf32> to vector<64x128xbf16>
    %c0_13 = arith.constant 0 : index
    %c0_14 = arith.constant 0 : index
    %18 = vector.load %arg7[%c0_13, %c0_14] : memref<64x64xbf16, #tpu.memory_space<vmem>>, vector<64x64xbf16>
    %cst_15 = arith.constant dense<0.000000e+00> : vector<64x128xf32>
    %19 = tpu.matmul %18, %17, %cst_15 {dimension_numbers = #tpu.dot_dimension_numbers<[1], [0], [0], [1], [0, 0, 1, 1], [], []>} : vector<64x64xbf16>, vector<64x128xbf16>, vector<64x128xf32> -> vector<64x128xf32>
    %c0_16 = arith.constant 0 : index
    %c0_17 = arith.constant 0 : index
    %20 = vector.load %arg8[%c0_16, %c0_17] : memref<64x1xf32, #tpu.memory_space<vmem>>, vector<64x1xf32>
    %21 = vector.broadcast %20 : vector<64x1xf32> to vector<64x128xf32>
    %22 = arith.addf %19, %21 : vector<64x128xf32>
    %cst_18 = arith.constant 0.000000e+00 : f32
    %23 = vector.broadcast %cst_18 : f32 to vector<64x128xf32>
    %24 = arith.maximumf %22, %23 : vector<64x128xf32>
    %25 = arith.truncf %24 : vector<64x128xf32> to vector<64x128xbf16>
    %c0_19 = arith.constant 0 : index
    %c0_20 = arith.constant 0 : index
    %26 = vector.load %arg9[%c0_19, %c0_20] : memref<128x64xbf16, #tpu.memory_space<vmem>>, vector<128x64xbf16>
    %cst_21 = arith.constant dense<0.000000e+00> : vector<128x128xf32>
    %27 = tpu.matmul %26, %25, %cst_21 {dimension_numbers = #tpu.dot_dimension_numbers<[1], [0], [0], [1], [0, 0, 1, 1], [], []>} : vector<128x64xbf16>, vector<64x128xbf16>, vector<128x128xf32> -> vector<128x128xf32>
    %c0_22 = arith.constant 0 : index
    %c0_23 = arith.constant 0 : index
    %28 = vector.load %arg10[%c0_22, %c0_23] : memref<128x1xf32, #tpu.memory_space<vmem>>, vector<128x1xf32>
    %29 = vector.broadcast %28 : vector<128x1xf32> to vector<128x128xf32>
    %30 = arith.addf %27, %29 : vector<128x128xf32>
    %cst_24 = arith.constant 0.000000e+00 : f32
    %31 = vector.broadcast %cst_24 : f32 to vector<128x128xf32>
    %32 = arith.maximumf %30, %31 : vector<128x128xf32>
    %33 = arith.truncf %32 : vector<128x128xf32> to vector<128x128xbf16>
    %c0_25 = arith.constant 0 : index
    %c0_26 = arith.constant 0 : index
    %34 = vector.load %arg11[%c0_25, %c0_26] : memref<1024x128xbf16, #tpu.memory_space<vmem>>, vector<1024x128xbf16>
    %cst_27 = arith.constant dense<0.000000e+00> : vector<1024x128xf32>
    %35 = tpu.matmul %34, %33, %cst_27 {dimension_numbers = #tpu.dot_dimension_numbers<[1], [0], [0], [1], [0, 0, 1, 1], [], []>} : vector<1024x128xbf16>, vector<128x128xbf16>, vector<1024x128xf32> -> vector<1024x128xf32>
    %c0_28 = arith.constant 0 : index
    %c0_29 = arith.constant 0 : index
    %36 = vector.load %arg12[%c0_28, %c0_29] : memref<1024x1xf32, #tpu.memory_space<vmem>>, vector<1024x1xf32>
    %37 = vector.broadcast %36 : vector<1024x1xf32> to vector<1024x128xf32>
    %38 = arith.addf %35, %37 : vector<1024x128xf32>
    %cst_30 = arith.constant 0.000000e+00 : f32
    %39 = vector.broadcast %cst_30 : f32 to vector<1024x128xf32>
    %40 = arith.maximumf %38, %39 : vector<1024x128xf32>
    %41 = arith.truncf %40 : vector<1024x128xf32> to vector<1024x128xbf16>
    %c0_31 = arith.constant 0 : index
    %c0_32 = arith.constant 0 : index
    %c0_33 = arith.constant 0 : index
    %42 = vector.load %arg13[%c0_31, %c0_32, %c0_33] : memref<1x1024x128xbf16, #tpu.memory_space<vmem>>, vector<1x1024x128xbf16>
    %43 = vector.shape_cast %42 : vector<1x1024x128xbf16> to vector<1024x128xbf16>
    %44 = vector.shape_cast %41 : vector<1024x128xbf16> to vector<1x1024x128xbf16>
    tpu.vector_store %arg13[%c0_31, %c0_32, %c0_33], %44 {strides = array<i32>} : memref<1x1024x128xbf16, #tpu.memory_space<vmem>>, vector<1x1024x128xbf16>,
    %cst_34 = arith.constant dense<0xFF800000> : vector<1024xf32>
    %45 = vector.multi_reduction <maximumf>, %40, %cst_34 [1] : vector<1024x128xf32> to vector<1024xf32>
    %46 = vector.shape_cast %45 : vector<1024xf32> to vector<1024x1xf32>
    %c0_i32 = arith.constant 0 : i32
    %47 = arith.cmpi eq, %arg1, %c0_i32 : i32
    %48 = arith.extui %47 : i1 to i32
    %c0_i32_35 = arith.constant 0 : i32
    %49 = arith.cmpi ne, %48, %c0_i32_35 : i32
    scf.if %49 {
      %c0_38 = arith.constant 0 : index
      %c0_39 = arith.constant 0 : index
      %c0_40 = arith.constant 0 : index
      %53 = vector.load %arg14[%c0_38, %c0_39, %c0_40] : memref<1x1024x1xf32, #tpu.memory_space<vmem>>, vector<1x1024x1xf32>
      %54 = vector.shape_cast %53 : vector<1x1024x1xf32> to vector<1024x1xf32>
      %55 = vector.shape_cast %46 : vector<1024x1xf32> to vector<1x1024x1xf32>
      tpu.vector_store %arg14[%c0_38, %c0_39, %c0_40], %55 {strides = array<i32>} : memref<1x1024x1xf32, #tpu.memory_space<vmem>>, vector<1x1024x1xf32>,
    } else {
    }
    %c0_i32_36 = arith.constant 0 : i32
    %50 = arith.cmpi sgt, %arg1, %c0_i32_36 : i32
    %51 = arith.extui %50 : i1 to i32
    %c0_i32_37 = arith.constant 0 : i32
    %52 = arith.cmpi ne, %51, %c0_i32_37 : i32
    scf.if %52 {
      %c0_38 = arith.constant 0 : index
      %c0_39 = arith.constant 0 : index
      %c0_40 = arith.constant 0 : index
      %53 = vector.load %arg14[%c0_38, %c0_39, %c0_40] : memref<1x1024x1xf32, #tpu.memory_space<vmem>>, vector<1x1024x1xf32>
      %54 = vector.shape_cast %53 : vector<1x1024x1xf32> to vector<1024x1xf32>
      %55 = arith.maximumf %54, %46 : vector<1024x1xf32>
      %c0_41 = arith.constant 0 : index
      %c0_42 = arith.constant 0 : index
      %c0_43 = arith.constant 0 : index
      %56 = vector.load %arg14[%c0_41, %c0_42, %c0_43] : memref<1x1024x1xf32, #tpu.memory_space<vmem>>, vector<1x1024x1xf32>
      %57 = vector.shape_cast %56 : vector<1x1024x1xf32> to vector<1024x1xf32>
      %58 = vector.shape_cast %55 : vector<1024x1xf32> to vector<1x1024x1xf32>
      tpu.vector_store %arg14[%c0_41, %c0_42, %c0_43], %58 {strides = array<i32>} : memref<1x1024x1xf32, #tpu.memory_space<vmem>>, vector<1x1024x1xf32>,
    } else {
    }
    return
  }
  func.func @transform_0(%arg0: i32, %arg1: i32) -> (i32, i32, i32) {
    %c0_i32 = arith.constant 0 : i32
    %c0_i32_0 = arith.constant 0 : i32
    return %arg0, %c0_i32, %arg1 : i32, i32, i32
  }
  func.func @transform_1(%arg0: i32, %arg1: i32) -> (i32, i32) {
    %c0_i32 = arith.constant 0 : i32
    %c0_i32_0 = arith.constant 0 : i32
    %c0_i32_1 = arith.constant 0 : i32
    return %c0_i32, %c0_i32_0 : i32, i32
  }
  func.func @transform_2(%arg0: i32, %arg1: i32) -> (i32, i32) {
    %c0_i32 = arith.constant 0 : i32
    %c0_i32_0 = arith.constant 0 : i32
    %c0_i32_1 = arith.constant 0 : i32
    return %c0_i32, %c0_i32_0 : i32, i32
  }
  func.func @transform_3(%arg0: i32, %arg1: i32) -> (i32, i32) {
    %c0_i32 = arith.constant 0 : i32
    %c0_i32_0 = arith.constant 0 : i32
    %c0_i32_1 = arith.constant 0 : i32
    return %c0_i32, %c0_i32_0 : i32, i32
  }
  func.func @transform_4(%arg0: i32, %arg1: i32) -> (i32, i32) {
    %c0_i32 = arith.constant 0 : i32
    %c0_i32_0 = arith.constant 0 : i32
    %c0_i32_1 = arith.constant 0 : i32
    return %c0_i32, %c0_i32_0 : i32, i32
  }
  func.func @transform_5(%arg0: i32, %arg1: i32) -> (i32, i32) {
    %c0_i32 = arith.constant 0 : i32
    %c0_i32_0 = arith.constant 0 : i32
    %c0_i32_1 = arith.constant 0 : i32
    return %c0_i32, %c0_i32_0 : i32, i32
  }
  func.func @transform_6(%arg0: i32, %arg1: i32) -> (i32, i32) {
    %c0_i32 = arith.constant 0 : i32
    %c0_i32_0 = arith.constant 0 : i32
    %c0_i32_1 = arith.constant 0 : i32
    return %c0_i32, %c0_i32_0 : i32, i32
  }
  func.func @transform_7(%arg0: i32, %arg1: i32) -> (i32, i32) {
    %c0_i32 = arith.constant 0 : i32
    %c0_i32_0 = arith.constant 0 : i32
    %c0_i32_1 = arith.constant 0 : i32
    return %c0_i32, %c0_i32_0 : i32, i32
  }
  func.func @transform_8(%arg0: i32, %arg1: i32) -> (i32, i32) {
    %c0_i32 = arith.constant 0 : i32
    %c0_i32_0 = arith.constant 0 : i32
    %c0_i32_1 = arith.constant 0 : i32
    return %c0_i32, %c0_i32_0 : i32, i32
  }
  func.func @transform_9(%arg0: i32, %arg1: i32) -> (i32, i32) {
    %c0_i32 = arith.constant 0 : i32
    %c0_i32_0 = arith.constant 0 : i32
    %c0_i32_1 = arith.constant 0 : i32
    return %c0_i32, %c0_i32_0 : i32, i32
  }
  func.func @transform_10(%arg0: i32, %arg1: i32) -> (i32, i32) {
    %c0_i32 = arith.constant 0 : i32
    %c0_i32_0 = arith.constant 0 : i32
    %c0_i32_1 = arith.constant 0 : i32
    return %c0_i32, %c0_i32_0 : i32, i32
  }
  func.func @transform_11(%arg0: i32, %arg1: i32) -> (i32, i32, i32) {
    %c0_i32 = arith.constant 0 : i32
    %c0_i32_0 = arith.constant 0 : i32
    return %arg0, %c0_i32, %arg1 : i32, i32, i32
  }
  func.func @transform_12(%arg0: i32, %arg1: i32) -> (i32, i32, i32) {
    %c0_i32 = arith.constant 0 : i32
    %c0_i32_0 = arith.constant 0 : i32
    %c0_i32_1 = arith.constant 0 : i32
    return %arg0, %c0_i32, %c0_i32_0 : i32, i32, i32
  }
}

</mosaic_0001>

<bundles_post_ra>
// kernel: pointnet_common_pallas.1
= control target key start
LH: loop header
LB: loop body
LE: loop exit
PB: predicated region body
PF: predicated region fallthrough
CT: control target
= control target key end

     0   :  { %s9648_s0 = inlined_call_operand.vmem [shape: bf16[2,16,256], index: 0, kind: input, shape index: {}]   ;;  %s9649_s1 = inlined_call_operand.vmem [shape: bf16[64,16], index: 1, kind: input, shape index: {}]   ;;  %s9650_s2 = inlined_call_operand.hbm [shape: f32[64,1], index: 2, kind: input, shape index: {}]   ;;  %s9651_s3 = inlined_call_operand.vmem [shape: bf16[64,64], index: 3, kind: input, shape index: {}]   ;;  %s9652_s4 = inlined_call_operand.hbm [shape: f32[64,1], index: 4, kind: input, shape index: {}]   ;;  %s9653_s5 = inlined_call_operand.hbm [shape: bf16[64,64], index: 5, kind: input, shape index: {}]   ;;  %s9654_s6 = inlined_call_operand.hbm [shape: f32[64,1], index: 6, kind: input, shape index: {}]   ;;  %s9655_s7 = inlined_call_operand.vmem [shape: bf16[128,64], index: 7, kind: input, shape index: {}]   ;;  %s9656_s8 = inlined_call_operand.hbm [shape: f32[128,1], index: 8, kind: input, shape index: {}]   ;;  %s9657_s9 = inlined_call_operand.hbm [shape: bf16[1024,128], index: 9, kind: input, shape index: {}]   ;;  %s9658_s10 = inlined_call_operand.hbm [shape: f32[1024,1], index: 10, kind: input, shape index: {}]   ;;  %s9659_s11 = inlined_call_operand.hbm [shape: bf16[2,1024,256], index: 11, kind: output, shape index: {0}]   ;;  %s9660_s12 = inlined_call_operand.vmem [shape: f32[2,1024,1], index: 12, kind: output, shape index: {1}]  }
   0x1   :  { %9813 = sst [smem:[#allocation105_spill]] %s9649_s1 }
   0x2   :  { %9814 = sst [smem:[#allocation106_spill]] %s9650_s2 }
   0x3   :  { %9815 = sst [smem:[#allocation107_spill]] %s9651_s3 }
   0x4   :  { %9816 = sst [smem:[#allocation108_spill]] %s9652_s4 }
   0x5   :  { %9817 = sst [smem:[#allocation109_spill]] %s9654_s6 }
   0x6   :  { %9818 = sst [smem:[#allocation110_spill]] %s9655_s7 }
   0x7   :  { %9819 = sst [smem:[#allocation111_spill]] %s9659_s11 }
   0x8   :  { %9820 = sst [smem:[#allocation112_spill]] %s9660_s12 }
   0x9   :  { %18 = vsyncpa [#allocation4], 0 }
   0xa   :  { %19 = vsyncpa [#allocation7], 0 }
   0xb   :  { %20 = vsyncpa [#allocation10], 0 }
   0xc   :  { %21 = vsyncpa [#allocation13], 0 }
   0xd   :  { %22 = vsyncpa [#allocation5], 0 }
   0xe   :  { %24 = vsyncpa [#allocation5 + $0x1], 0  ;;  %s6699_s21 = smov 0   ;;  %s6701_s22 = smov 0  }
   0xf   :  { %s6703_s23 = smov 0   ;;  %s6705_s24 = smov 0  }
  0x10   :  { %s6707_s25 = smov 0   ;;  %s6709_s26 = smov 0  }
  0x11   :  { %s6711_s27 = smov 0   ;;  %s6713_s28 = smov 0  }
  0x12 LB: > { %9821 = sst [smem:[#allocation21_spill]] %s6588_s21  ;;  %s4964_s29 = sadd.s32 4294967295, %s6616_s28   ;;  %s6616_s28 = sphi %s6713_s28, %s30_s28   ;;  %s6612_s27 = sphi %s6711_s27, %s10327_s27   ;;  %s6608_s26 = sphi %s6709_s26, %s10326_s26   ;;  %s6604_s25 = sphi %s6707_s25, %s10325_s25   ;;  %s6600_s24 = sphi %s6705_s24, %s10324_s24   ;;  %s6596_s23 = sphi %s6703_s23, %s10323_s23   ;;  %s6592_s22 = sphi %s6701_s22, %s10322_s22   ;;  %s6588_s21 = sphi %s6699_s21, %s10321_s21  }
  0x13   : > { %9822 = sst [smem:[#allocation22_spill]] %s6600_s24  ;;  %s4965_s30 = sadd.s32 4294967294, %s6616_s28  }
  0x14   : > { %9823 = sst [smem:[#allocation23_spill]] %s6604_s25  ;;  %s39_s13 = sadd.s32 1, %s6608_s26 }
  0x15   : > { %s42_s14 = sadd.s32 1, %s6612_s27  ;;  %p40_p0 = scmp.ge.s32.totalorder %s39_s13, 2 }
  0x16   : > { %s51_s15 = sadd.s32 1, %s6596_s23  ;;  %p58_p1 = scmp.ne.s32.totalorder %s6596_s23, %s6592_s22 }
  0x17   : > { %p59_p2 = scmp.eq.s32.totalorder %s6616_s28, 0  ;;  %s10329_s13 = smov (%p40_p0, %s39_s13), 0 }
  0x18   : > { %9824 = sst [smem:[#allocation24_spill]] %s10329_s13  ;;  %s10331_s14 = smov (!%p40_p0, %s42_s14), %s6612_s27 }
  0x19   : > { %s47_s16 = ssub.s32 %s6608_s26, %s10329_s13  ;;  %p6752_p3 = por %p59_p2, %p58_p1 }
  0x1a   : > { %p44_p4 = scmp.ge.s32.totalorder %s10331_s14, 2  ;;  %p300_p5 = scmp.eq.s32.totalorder %s4964_s29, 3 }
  0x1b   : > { %s9825_s17 = scalar_select %p6752_p3, 1, 0 }
  0x1c   : > { %p305_p6 = scmp.ne.s32.totalorder %s6592_s22, %s6588_s21  ;;  %p306_p7 = scmp.eq.s32.totalorder %s4965_s30, 3 }
  0x1d   : > { %s10333_s14 = smov (%p44_p4, %s10331_s14), 0  ;;  %p6760_p8 = por %p300_p5, %p58_p1 }
  0x1e   : > { %9826 = sst [smem:[#allocation25_spill]] %s10333_s14  ;;  %p6764_p9 = por %p306_p7, %p305_p6 }
  0x1f   : > { %s9827_s18 = scalar_select %p6760_p8, 1, 0 }
  0x20   : > { %s9829_s19 = scalar_select %p6764_p9, 1, 0 }
  0x21   : > { %9828 = sst [smem:[#allocation26_spill]] %s9827_s18  ;;  %s46_s20 = ssub.s32 %s6612_s27, %s10333_s14 }
  0x22   : > { %9830 = sst [smem:[#allocation27_spill]] %s9829_s19  ;;  %p4966_p10 = scmp.ge.s32.totalorder %s6616_s28, 1 }
  0x23   : > { %s48_s13 = sor.u32 %s47_s16, %s46_s20  ;;  %p339_p11 = scmp.lt.s32.totalorder %s6616_s28, 5 }
  0x24   : > { %p49_p12 = scmp.eq.s32.totalorder %s48_s13, 0  ;;  %p6776_p0 = scmp.eq.s32.totalorder %s4964_s29, 0 }
  0x25   : > { %p6772_p13 = pnand %p4966_p10, %p339_p11  ;;  %s6618_s13 = smov [#allocation6]  }
  0x26   : > { %s9832_s30 = scalar_select %p6776_p0, 1, 0 }
  0x27   : > { %s9831_s11 = scalar_select %p6772_p13, 1, 0 }
  0x28   : > { %s6781_s21 = scalar_select %p49_p12, %s6596_s23, %s51_s15  }
  0x29   : > { %p6103_p1 = pneg %p6772_p13  ;;  %s370_s16 = sshll.u32 %s6618_s13, 4  ;;  %s371_s16 = int_to_ptr.vmem [resolvable:$true] %s370_s16 }
  0x2a   : > { %9833 = sst [smem:[#allocation28_spill]] %s6781_s21  ;;  %s6619_s20 = smov [#allocation9]  }
  0x2b   : > { %p6787_p2 = pnand %p6776_p0, %p6103_p1  ;;  %s396_s19 = sshll.u32 %s6619_s20, 4  ;;  %s397_s19 = int_to_ptr.vmem [resolvable:$true] %s396_s19 }
  0x2c   : > { %s9835_s4 = sld [smem:[#allocation108_spill]] }
  0x2d   : > { %p6799_p5 = pneg %p6787_p2 }
  0x32   : > { %s6310_s24 = scalar_lea.hbm %s9835_s4, 1024 }
  0x33   : > { %p6311_p4 = scmp.ne.s32.totalorder %s9835_s4, %s6310_s24  ;;  %p6317_p10 = scmp.lt.u32.totalorder %s6310_s24, %s9835_s4 }
  0x35   : > { %p6313_p6 = pnand %p6799_p5, %p6311_p4 }
  0x37   : > { %p6314_p7 = pneg %p6313_p6 }
  0x39   : > { %p6319_p11 = pnand %p6317_p10, %p6314_p7 }
  0x3b   : > { %6322 = shalt.err (!%p6319_p11)
}
  0x3c   : > { %s6323_s18 = scalar_lea.vmem %s371_s16, 1024  ;;  %p6331_p8 = scmp.lt.s32.totalorder %s371_s16, %s371_s16 }
  0x3d   : > { %p6324_p12 = scmp.ne.s32.totalorder %s371_s16, %s6323_s18  ;;  %p6332_p0 = scmp.lt.s32.totalorder %s6323_s18, %s6323_s18 }
  0x3f   : > { %p6326_p1 = pnand %p6324_p12, %p6799_p5  ;;  %p6333_p13 = por %p6332_p0, %p6331_p8 }
  0x41   : > { %p6327_p9 = pneg %p6326_p1 }
  0x43   : > { %p6334_p3 = pnand %p6333_p13, %p6327_p9 }
  0x45   : > { %6337 = shalt.err (!%p6334_p3)
}
  0x46   : > { %s9676_s7 = smov 128   ;;  %s9678_s20 = smov 8  }
  0x47   : > { %6109 = dma.hbm_to_vmem [thread:$0]  (!%p6787_p2), %s9835_s4, 1024, %s371_s16, [#allocation7], %s9676_s7, %s9676_s7, %s9678_s20  }
  0x48   : > { %s9837_s6 = sld [smem:[#allocation109_spill]] }
  0x4e   : > { %s6338_s13 = scalar_lea.hbm %s9837_s6, 1024 }
  0x4f   : > { %p6339_p3 = scmp.ne.s32.totalorder %s9837_s6, %s6338_s13  ;;  %p6345_p13 = scmp.lt.u32.totalorder %s6338_s13, %s9837_s6 }
  0x51   : > { %p6341_p8 = pnand %p6339_p3, %p6799_p5 }
  0x53   : > { %p6342_p9 = pneg %p6341_p8 }
  0x55   : > { %p6347_p0 = pnand %p6345_p13, %p6342_p9 }
  0x57   : > { %6350 = shalt.err (!%p6347_p0)
}
  0x58   : > { %s6351_s3 = scalar_lea.vmem %s397_s19, 1024  ;;  %p6359_p10 = scmp.lt.s32.totalorder %s397_s19, %s397_s19 }
  0x59   : > { %p6352_p4 = scmp.ne.s32.totalorder %s397_s19, %s6351_s3  ;;  %p6360_p11 = scmp.lt.s32.totalorder %s6351_s3, %s6351_s3 }
  0x5b   : > { %p6354_p6 = pnand %p6352_p4, %p6799_p5  ;;  %p6361_p12 = por %p6360_p11, %p6359_p10 }
  0x5d   : > { %p6355_p7 = pneg %p6354_p6 }
  0x5f   : > { %p6362_p1 = pnand %p6361_p12, %p6355_p7 }
  0x61   : > { %6365 = shalt.err (!%p6362_p1)
}
  0x62   : > { %6115 = dma.hbm_to_vmem [thread:$0]  (!%p6787_p2), %s9837_s6, 1024, %s397_s19, [#allocation10], %s9676_s7, %s9676_s7, %s9678_s20  }
  0x63   : > { %s6622_s25 = smov [#allocation12]   ;;  %s6366_s15 = scalar_lea.hbm %s9657_s9, 8192 }
  0x64   : > { %s425_s16 = sshll.u32 %s6622_s25, 4  ;;  %p6367_p3 = scmp.ne.s32.totalorder %s9657_s9, %s6366_s15  ;;  %s426_s16 = int_to_ptr.vmem [resolvable:$true] %s425_s16 }
  0x65   : > { %p6373_p13 = scmp.lt.u32.totalorder %s6366_s15, %s9657_s9 }
  0x66   : > { %p6369_p8 = pnand %p6367_p3, %p6799_p5 }
  0x68   : > { %p6370_p9 = pneg %p6369_p8 }
  0x6a   : > { %p6375_p0 = pnand %p6373_p13, %p6370_p9 }
  0x6c   : > { %6378 = shalt.err (!%p6375_p0)
}
  0x6d   : > { %s6379_s19 = scalar_lea.vmem %s426_s16, 8192  ;;  %p6387_p10 = scmp.lt.s32.totalorder %s426_s16, %s426_s16 }
  0x6e   : > { %p6380_p4 = scmp.ne.s32.totalorder %s426_s16, %s6379_s19  ;;  %p6388_p11 = scmp.lt.s32.totalorder %s6379_s19, %s6379_s19 }
  0x70   : > { %p6382_p6 = pnand %p6380_p4, %p6799_p5  ;;  %p6389_p12 = por %p6388_p11, %p6387_p10 }
  0x72   : > { %p6383_p7 = pneg %p6382_p6 }
  0x74   : > { %p6390_p1 = pnand %p6389_p12, %p6383_p7 }
  0x76   : > { %6393 = shalt.err (!%p6390_p1)
}
  0x77   : > { %s9680_s1 = smov 64   ;;  %s6624_s12 = smov 4  }
  0x78   : > { %6121 = dma.hbm_to_vmem [thread:$0]  (!%p6787_p2), %s9657_s9, 8192, %s426_s16, [#allocation13], %s9680_s1, %s9680_s1, %s6624_s12  }
  0x79   : > { %s6625_s24 = smov [#allocation3]   ;;  %s6626_s15 = smov [#allocation8]  }
  0x7a   : > { %s354_s29 = sshll.u32 %s6625_s24, 4  ;;  %s383_s13 = sshll.u32 %s6626_s15, 4  ;;  %s355_s29 = int_to_ptr.vmem [resolvable:$true] %s354_s29  ;;  %s6860_s13 = int_to_ptr.vmem [resolvable:$true] %s383_s13 }
  0x7b   : > { %s9838_s2 = sld [smem:[#allocation106_spill]] }
  0x81   : > { %s6394_s19 = scalar_lea.hbm %s9838_s2, 1024 }
  0x82   : > { %p6395_p3 = scmp.ne.s32.totalorder %s9838_s2, %s6394_s19  ;;  %p6401_p13 = scmp.lt.u32.totalorder %s6394_s19, %s9838_s2 }
  0x84   : > { %p6397_p8 = pnand %p6395_p3, %p6799_p5 }
  0x86   : > { %p6398_p9 = pneg %p6397_p8 }
  0x88   : > { %p6403_p0 = pnand %p6401_p13, %p6398_p9 }
  0x8a   : > { %6406 = shalt.err (!%p6403_p0)
}
  0x8b   : > { %s6407_s25 = scalar_lea.vmem %s355_s29, 1024  ;;  %p6415_p10 = scmp.lt.s32.totalorder %s355_s29, %s355_s29 }
  0x8c   : > { %p6408_p4 = scmp.ne.s32.totalorder %s355_s29, %s6407_s25  ;;  %p6416_p11 = scmp.lt.s32.totalorder %s6407_s25, %s6407_s25 }
  0x8e   : > { %p6410_p6 = pnand %p6408_p4, %p6799_p5  ;;  %p6417_p12 = por %p6416_p11, %p6415_p10 }
  0x90   : > { %p6411_p7 = pneg %p6410_p6 }
  0x92   : > { %p6418_p1 = pnand %p6417_p12, %p6411_p7 }
  0x94   : > { %6421 = shalt.err (!%p6418_p1)
}
  0x95   : > { %s9839_s7 = smov 8   ;;  %s9840_s20 = smov 128  }
  0x96   : > { %6106 = dma.hbm_to_vmem [thread:$0]  (!%p6787_p2), %s9838_s2, 1024, %s355_s29, [#allocation4], %s9840_s20, %s9840_s20, %s9839_s7  }
  0x97   : > { %s6422_s19 = scalar_lea.hbm %s9653_s5, 512 }
  0x98   : > { %p6423_p3 = scmp.ne.s32.totalorder %s9653_s5, %s6422_s19  ;;  %p6429_p13 = scmp.lt.u32.totalorder %s6422_s19, %s9653_s5 }
  0x9a   : > { %p6425_p8 = pnand %p6423_p3, %p6799_p5 }
  0x9c   : > { %p6426_p9 = pneg %p6425_p8 }
  0x9e   : > { %p6431_p0 = pnand %p6429_p13, %p6426_p9 }
  0xa0   : > { %6434 = shalt.err (!%p6431_p0)
}
  0xa1   : > { %s6435_s29 = scalar_lea.vmem %s6860_s13, 512  ;;  %p6443_p10 = scmp.lt.s32.totalorder %s6860_s13, %s6860_s13 }
  0xa2   : > { %p6436_p4 = scmp.ne.s32.totalorder %s6860_s13, %s6435_s29  ;;  %p6444_p11 = scmp.lt.s32.totalorder %s6435_s29, %s6435_s29 }
  0xa4   : > { %p6438_p6 = pnand %p6436_p4, %p6799_p5  ;;  %p6445_p12 = por %p6444_p11, %p6443_p10 }
  0xa6   : > { %p6439_p7 = pneg %p6438_p6 }
  0xa8   : > { %p6446_p1 = pnand %p6445_p12, %p6439_p7 }
  0xaa   : > { %6449 = shalt.err (!%p6446_p1)
}
  0xab   : > { %s9841_s1 = smov 64   ;;  %s6627_s18 = smov [#allocation11]  }
  0xac   : > { %6112 = dma.hbm_to_vmem [thread:$0]  (!%p6787_p2), %s9653_s5, 512, %s6860_s13, [#allocation7], %s9841_s1, %s9841_s1, %s6624_s12  }
  0xad   : > { %s412_s3 = sshll.u32 %s6627_s18, 4  ;;  %s6628_s19 = smov [#allocation14]   ;;  %s413_s3 = int_to_ptr.vmem [resolvable:$true] %s412_s3 }
  0xae   : > { %s438_s4 = sshll.u32 %s6628_s19, 4  ;;  %s6450_s29 = scalar_lea.hbm %s9656_s8, 2048  ;;  %s6909_s4 = int_to_ptr.vmem [resolvable:$true] %s438_s4 }
  0xaf   : > { %p6451_p3 = scmp.ne.s32.totalorder %s9656_s8, %s6450_s29  ;;  %p6457_p13 = scmp.lt.u32.totalorder %s6450_s29, %s9656_s8 }
  0xb1   : > { %p6453_p8 = pnand %p6451_p3, %p6799_p5 }
  0xb3   : > { %p6454_p9 = pneg %p6453_p8 }
  0xb5   : > { %p6459_p0 = pnand %p6457_p13, %p6454_p9 }
  0xb7   : > { %6462 = shalt.err (!%p6459_p0)
}
  0xb8   : > { %s6463_s13 = scalar_lea.vmem %s413_s3, 2048  ;;  %p6471_p10 = scmp.lt.s32.totalorder %s413_s3, %s413_s3 }
  0xb9   : > { %p6464_p4 = scmp.ne.s32.totalorder %s413_s3, %s6463_s13  ;;  %p6472_p11 = scmp.lt.s32.totalorder %s6463_s13, %s6463_s13 }
  0xbb   : > { %p6466_p6 = pnand %p6464_p4, %p6799_p5  ;;  %p6473_p12 = por %p6472_p11, %p6471_p10 }
  0xbd   : > { %p6467_p7 = pneg %p6466_p6 }
  0xbf   : > { %p6474_p1 = pnand %p6473_p12, %p6467_p7 }
  0xc1   : > { %6477 = shalt.err (!%p6474_p1)
}
  0xc2   : > { %6118 = dma.hbm_to_vmem [thread:$0]  (!%p6787_p2), %s9656_s8, 2048, %s413_s3, [#allocation10], %s9840_s20, %s9840_s20, %s9839_s7  }
  0xc3   : > { %s6478_s18 = scalar_lea.hbm %s9658_s10, 16384 }
  0xc4   : > { %p6479_p3 = scmp.ne.s32.totalorder %s9658_s10, %s6478_s18  ;;  %p6485_p13 = scmp.lt.u32.totalorder %s6478_s18, %s9658_s10 }
  0xc6   : > { %p6481_p8 = pnand %p6479_p3, %p6799_p5 }
  0xc8   : > { %p6482_p9 = pneg %p6481_p8 }
  0xca   : > { %p6487_p0 = pnand %p6485_p13, %p6482_p9 }
  0xcc   : > { %6490 = shalt.err (!%p6487_p0)
}
  0xcd   : > { %s6491_s3 = scalar_lea.vmem %s6909_s4, 16384  ;;  %p6499_p10 = scmp.lt.s32.totalorder %s6909_s4, %s6909_s4 }
  0xce   : > { %p6492_p4 = scmp.ne.s32.totalorder %s6909_s4, %s6491_s3  ;;  %p6500_p11 = scmp.lt.s32.totalorder %s6491_s3, %s6491_s3 }
  0xd0   : > { %p6494_p6 = pnand %p6492_p4, %p6799_p5  ;;  %p6501_p12 = por %p6500_p11, %p6499_p10 }
  0xd2   : > { %p6495_p7 = pneg %p6494_p6 }
  0xd4   : > { %p6502_p1 = pnand %p6501_p12, %p6495_p7 }
  0xd6   : > { %6505 = shalt.err (!%p6502_p1)
}
  0xd7   : > { %6124 = dma.hbm_to_vmem [thread:$0]  (!%p6787_p2), %s9658_s10, 16384, %s6909_s4, [#allocation13], %s9840_s20, %s9840_s20, %s9839_s7  }
  0xd8   : > { %p4974_p3 = scmp.ge.s32.totalorder %s6616_s28, 4 }
  0xd9   : > { %p9842_p5 = scmp.ne.s32.totalorder (!%p4974_p3), %s9825_s17, 0 }
  0xda   : > { %448 = sbr.rel (%p4974_p3) target bundleno = 232 (0xe8), region = 56 }
  0xe1   : > { %451 = sbr.rel (!%p9842_p5) target bundleno = 232 (0xe8), region = 60  ;;  %s453_s21 = sand.u32 (%p9842_p5), 1, %s6596_s23  }
  0xe2   : > { %s4976_s13 = sshll.u32 (%p9842_p5), %s6612_s27, 2  ;;  %s4975_s14 = sshll.u32 (%p9842_p5), %s453_s21, 3 }
  0xe3   : > { %s457_s2 = sadd.s32 (%p9842_p5), %s6608_s26, %s4976_s13  ;;  %s455_s7 = scalar_lea.vmem (%p9842_p5), [#allocation2], %s4975_s14 }
  0xe4   : > { %s4977_s6 = sshll.u32 (%p9842_p5), %s457_s2, 2 }
  0xe5   : > { %s459_s18 = scalar_lea.vmem (%p9842_p5), %s9648_s0, %s4977_s6 }
  0xe6   : > { %v475_v0 = vld [vmem:[%s459_s18] sm:$0xf] (%p9842_p5)  ;;  %v477_v1 = vld [vmem:[%s459_s18 + $0x8] sm:$0xf] (%p9842_p5) }
  0xe7   : > { %476 = vst [vmem:[%s455_s7] sm:$0xf] (%p9842_p5), %v475_v0  ;;  %478 = vst [vmem:[%s455_s7 + $0x4] sm:$0xf] (%p9842_p5), %v477_v1 }
  0xe8 PF: > { %p9843_p2 = scmp.ne.s32.totalorder %s9831_s11, 0 }
  0xea   : > { %508 = sbr.rel (%p9843_p2) target bundleno = 1969 (0x7b1), region = 101 }
  0xf1   : > { %s6970_s17 = sand.u32 1, %s6592_s22   ;;  %p9844_p8 = scmp.ne.s32.totalorder %s9832_s30, 0 }
  0xf2   : > { %s4979_s20 = sshll.u32 %s6970_s17, 3 }
  0xf3   : > { %s513_s4 = scalar_lea.vmem [#allocation2], %s4979_s20 }
  0xf4   : > { %6567 = dma.done.wait (%p9844_p8), [#allocation4], 1024  }
  0xf5   : > { %6569 = vsyncadd (%p9844_p8), [#allocation4], 4294966272 }
  0xf6   : > { %6571 = dma.done.wait (%p9844_p8), [#allocation7], 1536  }
  0xf7   : > { %6573 = vsyncadd (%p9844_p8), [#allocation7], 4294965760 }
  0xf8   : > { %6575 = dma.done.wait (%p9844_p8), [#allocation10], 3072  }
  0xf9   : > { %6577 = vsyncadd (%p9844_p8), [#allocation10], 4294964224 }
  0xfa   : > { %6579 = dma.done.wait (%p9844_p8), [#allocation13], 24576  }
  0xfb   : > { %6581 = vsyncadd (%p9844_p8), [#allocation13], 4294942720  ;;  %s9845_s11 = sld [smem:[#allocation23_spill]]  ;;  %v6629_v2 = vmov 0   ;;  %s9846_s29 = sld [smem:[#allocation112_spill]]  ;;  %v603_v3 = vld [vmem:[#allocation3 + $0x10] sm:$0xff] }
  0xfc   : > { %6224 = vset.pattern.permute.xlu1 %v6629_v2  ;;  %6223 = vset.pattern.permute.xlu0 %v6629_v2  ;;  %v601_v4 = vld [vmem:[#allocation3] sm:$0xff]  ;;  %v6225_v5 = vld [vmem:[%s513_s4] sm:$0xff]   ;;  %v602_v7 = vld [vmem:[#allocation3 + $0x8] sm:$0xff]  ;;  %s9847_s12 = sld [smem:[#allocation105_spill]]  ;;  %vm675_vm0 = vcmask 130048   ;;  %s9848_s7 = sld [smem:[#allocation107_spill]] }
  0xfd   : > { %621 = vperm.xlu1 %6224, %v603_v3   ;;  %611 = vperm.xlu0 %6223, %v601_v4   ;;  %v604_v6 = vld [vmem:[#allocation3 + $0x18] sm:$0xff]  ;;  %v606_v10 = vld [vmem:[#allocation3 + $0x28] sm:$0xff]  ;;  %v605_v11 = vld [vmem:[#allocation3 + $0x20] sm:$0xff]  ;;  %vm841_vm1 = vcmask 523264   ;;  %s9864_s24 = sld [smem:[#allocation110_spill]]  ;;  %s4987_s30 = sshll.u32 %s6970_s17, 9 }
  0xfe   : > { %5847 = vmatprep.subr.bf16.mxu0 %v6225_v5  ;;  %v608_v13 = vld [vmem:[#allocation3 + $0x38] sm:$0xff]  ;;  %v607_v14 = vld [vmem:[#allocation3 + $0x30] sm:$0xff]  ;;  %v774_v16 = vld [vmem:[#allocation6 + $0x8] sm:$0xff]  ;;  %s10168_s21 = sld [smem:[#allocation22_spill]] }
  0xff   : > { %5848 = vmatpush3.bf16.msra.mxu0 %v6225_v5  ;;  %v773_v17 = vld [vmem:[#allocation6] sm:$0xff]  ;;  %v776_v18 = vld [vmem:[#allocation6 + $0x18] sm:$0xff]  ;;  %v775_v19 = vld [vmem:[#allocation6 + $0x10] sm:$0xff] }
 0x100   : > { %v778_v20 = vld [vmem:[#allocation6 + $0x28] sm:$0xff]  ;;  %v777_v21 = vld [vmem:[#allocation6 + $0x20] sm:$0xff]  ;;  %v780_v22 = vld [vmem:[#allocation6 + $0x38] sm:$0xff] }
 0x101   : > { %p585_p9 = scmp.lt.s32.totalorder %s9845_s11, 1  ;;  %626 = vperm.xlu1 %6224, %v604_v6   ;;  %616 = vperm.xlu0 %6223, %v602_v7   ;;  %v779_v23 = vld [vmem:[#allocation6 + $0x30] sm:$0xff]  ;;  %v940_v24 = vld [vmem:[#allocation9 + $0x8] sm:$0xff]  ;;  %v939_v25 = vld [vmem:[#allocation9] sm:$0xff] }
 0x102   : > { %v6226_v8 = vld [vmem:[%s9847_s12] sm:$0xff]   ;;  %v6227_v9 = vld [vmem:[%s9847_s12 + $0x8] sm:$0xff]   ;;  %v6228_v12 = vld [vmem:[%s9847_s12 + $0x10] sm:$0xff]  }
 0x103   : > { %s10335_s11 = smov (!%p585_p9, %s9845_s11), 1  ;;  %5849 = vmatprep.mubr.msk.bf16.mxu0 %vm675_vm0, %v6226_v8  ;;  %v6229_v15 = vld [vmem:[%s9847_s12 + $0x18] sm:$0xff]   ;;  %v942_v26 = vld [vmem:[#allocation9 + $0x18] sm:$0xff]  ;;  %v941_v27 = vld [vmem:[#allocation9 + $0x10] sm:$0xff]  ;;  %s9865_s13 = smov %s9864_s24 }
 0x104   : > { %s5230_s19 = sshll.u32 %s10335_s11, 10  ;;  %5850 = vmatmul.mubr.msk.bf16.vlgmr.msra.gmra.mrb[0].mxu0 %vm675_vm0, %v6227_v9  ;;  %v944_v28 = vld [vmem:[#allocation9 + $0x28] sm:$0xff]  ;;  %v943_v29 = vld [vmem:[#allocation9 + $0x20] sm:$0xff]  ;;  %v946_v30 = vld [vmem:[#allocation9 + $0x38] sm:$0xff]  ;;  %p5223_p13 = scmp.ne.s32.totalorder %s10168_s21, 0 }
 0x105   : > { %s6994_s3 = scalar_lea.vmem %s9846_s29, %s5230_s19  ;;  %5853 = vmatprep.mubr.msk.bf16.mxu0 %vm675_vm0, %v6228_v12  ;;  %636 = vperm.xlu1 %6224, %v606_v10   ;;  %v945_v31 = vld [vmem:[#allocation9 + $0x30] sm:$0xff]  ;;  %v1113_v32 = vld [vmem:[#allocation11 + $0x8] sm:$0xff]  ;;  %v1112_v33 = vld [vmem:[#allocation11] sm:$0xff]  ;;  %vm4246_vm2 = vcmask (!%p5223_p13), 7168  }
 0x106   : > { %631 = vperm.xlu0 %6223, %v605_v11   ;;  %v1115_v34 = vld [vmem:[#allocation11 + $0x18] sm:$0xff]  ;;  %v1114_v35 = vld [vmem:[#allocation11 + $0x10] sm:$0xff]  ;;  %v1117_v36 = vld [vmem:[#allocation11 + $0x28] sm:$0xff] }
 0x107   : > { %v1116_v37 = vld [vmem:[#allocation11 + $0x20] sm:$0xff]  ;;  %v1119_v38 = vld [vmem:[#allocation11 + $0x38] sm:$0xff]  ;;  %v1118_v39 = vld [vmem:[#allocation11 + $0x30] sm:$0xff] }
 0x108   : > { %v1121_v40 = vld [vmem:[#allocation11 + $0x48] sm:$0xff]  ;;  %v1120_v41 = vld [vmem:[#allocation11 + $0x40] sm:$0xff]  ;;  %v1123_v42 = vld [vmem:[#allocation11 + $0x58] sm:$0xff] }
 0x109   : > { %646 = vperm.xlu1 %6224, %v608_v13   ;;  %v1122_v43 = vld [vmem:[#allocation11 + $0x50] sm:$0xff]  ;;  %v1125_v44 = vld [vmem:[#allocation11 + $0x68] sm:$0xff]  ;;  %v1124_v45 = vld [vmem:[#allocation11 + $0x60] sm:$0xff] }
 0x10a   : > { %641 = vperm.xlu0 %6223, %v607_v14   ;;  %v1127_v46 = vld [vmem:[#allocation11 + $0x78] sm:$0xff]  ;;  %v1126_v47 = vld [vmem:[#allocation11 + $0x70] sm:$0xff]  ;;  %v1522_v48 = vld [vmem:[#allocation14 + $0x8] sm:$0xff] }
 0x10b   : > { %v1521_v49 = vld [vmem:[#allocation14] sm:$0xff]  ;;  %v1524_v50 = vld [vmem:[#allocation14 + $0x18] sm:$0xff]  ;;  %v1523_v51 = vld [vmem:[#allocation14 + $0x10] sm:$0xff] }
 0x10c   : > { %5854 = vmatmul.mubr.msk.bf16.gmra.mrb[4].mxu0 %vm675_vm0, %v6229_v15  ;;  %v1526_v52 = vld [vmem:[#allocation14 + $0x28] sm:$0xff]  ;;  %v1525_v53 = vld [vmem:[#allocation14 + $0x20] sm:$0xff]  ;;  %v1528_v54 = vld [vmem:[#allocation14 + $0x38] sm:$0xff] }
 0x10d   : > { %788 = vperm.xlu1 %6224, %v774_v16   ;;  %v1527_v55 = vld [vmem:[#allocation14 + $0x30] sm:$0xff]  ;;  %v1530_v56 = vld [vmem:[#allocation14 + $0x48] sm:$0xff]  ;;  %v1529_v57 = vld [vmem:[#allocation14 + $0x40] sm:$0xff] }
 0x10e   : > { %783 = vperm.xlu0 %6223, %v773_v17   ;;  %v1532_v58 = vld [vmem:[#allocation14 + $0x58] sm:$0xff]  ;;  %v1531_v59 = vld [vmem:[#allocation14 + $0x50] sm:$0xff]  ;;  %v1534_v60 = vld [vmem:[#allocation14 + $0x68] sm:$0xff] }
 0x10f   : > { %v1533_v61 = vld [vmem:[#allocation14 + $0x60] sm:$0xff]  ;;  %v1536_v62 = vld [vmem:[#allocation14 + $0x78] sm:$0xff]  ;;  %v1535_v63 = vld [vmem:[#allocation14 + $0x70] sm:$0xff] }
 0x110   : > { %v1538_v0 = vld [vmem:[#allocation14 + $0x88] sm:$0xff]  ;;  %v1537_v1 = vld [vmem:[#allocation14 + $0x80] sm:$0xff]  ;;  %v1540_v2 = vld [vmem:[#allocation14 + $0x98] sm:$0xff] }
 0x111   : > { %798 = vperm.xlu1 %6224, %v776_v18   ;;  %v1539_v3 = vld [vmem:[#allocation14 + $0x90] sm:$0xff]  ;;  %v1542_v5 = vld [vmem:[#allocation14 + $0xa8] sm:$0xff]  ;;  %v1541_v6 = vld [vmem:[#allocation14 + $0xa0] sm:$0xff] }
 0x112   : > { %793 = vperm.xlu0 %6223, %v775_v19   ;;  %v6230_v4 = vld [vmem:[%s9848_s7] sm:$0xff]   ;;  %v1544_v7 = vld [vmem:[#allocation14 + $0xb8] sm:$0xff]  ;;  %v1546_v9 = vld [vmem:[#allocation14 + $0xc8] sm:$0xff] }
 0x113   : > { %5865 = vmatprep.mubr.msk.bf16.mxu1 %vm841_vm1, %v6230_v4  ;;  %v1543_v8 = vld [vmem:[#allocation14 + $0xb0] sm:$0xff]  ;;  %v1545_v10 = vld [vmem:[#allocation14 + $0xc0] sm:$0xff]  ;;  %v1548_v13 = vld [vmem:[#allocation14 + $0xd8] sm:$0xff] }
 0x114   : > { %v1547_v14 = vld [vmem:[#allocation14 + $0xd0] sm:$0xff]  ;;  %v1550_v15 = vld [vmem:[#allocation14 + $0xe8] sm:$0xff]  ;;  %v1549_v16 = vld [vmem:[#allocation14 + $0xe0] sm:$0xff] }
 0x115   : > { %808 = vperm.xlu1 %6224, %v778_v20   ;;  %v1552_v19 = vld [vmem:[#allocation14 + $0xf8] sm:$0xff]  ;;  %v1551_v20 = vld [vmem:[#allocation14 + $0xf0] sm:$0xff] }
 0x116   : > { %803 = vperm.xlu0 %6223, %v777_v21  }
 0x119   : > { %818 = vperm.xlu1 %6224, %v780_v22  }
 0x11a   : > { %813 = vperm.xlu0 %6223, %v779_v23   ;;  %v1554_v23 = vld [vmem:[#allocation14 + $0x108] sm:$0xff] }
 0x11d   : > { %954 = vperm.xlu1 %6224, %v940_v24   ;;  %v1553_v24 = vld [vmem:[#allocation14 + $0x100] sm:$0xff] }
 0x11e   : > { %949 = vperm.xlu0 %6223, %v939_v25   ;;  %v1556_v25 = vld [vmem:[#allocation14 + $0x118] sm:$0xff] }
 0x121   : > { %964 = vperm.xlu1 %6224, %v942_v26   ;;  %v1555_v26 = vld [vmem:[#allocation14 + $0x110] sm:$0xff] }
 0x122   : > { %959 = vperm.xlu0 %6223, %v941_v27  }
 0x125   : > { %974 = vperm.xlu1 %6224, %v944_v28  }
 0x126   : > { %969 = vperm.xlu0 %6223, %v943_v29   ;;  %v1558_v29 = vld [vmem:[#allocation14 + $0x128] sm:$0xff] }
 0x129   : > { %984 = vperm.xlu1 %6224, %v946_v30   ;;  %v1557_v30 = vld [vmem:[#allocation14 + $0x120] sm:$0xff] }
 0x12a   : > { %979 = vperm.xlu0 %6223, %v945_v31  }
 0x12d   : > { %1135 = vperm.xlu1 %6224, %v1113_v32  }
 0x12e   : > { %1130 = vperm.xlu0 %6223, %v1112_v33   ;;  %v1560_v33 = vld [vmem:[#allocation14 + $0x138] sm:$0xff] }
 0x131   : > { %1145 = vperm.xlu1 %6224, %v1115_v34   ;;  %v1559_v34 = vld [vmem:[#allocation14 + $0x130] sm:$0xff] }
 0x132   : > { %1140 = vperm.xlu0 %6223, %v1114_v35   ;;  %v1562_v35 = vld [vmem:[#allocation14 + $0x148] sm:$0xff] }
 0x135   : > { %1155 = vperm.xlu1 %6224, %v1117_v36   ;;  %v1561_v36 = vld [vmem:[#allocation14 + $0x140] sm:$0xff] }
 0x136   : > { %1150 = vperm.xlu0 %6223, %v1116_v37  }
 0x139   : > { %1165 = vperm.xlu1 %6224, %v1119_v38  }
 0x13a   : > { %1160 = vperm.xlu0 %6223, %v1118_v39   ;;  %v1564_v39 = vld [vmem:[#allocation14 + $0x158] sm:$0xff] }
 0x13d   : > { %1175 = vperm.xlu1 %6224, %v1121_v40   ;;  %v1563_v40 = vld [vmem:[#allocation14 + $0x150] sm:$0xff] }
 0x13e   : > { %1170 = vperm.xlu0 %6223, %v1120_v41  }
 0x141   : > { %1185 = vperm.xlu1 %6224, %v1123_v42  }
 0x142   : > { %1180 = vperm.xlu0 %6223, %v1122_v43   ;;  %v1566_v43 = vld [vmem:[#allocation14 + $0x168] sm:$0xff] }
 0x145   : > { %1195 = vperm.xlu1 %6224, %v1125_v44   ;;  %v1565_v44 = vld [vmem:[#allocation14 + $0x160] sm:$0xff] }
 0x146   : > { %1190 = vperm.xlu0 %6223, %v1124_v45   ;;  %v1568_v45 = vld [vmem:[#allocation14 + $0x178] sm:$0xff] }
 0x149   : > { %1205 = vperm.xlu1 %6224, %v1127_v46   ;;  %v1567_v46 = vld [vmem:[#allocation14 + $0x170] sm:$0xff] }
 0x14a   : > { %1200 = vperm.xlu0 %6223, %v1126_v47  }
 0x14d   : > { %1656 = vperm.xlu1 %6224, %v1522_v48  }
 0x14e   : > { %1651 = vperm.xlu0 %6223, %v1521_v49   ;;  %v1570_v49 = vld [vmem:[#allocation14 + $0x188] sm:$0xff] }
 0x151   : > { %1666 = vperm.xlu1 %6224, %v1524_v50   ;;  %v1569_v50 = vld [vmem:[#allocation14 + $0x180] sm:$0xff] }
 0x152   : > { %1661 = vperm.xlu0 %6223, %v1523_v51  }
 0x155   : > { %1676 = vperm.xlu1 %6224, %v1526_v52  }
 0x156   : > { %1671 = vperm.xlu0 %6223, %v1525_v53   ;;  %v1572_v53 = vld [vmem:[#allocation14 + $0x198] sm:$0xff] }
 0x159   : > { %1686 = vperm.xlu1 %6224, %v1528_v54   ;;  %v1571_v54 = vld [vmem:[#allocation14 + $0x190] sm:$0xff] }
 0x15a   : > { %1681 = vperm.xlu0 %6223, %v1527_v55   ;;  %v1574_v55 = vld [vmem:[#allocation14 + $0x1a8] sm:$0xff] }
 0x15d   : > { %1696 = vperm.xlu1 %6224, %v1530_v56   ;;  %v1573_v56 = vld [vmem:[#allocation14 + $0x1a0] sm:$0xff] }
 0x15e   : > { %1691 = vperm.xlu0 %6223, %v1529_v57  }
 0x161   : > { %1706 = vperm.xlu1 %6224, %v1532_v58  }
 0x162   : > { %1701 = vperm.xlu0 %6223, %v1531_v59   ;;  %v1576_v59 = vld [vmem:[#allocation14 + $0x1b8] sm:$0xff] }
 0x165   : > { %1716 = vperm.xlu1 %6224, %v1534_v60   ;;  %v1575_v60 = vld [vmem:[#allocation14 + $0x1b0] sm:$0xff] }
 0x166   : > { %1711 = vperm.xlu0 %6223, %v1533_v61  }
 0x169   : > { %1726 = vperm.xlu1 %6224, %v1536_v62  }
 0x16a   : > { %1721 = vperm.xlu0 %6223, %v1535_v63   ;;  %v1578_v63 = vld [vmem:[#allocation14 + $0x1c8] sm:$0xff] }
 0x16d   : > { %1736 = vperm.xlu1 %6224, %v1538_v0   ;;  %v1577_v0 = vld [vmem:[#allocation14 + $0x1c0] sm:$0xff] }
 0x16e   : > { %1731 = vperm.xlu0 %6223, %v1537_v1   ;;  %v1580_v1 = vld [vmem:[#allocation14 + $0x1d8] sm:$0xff] }
 0x171   : > { %1746 = vperm.xlu1 %6224, %v1540_v2   ;;  %v1579_v2 = vld [vmem:[#allocation14 + $0x1d0] sm:$0xff] }
 0x172   : > { %1741 = vperm.xlu0 %6223, %v1539_v3  }
 0x175   : > { %1756 = vperm.xlu1 %6224, %v1542_v5   ;;  %v1582_v5 = vld [vmem:[#allocation14 + $0x1e8] sm:$0xff] }
 0x176   : > { %1751 = vperm.xlu0 %6223, %v1541_v6   ;;  %v1581_v6 = vld [vmem:[#allocation14 + $0x1e0] sm:$0xff] }
 0x179   : > { %1766 = vperm.xlu1 %6224, %v1544_v7  }
 0x17a   : > { %1761 = vperm.xlu0 %6223, %v1543_v8  }
 0x17c   : > { %v7016_v11 = vpop.permute.xlu1 %621  ;;  %v7018_v12 = vpop.permute.xlu0 %611 }
 0x17d   : > { %1776 = vperm.xlu1 %6224, %v1546_v9   ;;  %v1584_v9 = vld [vmem:[#allocation14 + $0x1f8] sm:$0xff] }
 0x17e   : > { %1771 = vperm.xlu0 %6223, %v1545_v10   ;;  %v1583_v10 = vld [vmem:[#allocation14 + $0x1f0] sm:$0xff] }
 0x180   : > { %v7020_v17 = vpop.permute.xlu1 %626  ;;  %v7022_v18 = vpop.permute.xlu0 %616 }
 0x181   : > { %1786 = vperm.xlu1 %6224, %v1548_v13   ;;  %v1586_v13 = vld [vmem:[#allocation14 + $0x208] sm:$0xff] }
 0x182   : > { %1781 = vperm.xlu0 %6223, %v1547_v14   ;;  %v1585_v14 = vld [vmem:[#allocation14 + $0x200] sm:$0xff] }
 0x184   : > { %v7024_v21 = vpop.permute.xlu1 %636 }
 0x185   : > { %1796 = vperm.xlu1 %6224, %v1550_v15   ;;  %v7026_v22 = vpop.permute.xlu0 %631 }
 0x186   : > { %1791 = vperm.xlu0 %6223, %v1549_v16  }
 0x188   : > { %v7028_v27 = vpop.permute.xlu1 %646 }
 0x189   : > { %1806 = vperm.xlu1 %6224, %v1552_v19   ;;  %v7030_v28 = vpop.permute.xlu0 %641  ;;  %v1588_v19 = vld [vmem:[#allocation14 + $0x218] sm:$0xff] }
 0x18a   : > { %1801 = vperm.xlu0 %6223, %v1551_v20   ;;  %v1587_v20 = vld [vmem:[#allocation14 + $0x210] sm:$0xff] }
 0x18c   : > { %v7032_v31 = vpop.permute.xlu1 %788 }
 0x18d   : > { %1816 = vperm.xlu1 %6224, %v1554_v23   ;;  %v7034_v32 = vpop.permute.xlu0 %783 }
 0x18e   : > { %1811 = vperm.xlu0 %6223, %v1553_v24  }
 0x190   : > { %v7036_v37 = vpop.permute.xlu1 %798 }
 0x191   : > { %1826 = vperm.xlu1 %6224, %v1556_v25   ;;  %v7038_v38 = vpop.permute.xlu0 %793  ;;  %v1590_v25 = vld [vmem:[#allocation14 + $0x228] sm:$0xff] }
 0x192   : > { %1821 = vperm.xlu0 %6223, %v1555_v26   ;;  %v1589_v26 = vld [vmem:[#allocation14 + $0x220] sm:$0xff] }
 0x194   : > { %v7040_v41 = vpop.permute.xlu1 %808 }
 0x195   : > { %1836 = vperm.xlu1 %6224, %v1558_v29   ;;  %v7042_v42 = vpop.permute.xlu0 %803 }
 0x196   : > { %1831 = vperm.xlu0 %6223, %v1557_v30   ;;  %v1592_v30 = vld [vmem:[#allocation14 + $0x238] sm:$0xff] }
 0x198   : > { %v7044_v47 = vpop.permute.xlu1 %818 }
 0x199   : > { %1846 = vperm.xlu1 %6224, %v1560_v33   ;;  %v7046_v48 = vpop.permute.xlu0 %813  ;;  %v1591_v33 = vld [vmem:[#allocation14 + $0x230] sm:$0xff] }
 0x19a   : > { %1841 = vperm.xlu0 %6223, %v1559_v34  }
 0x19c   : > { %v7048_v51 = vpop.permute.xlu1 %954 }
 0x19d   : > { %1856 = vperm.xlu1 %6224, %v1562_v35   ;;  %v7050_v52 = vpop.permute.xlu0 %949 }
 0x19e   : > { %1851 = vperm.xlu0 %6223, %v1561_v36  }
 0x1a0   : > { %v7052_v57 = vpop.permute.xlu1 %964 }
 0x1a1   : > { %1866 = vperm.xlu1 %6224, %v1564_v39   ;;  %v7054_v58 = vpop.permute.xlu0 %959 }
 0x1a2   : > { %1861 = vperm.xlu0 %6223, %v1563_v40  }
 0x1a4   : > { %v7056_v61 = vpop.permute.xlu1 %974 }
 0x1a5   : > { %1876 = vperm.xlu1 %6224, %v1566_v43   ;;  %v7058_v62 = vpop.permute.xlu0 %969 }
 0x1a6   : > { %1871 = vperm.xlu0 %6223, %v1565_v44  }
 0x1a8   : > { %v7060_v3 = vpop.permute.xlu1 %984 }
 0x1a9   : > { %1886 = vperm.xlu1 %6224, %v1568_v45   ;;  %v7062_v4 = vpop.permute.xlu0 %979 }
 0x1aa   : > { %1881 = vperm.xlu0 %6223, %v1567_v46   ;;  %v1594_v46 = vld [vmem:[#allocation14 + $0x248] sm:$0xff] }
 0x1ac   : > { %v7064_v7 = vpop.permute.xlu1 %1135 }
 0x1ad   : > { %1896 = vperm.xlu1 %6224, %v1570_v49   ;;  %v7066_v8 = vpop.permute.xlu0 %1130  ;;  %v1593_v49 = vld [vmem:[#allocation14 + $0x240] sm:$0xff] }
 0x1ae   : > { %1891 = vperm.xlu0 %6223, %v1569_v50  }
 0x1b0   : > { %v7068_v15 = vpop.permute.xlu1 %1145 }
 0x1b1   : > { %1906 = vperm.xlu1 %6224, %v1572_v53   ;;  %v7070_v16 = vpop.permute.xlu0 %1140 }
 0x1b2   : > { %1901 = vperm.xlu0 %6223, %v1571_v54  }
 0x1b4   : > { %v7072_v23 = vpop.permute.xlu1 %1155 }
 0x1b5   : > { %1916 = vperm.xlu1 %6224, %v1574_v55   ;;  %v7074_v24 = vpop.permute.xlu0 %1150 }
 0x1b6   : > { %1911 = vperm.xlu0 %6223, %v1573_v56  }
 0x1b8   : > { %v7076_v34 = vpop.permute.xlu1 %1165 }
 0x1b9   : > { %1926 = vperm.xlu1 %6224, %v1576_v59   ;;  %v7078_v36 = vpop.permute.xlu0 %1160 }
 0x1ba   : > { %1921 = vperm.xlu0 %6223, %v1575_v60  }
 0x1bc   : > { %v7084_v55 = vpop.permute.xlu1 %1175 }
 0x1bd   : > { %1936 = vperm.xlu1 %6224, %v1578_v63   ;;  %v1596_v63 = vld [vmem:[#allocation14 + $0x258] sm:$0xff] }
 0x1be   : > { %1931 = vperm.xlu0 %6223, %v1577_v0  }
 0x1c1   : > { %1946 = vperm.xlu1 %6224, %v1580_v1   ;;  %v1595_v1 = vld [vmem:[#allocation14 + $0x250] sm:$0xff] }
 0x1c2   : > { %1941 = vperm.xlu0 %6223, %v1579_v2  }
 0x1c5   : > { %1956 = vperm.xlu1 %6224, %v1582_v5  }
 0x1c6   : > { %1951 = vperm.xlu0 %6223, %v1581_v6  }
 0x1c9   : > { %1966 = vperm.xlu1 %6224, %v1584_v9  }
 0x1ca   : > { %1961 = vperm.xlu0 %6223, %v1583_v10   ;;  %v1598_v10 = vld [vmem:[#allocation14 + $0x268] sm:$0xff] }
 0x1cd   : > { %1976 = vperm.xlu1 %6224, %v1586_v13   ;;  %v7091_v13 = vpop.permute.xlu1 %1185 }
 0x1ce   : > { %1971 = vperm.xlu0 %6223, %v1585_v14  }
 0x1d1   : > { %1986 = vperm.xlu1 %6224, %v1588_v19   ;;  %v1597_v19 = vld [vmem:[#allocation14 + $0x260] sm:$0xff] }
 0x1d2   : > { %1981 = vperm.xlu0 %6223, %v1587_v20  }
 0x1d5   : > { %1996 = vperm.xlu1 %6224, %v1590_v25  }
 0x1d6   : > { %1991 = vperm.xlu0 %6223, %v1589_v26  }
 0x1d7   : > { %v5851_v29 = vpop.f32.mrb[0].mxu0 }
 0x1d8   : > { %v722_v35 = vpop.f32.mrb[1].mxu0  ;;  %v731_v39 = vadd.f32 %v5851_v29, %v7016_v11  ;;  %v7086_v11 = vpop.permute.xlu0 %1170 }
 0x1d9   : > { %v723_v40 = vadd.f32 %v722_v35, %v7018_v12  ;;  %v5852_v43 = vpop.f32.mrb[2].mxu0  ;;  %2006 = vperm.xlu1 %6224, %v1592_v30   ;;  %v7096_v35 = vpop.permute.xlu1 %1195 }
 0x1da   : > { %2001 = vperm.xlu0 %6223, %v1591_v33   ;;  %v734_v44 = vadd.f32 %v5852_v43, %v7020_v17  ;;  %v725_v45 = vpop.f32.mrb[3].mxu0  ;;  %v755_v53 = vmax.f32 %v731_v39, 0.0  ;;  %v1599_v33 = vld [vmem:[#allocation14 + $0x270] sm:$0xff]  ;;  %v1602_v39 = vld [vmem:[#allocation14 + $0x288] sm:$0xff]  ;;  %v6231_v43 = vld [vmem:[%s9848_s7 + $0x8] sm:$0xff]  }
 0x1db   : > { %v726_v50 = vadd.f32 %v725_v45, %v7022_v18  ;;  %v753_v56 = vmax.f32 %v723_v40, 0.0  ;;  %v1601_v40 = vld [vmem:[#allocation14 + $0x280] sm:$0xff] }
 0x1dc   : > { %v756_v54 = vmax.f32 %v734_v44, 0.0  ;;  %v7094_v20 = vpop.permute.xlu0 %1180  ;;  %v1604_v44 = vld [vmem:[#allocation14 + $0x298] sm:$0xff]  ;;  %v6232_v45 = vld [vmem:[%s9848_s7 + $0x10] sm:$0xff]  }
 0x1dd   : > { %v754_v59 = vmax.f32 %v726_v50, 0.0  ;;  %2016 = vperm.xlu1 %6224, %v1594_v46   ;;  %v7106_v46 = vpop.permute.xlu1 %1205 }
 0x1de   : > { %2011 = vperm.xlu0 %6223, %v1593_v49   ;;  %v762_v12 = vpack.c.bf16 %v756_v54, %v755_v53  ;;  %v1603_v49 = vld [vmem:[#allocation14 + $0x290] sm:$0xff]  ;;  %v1606_v53 = vld [vmem:[#allocation14 + $0x2a8] sm:$0xff]  ;;  %v1605_v54 = vld [vmem:[#allocation14 + $0x2a0] sm:$0xff] }
 0x1df   : > { %v5855_v60 = vpop.f32.mrb[4].mxu0  ;;  %v761_v17 = vpack.c.bf16 %v754_v59, %v753_v56  ;;  %v6233_v59 = vld [vmem:[%s9848_s7 + $0x18] sm:$0xff]  }
 0x1e0   : > { %v738_v0 = vpop.f32.mrb[5].mxu0  ;;  %v747_v2 = vadd.f32 %v5855_v60, %v7030_v28  ;;  %v1608_v60 = vld [vmem:[#allocation14 + $0x2b8] sm:$0xff] }
 0x1e1   : > { %v739_v18 = vadd.f32 %v738_v0, %v7026_v22  ;;  %v5856_v5 = vpop.f32.mrb[6].mxu0  ;;  %5857 = vmatprep.subr.bf16.mxu1 %v761_v17  ;;  %2026 = vperm.xlu1 %6224, %v1596_v63   ;;  %v7112_v56 = vpop.permute.xlu1 %1656  ;;  %v1607_v63 = vld [vmem:[#allocation14 + $0x2b0] sm:$0xff]  ;;  %v1610_v0 = vld [vmem:[#allocation14 + $0x2c8] sm:$0xff] }
 0x1e2   : > { %v750_v6 = vadd.f32 %v5856_v5, %v7028_v27  ;;  %2021 = vperm.xlu0 %6223, %v1595_v1   ;;  %v741_v9 = vpop.f32.mrb[7].mxu0  ;;  %5858 = vmatpush3.bf16.msra.mxu1 %v761_v17  ;;  %v759_v28 = vmax.f32 %v747_v2, 0.0  ;;  %v1600_v27 = vld [vmem:[#allocation14 + $0x278] sm:$0xff]  ;;  %v1609_v1 = vld [vmem:[#allocation14 + $0x2c0] sm:$0xff]  ;;  %v1611_v5 = vld [vmem:[#allocation14 + $0x2d0] sm:$0xff] }
 0x1e3   : > { %v742_v14 = vadd.f32 %v741_v9, %v7024_v21  ;;  %5859 = vmatprep.subr.bf16.mxu1 %v762_v12  ;;  %v757_v22 = vmax.f32 %v739_v18, 0.0  ;;  %v7098_v21 = vpop.permute.xlu0 %1190  ;;  %v1612_v18 = vld [vmem:[#allocation14 + $0x2d8] sm:$0xff] }
 0x1e4   : > { %v760_v25 = vmax.f32 %v750_v6, 0.0 }
 0x1e5   : > { %v758_v26 = vmax.f32 %v742_v14, 0.0  ;;  %2036 = vperm.xlu1 %6224, %v1598_v10   ;;  %v7120_v17 = vpop.permute.xlu1 %1666  ;;  %v1614_v10 = vld [vmem:[#allocation14 + $0x2e8] sm:$0xff]  ;;  %v1613_v14 = vld [vmem:[#allocation14 + $0x2e0] sm:$0xff] }
 0x1e6   : > { %v764_v29 = vpack.c.bf16 %v760_v25, %v759_v28  ;;  %2031 = vperm.xlu0 %6223, %v1597_v19   ;;  %5860 = vmatpush3.bf16.msra.mxu1 %v762_v12  ;;  %v1616_v19 = vld [vmem:[#allocation14 + $0x2f8] sm:$0xff]  ;;  %v1615_v25 = vld [vmem:[#allocation14 + $0x2f0] sm:$0xff] }
 0x1e7   : > { %v763_v30 = vpack.c.bf16 %v758_v26, %v757_v22  ;;  %v7108_v50 = vpop.permute.xlu0 %1200  ;;  %v1618_v26 = vld [vmem:[#allocation14 + $0x308] sm:$0xff] }
 0x1e9   : > { %5861 = vmatprep.subr.bf16.mxu1 %v763_v30  ;;  %2046 = vperm.xlu1 %6224, %v1600_v27   ;;  %v7124_v6 = vpop.permute.xlu1 %1676 }
 0x1ea   : > { %2041 = vperm.xlu0 %6223, %v1599_v33   ;;  %5862 = vmatpush3.bf16.msra.mxu1 %v763_v30  ;;  %v1620_v33 = vld [vmem:[#allocation14 + $0x318] sm:$0xff] }
 0x1eb   : > { %5863 = vmatprep.subr.bf16.mxu1 %v764_v29  ;;  %v7117_v12 = vpop.permute.xlu0 %1651 }
 0x1ed   : > { %2056 = vperm.xlu1 %6224, %v1602_v39   ;;  %v7128_v28 = vpop.permute.xlu1 %1686  ;;  %v1619_v39 = vld [vmem:[#allocation14 + $0x310] sm:$0xff] }
 0x1ee   : > { %2051 = vperm.xlu0 %6223, %v1601_v40   ;;  %5864 = vmatpush3.bf16.msra.mxu1 %v764_v29  ;;  %v1617_v29 = vld [vmem:[#allocation14 + $0x300] sm:$0xff]  ;;  %v1622_v40 = vld [vmem:[#allocation14 + $0x328] sm:$0xff] }
 0x1ef   : > { %v7122_v2 = vpop.permute.xlu0 %1661 }
 0x1f1   : > { %5866 = vmatmul.mubr.msk.bf16.vlgmr.msra.gmra.mrb[0].mxu1 %vm841_vm1, %v6231_v43  ;;  %2066 = vperm.xlu1 %6224, %v1604_v44   ;;  %v7132_v27 = vpop.permute.xlu1 %1696  ;;  %v1621_v44 = vld [vmem:[#allocation14 + $0x320] sm:$0xff] }
 0x1f2   : > { %2061 = vperm.xlu0 %6223, %v1603_v49   ;;  %5869 = vmatprep.mubr.msk.bf16.mxu1 %vm841_vm1, %v6232_v45  ;;  %v1624_v49 = vld [vmem:[#allocation14 + $0x338] sm:$0xff] }
 0x1f3   : > { %v7126_v9 = vpop.permute.xlu0 %1671 }
 0x1f5   : > { %2076 = vperm.xlu1 %6224, %v1606_v53   ;;  %v7136_v43 = vpop.permute.xlu1 %1706  ;;  %v1623_v53 = vld [vmem:[#allocation14 + $0x330] sm:$0xff] }
 0x1f6   : > { %2071 = vperm.xlu0 %6223, %v1605_v54  }
 0x1f7   : > { %v7130_v22 = vpop.permute.xlu0 %1681 }
 0x1f9   : > { %5870 = vmatmul.mubr.msk.bf16.gmra.mrb[4].mxu1 %vm841_vm1, %v6233_v59  ;;  %2086 = vperm.xlu1 %6224, %v1608_v60   ;;  %v7140_v54 = vpop.permute.xlu1 %1716  ;;  %v1626_v60 = vld [vmem:[#allocation14 + $0x348] sm:$0xff] }
 0x1fa   : > { %2081 = vperm.xlu0 %6223, %v1607_v63   ;;  %9849 = vst [vmem:[#allocation29_spill] sm:$0xff] %v7140_v54  ;;  %v1625_v63 = vld [vmem:[#allocation14 + $0x340] sm:$0xff] }
 0x1fb   : > { %v7134_v30 = vpop.permute.xlu0 %1691 }
 0x1fd   : > { %2096 = vperm.xlu1 %6224, %v1610_v0   ;;  %v1628_v0 = vld [vmem:[#allocation14 + $0x358] sm:$0xff] }
 0x1fe   : > { %2091 = vperm.xlu0 %6223, %v1609_v1   ;;  %v7144_v1 = vpop.permute.xlu1 %1726 }
 0x1ff   : > { %v7138_v45 = vpop.permute.xlu0 %1701 }
 0x201   : > { %2106 = vperm.xlu1 %6224, %v1612_v18   ;;  %v1627_v18 = vld [vmem:[#allocation14 + $0x350] sm:$0xff] }
 0x202   : > { %2101 = vperm.xlu0 %6223, %v1611_v5  }
 0x203   : > { %v7142_v59 = vpop.permute.xlu0 %1711 }
 0x205   : > { %2116 = vperm.xlu1 %6224, %v1614_v10   ;;  %v1630_v10 = vld [vmem:[#allocation14 + $0x368] sm:$0xff] }
 0x206   : > { %2111 = vperm.xlu0 %6223, %v1613_v14   ;;  %v1629_v14 = vld [vmem:[#allocation14 + $0x360] sm:$0xff] }
 0x207   : > { %v7146_v5 = vpop.permute.xlu0 %1721 }
 0x209   : > { %2126 = vperm.xlu1 %6224, %v1616_v19   ;;  %v7148_v19 = vpop.permute.xlu1 %1736 }
 0x20a   : > { %2121 = vperm.xlu0 %6223, %v1615_v25   ;;  %9850 = vst [vmem:[#allocation30_spill] sm:$0xff] %v7148_v19 }
 0x20b   : > { %v7150_v25 = vpop.permute.xlu0 %1731 }
 0x20c   : > { %9851 = vst [vmem:[#allocation31_spill] sm:$0xff] %v7150_v25 }
 0x20d   : > { %2136 = vperm.xlu1 %6224, %v1618_v26   ;;  %v1632_v26 = vld [vmem:[#allocation14 + $0x378] sm:$0xff] }
 0x20e   : > { %2131 = vperm.xlu0 %6223, %v1617_v29   ;;  %v1631_v29 = vld [vmem:[#allocation14 + $0x370] sm:$0xff] }
 0x211   : > { %2146 = vperm.xlu1 %6224, %v1620_v33   ;;  %v1634_v33 = vld [vmem:[#allocation14 + $0x388] sm:$0xff] }
 0x212   : > { %2141 = vperm.xlu0 %6223, %v1619_v39   ;;  %v7152_v39 = vpop.permute.xlu1 %1746 }
 0x213   : > { %9852 = vst [vmem:[#allocation32_spill] sm:$0xff] %v7152_v39 }
 0x215   : > { %2156 = vperm.xlu1 %6224, %v1622_v40   ;;  %v1633_v40 = vld [vmem:[#allocation14 + $0x380] sm:$0xff] }
 0x216   : > { %2151 = vperm.xlu0 %6223, %v1621_v44   ;;  %v7154_v44 = vpop.permute.xlu0 %1741 }
 0x217   : > { %9853 = vst [vmem:[#allocation33_spill] sm:$0xff] %v7154_v44 }
 0x219   : > { %2166 = vperm.xlu1 %6224, %v1624_v49   ;;  %v1636_v49 = vld [vmem:[#allocation14 + $0x398] sm:$0xff] }
 0x21a   : > { %2161 = vperm.xlu0 %6223, %v1623_v53   ;;  %v1635_v53 = vld [vmem:[#allocation14 + $0x390] sm:$0xff] }
 0x21d   : > { %2176 = vperm.xlu1 %6224, %v1626_v60   ;;  %v7156_v60 = vpop.permute.xlu1 %1756 }
 0x21e   : > { %2171 = vperm.xlu0 %6223, %v1625_v63   ;;  %9854 = vst [vmem:[#allocation34_spill] sm:$0xff] %v7156_v60  ;;  %v7158_v63 = vpop.permute.xlu0 %1751  ;;  %v1643_v60 = vld [vmem:[#allocation14 + $0x3d0] sm:$0xff] }
 0x21f   : > { %9855 = vst [vmem:[#allocation35_spill] sm:$0xff] %v7158_v63 }
 0x221   : > { %2186 = vperm.xlu1 %6224, %v1628_v0   ;;  %v1638_v0 = vld [vmem:[#allocation14 + $0x3a8] sm:$0xff] }
 0x222   : > { %2181 = vperm.xlu0 %6223, %v1627_v18   ;;  %v1637_v18 = vld [vmem:[#allocation14 + $0x3a0] sm:$0xff] }
 0x225   : > { %2196 = vperm.xlu1 %6224, %v1630_v10   ;;  %v1640_v10 = vld [vmem:[#allocation14 + $0x3b8] sm:$0xff] }
 0x226   : > { %2191 = vperm.xlu0 %6223, %v1629_v14   ;;  %v7160_v14 = vpop.permute.xlu1 %1766 }
 0x227   : > { %9856 = vst [vmem:[#allocation36_spill] sm:$0xff] %v7160_v14  ;;  %v1645_v14 = vld [vmem:[#allocation14 + $0x3e0] sm:$0xff] }
 0x229   : > { %2206 = vperm.xlu1 %6224, %v1632_v26   ;;  %v1639_v26 = vld [vmem:[#allocation14 + $0x3b0] sm:$0xff] }
 0x22a   : > { %2201 = vperm.xlu0 %6223, %v1631_v29   ;;  %v7162_v29 = vpop.permute.xlu0 %1761  ;;  %v7164_v19 = vpop.permute.xlu1 %1776 }
 0x22b   : > { %9857 = vst [vmem:[#allocation37_spill] sm:$0xff] %v7162_v29  ;;  %9858 = vst [vmem:[#allocation38_spill] sm:$0xff] %v7164_v19 }
 0x22d   : > { %2216 = vperm.xlu1 %6224, %v1634_v33   ;;  %v1642_v33 = vld [vmem:[#allocation14 + $0x3c8] sm:$0xff] }
 0x22e   : > { %2211 = vperm.xlu0 %6223, %v1633_v40   ;;  %v1641_v40 = vld [vmem:[#allocation14 + $0x3c0] sm:$0xff] }
 0x231   : > { %2226 = vperm.xlu1 %6224, %v1636_v49   ;;  %v7166_v49 = vpop.permute.xlu0 %1771 }
 0x232   : > { %2221 = vperm.xlu0 %6223, %v1635_v53   ;;  %9859 = vst [vmem:[#allocation39_spill] sm:$0xff] %v7166_v49  ;;  %v1644_v53 = vld [vmem:[#allocation14 + $0x3d8] sm:$0xff] }
 0x235   : > { %2236 = vperm.xlu1 %6224, %v1638_v0   ;;  %v1646_v0 = vld [vmem:[#allocation14 + $0x3e8] sm:$0xff]  ;;  %v7170_v63 = vpop.permute.xlu0 %1781 }
 0x236   : > { %2231 = vperm.xlu0 %6223, %v1637_v18   ;;  %v7168_v18 = vpop.permute.xlu1 %1786  ;;  %9861 = vst [vmem:[#allocation41_spill] sm:$0xff] %v7170_v63 }
 0x237   : > { %9860 = vst [vmem:[#allocation40_spill] sm:$0xff] %v7168_v18 }
 0x239   : > { %2246 = vperm.xlu1 %6224, %v1640_v10   ;;  %v1648_v10 = vld [vmem:[#allocation14 + $0x3f8] sm:$0xff] }
 0x23a   : > { %2241 = vperm.xlu0 %6223, %v1639_v26   ;;  %v1647_v26 = vld [vmem:[#allocation14 + $0x3f0] sm:$0xff]  ;;  %v7172_v29 = vpop.permute.xlu1 %1796 }
 0x23b   : > { %9862 = vst [vmem:[#allocation42_spill] sm:$0xff] %v7172_v29 }
 0x23d   : > { %2256 = vperm.xlu1 %6224, %v1642_v33   ;;  %v7174_v33 = vpop.permute.xlu0 %1791 }
 0x23e   : > { %2251 = vperm.xlu0 %6223, %v1641_v40   ;;  %9863 = vst [vmem:[#allocation43_spill] sm:$0xff] %v7174_v33  ;;  %v6234_v40 = vld [vmem:[#allocation8] sm:$0xff]  }
 0x23f   : > { %5881 = vmatprep.mubr.msk.bf16.mxu0 %vm841_vm1, %v6234_v40 }
 0x241   : > { %2266 = vperm.xlu1 %6224, %v1644_v53  }
 0x242   : > { %2261 = vperm.xlu0 %6223, %v1643_v60  }
 0x245   : > { %2276 = vperm.xlu1 %6224, %v1646_v0  }
 0x246   : > { %2271 = vperm.xlu0 %6223, %v1645_v14  }
 0x249   : > { %2286 = vperm.xlu1 %6224, %v1648_v10  }
 0x24a   : > { %2281 = vperm.xlu0 %6223, %v1647_v26  }
 0x2c4   : > { %v5867_v60 = vpop.f32.mrb[0].mxu1 }
 0x2c5   : > { %v897_v53 = vadd.f32 %v5867_v60, %v7038_v38  ;;  %v888_v19 = vpop.f32.mrb[1].mxu1 }
 0x2c6   : > { %v889_v18 = vadd.f32 %v888_v19, %v7034_v32  ;;  %v5868_v49 = vpop.f32.mrb[2].mxu1 }
 0x2c7   : > { %v900_v14 = vadd.f32 %v5868_v49, %v7036_v37  ;;  %v891_v0 = vpop.f32.mrb[3].mxu1  ;;  %v921_v29 = vmax.f32 %v897_v53, 0.0 }
 0x2c8   : > { %v892_v63 = vadd.f32 %v891_v0, %v7032_v31  ;;  %v919_v39 = vmax.f32 %v889_v18, 0.0 }
 0x2c9   : > { %v922_v10 = vmax.f32 %v900_v14, 0.0 }
 0x2ca   : > { %v920_v33 = vmax.f32 %v892_v63, 0.0 }
 0x2cb   : > { %v928_v26 = vpack.c.bf16 %v922_v10, %v921_v29 }
 0x2cc   : > { %v927_v25 = vpack.c.bf16 %v920_v33, %v919_v39  ;;  %v5871_v44 = vpop.f32.mrb[4].mxu1 }
 0x2cd   : > { %v913_v40 = vadd.f32 %v5871_v44, %v7046_v48  ;;  %v904_v54 = vpop.f32.mrb[5].mxu1  ;;  %v6236_v48 = vld [vmem:[#allocation8 + $0x10] sm:$0xff]  }
 0x2ce   : > { %v905_v38 = vadd.f32 %v904_v54, %v7042_v42  ;;  %v5872_v60 = vpop.f32.mrb[6].mxu1  ;;  %5873 = vmatprep.subr.bf16.mxu0 %v927_v25  ;;  %v6235_v42 = vld [vmem:[#allocation8 + $0x8] sm:$0xff]  }
 0x2cf   : > { %v916_v32 = vadd.f32 %v5872_v60, %v7044_v47  ;;  %v907_v37 = vpop.f32.mrb[7].mxu1  ;;  %5874 = vmatpush3.bf16.msra.mxu0 %v927_v25  ;;  %v925_v19 = vmax.f32 %v913_v40, 0.0  ;;  %v6237_v47 = vld [vmem:[#allocation8 + $0x18] sm:$0xff]  }
 0x2d0   : > { %v908_v31 = vadd.f32 %v907_v37, %v7040_v41  ;;  %5875 = vmatprep.subr.bf16.mxu0 %v928_v26  ;;  %v923_v63 = vmax.f32 %v905_v38, 0.0  ;;  %v6238_v41 = vld [vmem:[%s9864_s24] sm:$0xff]   ;;  %s7393_s24 = scalar_lea.vmem [#allocation15], %s4987_s30 }
 0x2d1   : > { %v926_v49 = vmax.f32 %v916_v32, 0.0  ;;  %5897 = vmatprep.mubr.msk.bf16.mxu1 %vm841_vm1, %v6238_v41  ;;  %v6243_v41 = vld [vmem:[%s9865_s13 + $0x28] sm:$0xff]  }
 0x2d2   : > { %v924_v29 = vmax.f32 %v908_v31, 0.0 }
 0x2d3   : > { %v930_v39 = vpack.c.bf16 %v926_v49, %v925_v19  ;;  %5876 = vmatpush3.bf16.msra.mxu0 %v928_v26 }
 0x2d4   : > { %v929_v18 = vpack.c.bf16 %v924_v29, %v923_v63 }
 0x2d6   : > { %5877 = vmatprep.subr.bf16.mxu0 %v929_v18 }
 0x2d7   : > { %5878 = vmatpush3.bf16.msra.mxu0 %v929_v18 }
 0x2d8   : > { %5879 = vmatprep.subr.bf16.mxu0 %v930_v39 }
 0x2db   : > { %5880 = vmatpush3.bf16.msra.mxu0 %v930_v39 }
 0x2de   : > { %5882 = vmatmul.mubr.msk.bf16.vlgmr.msra.gmra.mrb[8].mxu0 %vm841_vm1, %v6235_v42 }
 0x2df   : > { %5885 = vmatprep.mubr.msk.bf16.mxu0 %vm841_vm1, %v6236_v48 }
 0x2e6   : > { %5886 = vmatmul.mubr.msk.bf16.gmra.mrb[12].mxu0 %vm841_vm1, %v6237_v47 }
 0x3b1   : > { %v5883_v54 = vpop.f32.mrb[8].mxu0 }
 0x3b2   : > { %v1062_v25 = vadd.f32 %v5883_v54, %v7054_v58  ;;  %v1053_v44 = vpop.f32.mrb[9].mxu0  ;;  %v6244_v54 = vld [vmem:[%s9865_s13 + $0x30] sm:$0xff]  }
 0x3b3   : > { %v1054_v33 = vadd.f32 %v1053_v44, %v7050_v52  ;;  %v5884_v53 = vpop.f32.mrb[10].mxu0  ;;  %v6246_v44 = vld [vmem:[#allocation12] sm:$0xff]  }
 0x3b4   : > { %v1065_v14 = vadd.f32 %v5884_v53, %v7052_v57  ;;  %v1056_v0 = vpop.f32.mrb[11].mxu0  ;;  %v1086_v26 = vmax.f32 %v1062_v25, 0.0  ;;  %v6245_v25 = vld [vmem:[%s9865_s13 + $0x38] sm:$0xff]   ;;  %5929 = vmatprep.mubr.bf16.mxu0 %v6246_v44 }
 0x3b5   : > { %v1057_v10 = vadd.f32 %v1056_v0, %v7048_v51  ;;  %v1084_v38 = vmax.f32 %v1054_v33, 0.0  ;;  %v6247_v33 = vld [vmem:[#allocation12 + $0x110] sm:$0xff]  }
 0x3b6   : > { %v1087_v40 = vmax.f32 %v1065_v14, 0.0 }
 0x3b7   : > { %v1085_v60 = vmax.f32 %v1057_v10, 0.0 }
 0x3b8   : > { %v1093_v32 = vpack.c.bf16 %v1087_v40, %v1086_v26 }
 0x3b9   : > { %v1092_v37 = vpack.c.bf16 %v1085_v60, %v1084_v38  ;;  %v5887_v31 = vpop.f32.mrb[12].mxu0 }
 0x3ba   : > { %v1078_v19 = vadd.f32 %v5887_v31, %v7062_v4  ;;  %v1069_v49 = vpop.f32.mrb[13].mxu0  ;;  %v6242_v4 = vld [vmem:[%s9865_s13 + $0x20] sm:$0xff]  }
 0x3bb   : > { %v1070_v58 = vadd.f32 %v1069_v49, %v7058_v62  ;;  %v5888_v63 = vpop.f32.mrb[14].mxu0  ;;  %5889 = vmatprep.subr.bf16.mxu1 %v1092_v37  ;;  %v6239_v62 = vld [vmem:[%s9865_s13 + $0x8] sm:$0xff]  }
 0x3bc   : > { %v1081_v52 = vadd.f32 %v5888_v63, %v7060_v3  ;;  %v1072_v57 = vpop.f32.mrb[15].mxu0  ;;  %5890 = vmatpush3.bf16.msra.mxu1 %v1092_v37  ;;  %v1090_v29 = vmax.f32 %v1078_v19, 0.0  ;;  %v6241_v3 = vld [vmem:[%s9865_s13 + $0x18] sm:$0xff]  }
 0x3bd   : > { %v1073_v51 = vadd.f32 %v1072_v57, %v7056_v61  ;;  %5891 = vmatprep.subr.bf16.mxu1 %v1093_v32  ;;  %v1088_v18 = vmax.f32 %v1070_v58, 0.0  ;;  %v6240_v61 = vld [vmem:[%s9865_s13 + $0x10] sm:$0xff]  }
 0x3be   : > { %v1091_v39 = vmax.f32 %v1081_v52, 0.0 }
 0x3bf   : > { %v1089_v42 = vmax.f32 %v1073_v51, 0.0 }
 0x3c0   : > { %v1095_v48 = vpack.c.bf16 %v1091_v39, %v1090_v29  ;;  %5892 = vmatpush3.bf16.msra.mxu1 %v1093_v32 }
 0x3c1   : > { %v1094_v47 = vpack.c.bf16 %v1089_v42, %v1088_v18 }
 0x3c3   : > { %5893 = vmatprep.subr.bf16.mxu1 %v1094_v47 }
 0x3c4   : > { %5894 = vmatpush3.bf16.msra.mxu1 %v1094_v47 }
 0x3c5   : > { %5895 = vmatprep.subr.bf16.mxu1 %v1095_v48 }
 0x3c8   : > { %5896 = vmatpush3.bf16.msra.mxu1 %v1095_v48 }
 0x3cb   : > { %5898 = vmatmul.mubr.msk.bf16.vlgmr.msra.gmra.mrb[8].mxu1 %vm841_vm1, %v6239_v62 }
 0x3cc   : > { %5901 = vmatprep.mubr.msk.bf16.mxu1 %vm841_vm1, %v6240_v61 }
 0x3d3   : > { %5902 = vmatmul.mubr.msk.bf16.gmra.mrb[12].mxu1 %vm841_vm1, %v6241_v3 }
 0x3d4   : > { %5905 = vmatprep.mubr.msk.bf16.mxu1 %vm841_vm1, %v6242_v4 }
 0x3db   : > { %5906 = vmatmul.mubr.msk.bf16.gmra.mrb[16].mxu1 %vm841_vm1, %v6243_v41 }
 0x3dc   : > { %5909 = vmatprep.mubr.msk.bf16.mxu1 %vm841_vm1, %v6244_v54 }
 0x3e3   : > { %5910 = vmatmul.mubr.msk.bf16.gmra.mrb[20].mxu1 %vm841_vm1, %v6245_v25 }
 0x3e4   : > { %5997 = vmatprep.mubr.bf16.mxu1 %v6247_v33 }
 0x49e   : > { %v5899_v53 = vpop.f32.mrb[8].mxu1 }
 0x49f   : > { %v1315_v14 = vadd.f32 %v5899_v53, %v7070_v16  ;;  %v1306_v0 = vpop.f32.mrb[9].mxu1 }
 0x4a0   : > { %v1307_v10 = vadd.f32 %v1306_v0, %v7066_v8  ;;  %v5900_v26 = vpop.f32.mrb[10].mxu1 }
 0x4a1   : > { %v1318_v40 = vadd.f32 %v5900_v26, %v7068_v15  ;;  %v1309_v38 = vpop.f32.mrb[11].mxu1  ;;  %v1371_v32 = vmax.f32 %v1315_v14, 0.0 }
 0x4a2   : > { %v1310_v60 = vadd.f32 %v1309_v38, %v7064_v7  ;;  %v1369_v31 = vmax.f32 %v1307_v10, 0.0 }
 0x4a3   : > { %v1372_v37 = vmax.f32 %v1318_v40, 0.0 }
 0x4a4   : > { %v1370_v19 = vmax.f32 %v1310_v60, 0.0 }
 0x4a5   : > { %v1386_v49 = vpack.c.bf16 %v1372_v37, %v1371_v32  ;;  %v6249_v37 = vld [vmem:[#allocation12 + $0x118] sm:$0xff]  }
 0x4a6   : > { %v1385_v58 = vpack.c.bf16 %v1370_v19, %v1369_v31  ;;  %v5903_v63 = vpop.f32.mrb[12].mxu1  ;;  %v6251_v31 = vld [vmem:[#allocation12 + $0x120] sm:$0xff]   ;;  %v6252_v19 = vld [vmem:[#allocation12 + $0x18] sm:$0xff]  }
 0x4a7   : > { %v1331_v52 = vadd.f32 %v5903_v63, %v7078_v36  ;;  %v1322_v57 = vpop.f32.mrb[13].mxu1  ;;  %v6255_v63 = vld [vmem:[#allocation12 + $0x130] sm:$0xff]  }
 0x4a8   : > { %v1323_v16 = vadd.f32 %v1322_v57, %v7074_v24  ;;  %v5904_v51 = vpop.f32.mrb[14].mxu1  ;;  %5913 = vmatprep.subr.bf16.mxu0 %v1385_v58  ;;  %6057 = vmatprep.subr.bf16.mxu1 %v1385_v58  ;;  %v7246_v57 = vpop.permute.xlu0 %1801 }
 0x4a9   : > { %v1334_v8 = vadd.f32 %v5904_v51, %v7076_v34  ;;  %v1325_v15 = vpop.f32.mrb[15].mxu1  ;;  %5914 = vmatpush3.bf16.msra.mxu0 %v1385_v58  ;;  %6065 = vmatpush3.bf16.msra.mxu1 %v1385_v58  ;;  %v1375_v29 = vmax.f32 %v1331_v52, 0.0  ;;  %v6254_v58 = vld [vmem:[#allocation12 + $0x20] sm:$0xff]   ;;  %v7244_v52 = vpop.permute.xlu1 %1806 }
 0x4aa   : > { %v1326_v7 = vadd.f32 %v1325_v15, %v7072_v23  ;;  %5915 = vmatprep.subr.bf16.mxu0 %v1386_v49  ;;  %6058 = vmatprep.subr.bf16.mxu1 %v1386_v49  ;;  %v1373_v18 = vmax.f32 %v1323_v16, 0.0  ;;  %v6257_v15 = vld [vmem:[#allocation12 + $0x138] sm:$0xff]  }
 0x4ab   : > { %v1376_v39 = vmax.f32 %v1334_v8, 0.0  ;;  %v6256_v8 = vld [vmem:[#allocation12 + $0x28] sm:$0xff]  }
 0x4ac   : > { %v1374_v42 = vmax.f32 %v1326_v7, 0.0  ;;  %v7250_v51 = vpop.permute.xlu0 %1811  ;;  %v6258_v7 = vld [vmem:[#allocation12 + $0x30] sm:$0xff]  }
 0x4ad   : > { %v1388_v36 = vpack.c.bf16 %v1376_v39, %v1375_v29  ;;  %5916 = vmatpush3.bf16.msra.mxu0 %v1386_v49  ;;  %6066 = vmatpush3.bf16.msra.mxu1 %v1386_v49  ;;  %v6253_v49 = vld [vmem:[#allocation12 + $0x128] sm:$0xff]   ;;  %v7248_v16 = vpop.permute.xlu1 %1816  ;;  %9867 = vst [vmem:[#allocation45_spill] sm:$0xff] %v7250_v51  ;;  %v6259_v29 = vld [vmem:[#allocation12 + $0x140] sm:$0xff]  }
 0x4ae   : > { %v1387_v24 = vpack.c.bf16 %v1374_v42, %v1373_v18  ;;  %v5907_v48 = vpop.f32.mrb[16].mxu1  ;;  %9866 = vst [vmem:[#allocation44_spill] sm:$0xff] %v7248_v16  ;;  %v6260_v42 = vld [vmem:[#allocation12 + $0x38] sm:$0xff]  }
 0x4af   : > { %v1347_v47 = vadd.f32 %v5907_v48, %v7094_v20  ;;  %v1338_v62 = vpop.f32.mrb[17].mxu1  ;;  %v6263_v48 = vld [vmem:[#allocation12 + $0x150] sm:$0xff]  }
 0x4b0   : > { %v1339_v34 = vadd.f32 %v1338_v62, %v7086_v11  ;;  %v5908_v61 = vpop.f32.mrb[18].mxu1  ;;  %5917 = vmatprep.subr.bf16.mxu0 %v1387_v24  ;;  %6059 = vmatprep.subr.bf16.mxu1 %v1387_v24  ;;  %v7254_v18 = vpop.permute.xlu0 %1821 }
 0x4b1   : > { %v1350_v23 = vadd.f32 %v5908_v61, %v7091_v13  ;;  %v1341_v3 = vpop.f32.mrb[19].mxu1  ;;  %5918 = vmatpush3.bf16.msra.mxu0 %v1387_v24  ;;  %6067 = vmatpush3.bf16.msra.mxu1 %v1387_v24  ;;  %v1379_v41 = vmax.f32 %v1347_v47, 0.0  ;;  %v7252_v39 = vpop.permute.xlu1 %1826  ;;  %9869 = vst [vmem:[#allocation47_spill] sm:$0xff] %v7254_v18  ;;  %v6262_v24 = vld [vmem:[#allocation12 + $0x40] sm:$0xff]   ;;  %v6265_v61 = vld [vmem:[#allocation12 + $0x158] sm:$0xff]  }
 0x4b2   : > { %v1342_v4 = vadd.f32 %v1341_v3, %v7084_v55  ;;  %5919 = vmatprep.subr.bf16.mxu0 %v1388_v36  ;;  %6060 = vmatprep.subr.bf16.mxu1 %v1388_v36  ;;  %v1377_v25 = vmax.f32 %v1339_v34, 0.0  ;;  %9868 = vst [vmem:[#allocation46_spill] sm:$0xff] %v7252_v39  ;;  %v6264_v34 = vld [vmem:[#allocation12 + $0x48] sm:$0xff]   ;;  %v6267_v3 = vld [vmem:[#allocation12 + $0x160] sm:$0xff]  }
 0x4b3   : > { %v1380_v54 = vmax.f32 %v1350_v23, 0.0  ;;  %v6266_v23 = vld [vmem:[#allocation12 + $0x50] sm:$0xff]  }
 0x4b4   : > { %v1378_v44 = vmax.f32 %v1342_v4, 0.0  ;;  %v7258_v62 = vpop.permute.xlu0 %1831 }
 0x4b5   : > { %v1390_v20 = vpack.c.bf16 %v1380_v54, %v1379_v41  ;;  %5920 = vmatpush3.bf16.msra.mxu0 %v1388_v36  ;;  %6068 = vmatpush3.bf16.msra.mxu1 %v1388_v36  ;;  %v6261_v36 = vld [vmem:[#allocation12 + $0x148] sm:$0xff]   ;;  %v7256_v47 = vpop.permute.xlu1 %1836  ;;  %9871 = vst [vmem:[#allocation49_spill] sm:$0xff] %v7258_v62 }
 0x4b6   : > { %v1389_v11 = vpack.c.bf16 %v1378_v44, %v1377_v25  ;;  %v5911_v33 = vpop.f32.mrb[20].mxu1  ;;  %9870 = vst [vmem:[#allocation48_spill] sm:$0xff] %v7256_v47  ;;  %v6268_v44 = vld [vmem:[#allocation12 + $0x58] sm:$0xff]  }
 0x4b7   : > { %v1363_v53 = vadd.f32 %v5911_v33, %v7108_v50  ;;  %v1354_v14 = vpop.f32.mrb[21].mxu1  ;;  %v6271_v33 = vld [vmem:[#allocation12 + $0x170] sm:$0xff]  }
 0x4b8   : > { %v1355_v13 = vadd.f32 %v1354_v14, %v7098_v21  ;;  %v5912_v0 = vpop.f32.mrb[22].mxu1  ;;  %5921 = vmatprep.subr.bf16.mxu0 %v1389_v11  ;;  %6061 = vmatprep.subr.bf16.mxu1 %v1389_v11  ;;  %v7262_v41 = vpop.permute.xlu0 %1841 }
 0x4b9   : > { %v1366_v55 = vadd.f32 %v5912_v0, %v7106_v46  ;;  %v1357_v10 = vpop.f32.mrb[23].mxu1  ;;  %5922 = vmatpush3.bf16.msra.mxu0 %v1389_v11  ;;  %6069 = vmatpush3.bf16.msra.mxu1 %v1389_v11  ;;  %v1383_v40 = vmax.f32 %v1363_v53, 0.0  ;;  %v6248_v46 = vld [vmem:[#allocation12 + $0x8] sm:$0xff]   ;;  %v7260_v4 = vpop.permute.xlu1 %1846  ;;  %9873 = vst [vmem:[#allocation51_spill] sm:$0xff] %v7262_v41  ;;  %v6270_v11 = vld [vmem:[#allocation12 + $0x60] sm:$0xff]   ;;  %v6273_v0 = vld [vmem:[#allocation12 + $0x178] sm:$0xff]  }
 0x4ba   : > { %v1358_v26 = vadd.f32 %v1357_v10, %v7096_v35  ;;  %5923 = vmatprep.subr.bf16.mxu0 %v1390_v20  ;;  %6062 = vmatprep.subr.bf16.mxu1 %v1390_v20  ;;  %v1381_v60 = vmax.f32 %v1355_v13, 0.0  ;;  %v6250_v35 = vld [vmem:[#allocation12 + $0x10] sm:$0xff]   ;;  %9872 = vst [vmem:[#allocation50_spill] sm:$0xff] %v7260_v4  ;;  %v6272_v13 = vld [vmem:[#allocation12 + $0x68] sm:$0xff]   ;;  %v6275_v10 = vld [vmem:[#allocation12 + $0x180] sm:$0xff]  }
 0x4bb   : > { %v1384_v38 = vmax.f32 %v1366_v55, 0.0  ;;  %v6274_v55 = vld [vmem:[#allocation12 + $0x70] sm:$0xff]  }
 0x4bc   : > { %v1382_v32 = vmax.f32 %v1358_v26, 0.0  ;;  %v7266_v25 = vpop.permute.xlu0 %1851 }
 0x4bd   : > { %v1392_v50 = vpack.c.bf16 %v1384_v38, %v1383_v40  ;;  %5924 = vmatpush3.bf16.msra.mxu0 %v1390_v20  ;;  %6070 = vmatpush3.bf16.msra.mxu1 %v1390_v20  ;;  %v7264_v54 = vpop.permute.xlu1 %1856  ;;  %9875 = vst [vmem:[#allocation53_spill] sm:$0xff] %v7266_v25  ;;  %v6269_v20 = vld [vmem:[#allocation12 + $0x168] sm:$0xff]   ;;  %v6276_v38 = vld [vmem:[#allocation12 + $0x78] sm:$0xff]  }
 0x4be   : > { %v1391_v21 = vpack.c.bf16 %v1382_v32, %v1381_v60  ;;  %9874 = vst [vmem:[#allocation52_spill] sm:$0xff] %v7264_v54  ;;  %v6277_v60 = vld [vmem:[#allocation12 + $0x188] sm:$0xff]   ;;  %v6278_v32 = vld [vmem:[#allocation12 + $0x80] sm:$0xff]  }
 0x4c0   : > { %5925 = vmatprep.subr.bf16.mxu0 %v1391_v21  ;;  %6063 = vmatprep.subr.bf16.mxu1 %v1391_v21  ;;  %v7270_v14 = vpop.permute.xlu0 %1861 }
 0x4c1   : > { %5926 = vmatpush3.bf16.msra.mxu0 %v1391_v21  ;;  %6071 = vmatpush3.bf16.msra.mxu1 %v1391_v21  ;;  %v7268_v53 = vpop.permute.xlu1 %1866  ;;  %9877 = vst [vmem:[#allocation55_spill] sm:$0xff] %v7270_v14 }
 0x4c2   : > { %5927 = vmatprep.subr.bf16.mxu0 %v1392_v50  ;;  %6064 = vmatprep.subr.bf16.mxu1 %v1392_v50  ;;  %9876 = vst [vmem:[#allocation54_spill] sm:$0xff] %v7268_v53 }
 0x4c4   : > { %v7274_v40 = vpop.permute.xlu0 %1871 }
 0x4c5   : > { %5928 = vmatpush3.bf16.msra.mxu0 %v1392_v50  ;;  %6072 = vmatpush3.bf16.msra.mxu1 %v1392_v50  ;;  %v7272_v26 = vpop.permute.xlu1 %1876  ;;  %9879 = vst [vmem:[#allocation57_spill] sm:$0xff] %v7274_v40  ;;  %v6279_v50 = vld [vmem:[#allocation12 + $0x190] sm:$0xff]  }
 0x4c6   : > { %9878 = vst [vmem:[#allocation56_spill] sm:$0xff] %v7272_v26 }
 0x4c8   : > { %5930 = vmatmul.mubr.bf16.vlgmr.msra.gmra.mrb[16].mxu0 %v6248_v46  ;;  %5998 = vmatmul.mubr.bf16.vlgmr.msra.gmra.mrb[24].mxu1 %v6249_v37  ;;  %v7278_v46 = vpop.permute.xlu0 %1881 }
 0x4c9   : > { %5933 = vmatprep.mubr.bf16.mxu0 %v6250_v35  ;;  %6001 = vmatprep.mubr.bf16.mxu1 %v6251_v31  ;;  %v7276_v21 = vpop.permute.xlu1 %1886  ;;  %9881 = vst [vmem:[#allocation59_spill] sm:$0xff] %v7278_v46  ;;  %v6280_v31 = vld [vmem:[#allocation12 + $0x88] sm:$0xff]  }
 0x4ca   : > { %9880 = vst [vmem:[#allocation58_spill] sm:$0xff] %v7276_v21 }
 0x4cc   : > { %v7282_v35 = vpop.permute.xlu0 %1891 }
 0x4cd   : > { %v7280_v37 = vpop.permute.xlu1 %1896  ;;  %9883 = vst [vmem:[#allocation61_spill] sm:$0xff] %v7282_v35 }
 0x4ce   : > { %9882 = vst [vmem:[#allocation60_spill] sm:$0xff] %v7280_v37 }
 0x4d0   : > { %5934 = vmatmul.mubr.bf16.gmra.mrb[20].mxu0 %v6252_v19  ;;  %6002 = vmatmul.mubr.bf16.gmra.mrb[28].mxu1 %v6253_v49  ;;  %v6281_v19 = vld [vmem:[#allocation12 + $0x198] sm:$0xff]   ;;  %v6282_v49 = vld [vmem:[#allocation12 + $0x90] sm:$0xff]  }
 0x4d1   : > { %5937 = vmatprep.mubr.bf16.mxu0 %v6254_v58  ;;  %6005 = vmatprep.mubr.bf16.mxu1 %v6255_v63  ;;  %v6283_v58 = vld [vmem:[#allocation12 + $0x1a0] sm:$0xff]   ;;  %v7284_v63 = vpop.permute.xlu1 %1906 }
 0x4d2   : > { %9884 = vst [vmem:[#allocation62_spill] sm:$0xff] %v7284_v63 }
 0x4d8   : > { %5938 = vmatmul.mubr.bf16.gmra.mrb[24].mxu0 %v6256_v8  ;;  %6006 = vmatmul.mubr.bf16.gmra.mrb[32].mxu1 %v6257_v15  ;;  %v7286_v8 = vpop.permute.xlu0 %1901  ;;  %v6284_v15 = vld [vmem:[#allocation12 + $0x98] sm:$0xff]  }
 0x4d9   : > { %5941 = vmatprep.mubr.bf16.mxu0 %v6258_v7  ;;  %6009 = vmatprep.mubr.bf16.mxu1 %v6259_v29  ;;  %9885 = vst [vmem:[#allocation63_spill] sm:$0xff] %v7286_v8  ;;  %v6285_v7 = vld [vmem:[#allocation12 + $0x1a8] sm:$0xff]   ;;  %v6286_v29 = vld [vmem:[#allocation12 + $0xa0] sm:$0xff]  }
 0x4e0   : > { %5942 = vmatmul.mubr.bf16.gmra.mrb[28].mxu0 %v6260_v42  ;;  %6010 = vmatmul.mubr.bf16.gmra.mrb[36].mxu1 %v6261_v36  ;;  %v6287_v42 = vld [vmem:[#allocation12 + $0x1b0] sm:$0xff]   ;;  %v7288_v36 = vpop.permute.xlu1 %1916 }
 0x4e1   : > { %5945 = vmatprep.mubr.bf16.mxu0 %v6262_v24  ;;  %6013 = vmatprep.mubr.bf16.mxu1 %v6263_v48  ;;  %9886 = vst [vmem:[#allocation64_spill] sm:$0xff] %v7288_v36  ;;  %v7290_v24 = vpop.permute.xlu0 %1911  ;;  %v6288_v48 = vld [vmem:[#allocation12 + $0xa8] sm:$0xff]  }
 0x4e2   : > { %9887 = vst [vmem:[#allocation65_spill] sm:$0xff] %v7290_v24 }
 0x4e8   : > { %5946 = vmatmul.mubr.bf16.gmra.mrb[32].mxu0 %v6264_v34  ;;  %6014 = vmatmul.mubr.bf16.gmra.mrb[40].mxu1 %v6265_v61  ;;  %v6289_v34 = vld [vmem:[#allocation12 + $0x1b8] sm:$0xff]   ;;  %v6290_v61 = vld [vmem:[#allocation12 + $0xb0] sm:$0xff]  }
 0x4e9   : > { %5949 = vmatprep.mubr.bf16.mxu0 %v6266_v23  ;;  %6017 = vmatprep.mubr.bf16.mxu1 %v6267_v3  ;;  %v6291_v23 = vld [vmem:[#allocation12 + $0x1c0] sm:$0xff]   ;;  %v7292_v3 = vpop.permute.xlu1 %1926 }
 0x4ea   : > { %9888 = vst [vmem:[#allocation66_spill] sm:$0xff] %v7292_v3 }
 0x4f0   : > { %5950 = vmatmul.mubr.bf16.gmra.mrb[36].mxu0 %v6268_v44  ;;  %6018 = vmatmul.mubr.bf16.gmra.mrb[44].mxu1 %v6269_v20  ;;  %v7294_v44 = vpop.permute.xlu0 %1921  ;;  %v7296_v20 = vpop.permute.xlu1 %1936 }
 0x4f1   : > { %5953 = vmatprep.mubr.bf16.mxu0 %v6270_v11  ;;  %6021 = vmatprep.mubr.bf16.mxu1 %v6271_v33  ;;  %9889 = vst [vmem:[#allocation67_spill] sm:$0xff] %v7294_v44  ;;  %9890 = vst [vmem:[#allocation68_spill] sm:$0xff] %v7296_v20  ;;  %v6292_v33 = vld [vmem:[#allocation12 + $0xb8] sm:$0xff]  }
 0x4f4   : > { %v7298_v11 = vpop.permute.xlu0 %1931 }
 0x4f5   : > { %9891 = vst [vmem:[#allocation69_spill] sm:$0xff] %v7298_v11 }
 0x4f8   : > { %5954 = vmatmul.mubr.bf16.gmra.mrb[40].mxu0 %v6272_v13  ;;  %6022 = vmatmul.mubr.bf16.gmra.mrb[48].mxu1 %v6273_v0  ;;  %v6293_v13 = vld [vmem:[#allocation12 + $0x1c8] sm:$0xff]   ;;  %v6294_v0 = vld [vmem:[#allocation12 + $0xc0] sm:$0xff]  }
 0x4f9   : > { %5957 = vmatprep.mubr.bf16.mxu0 %v6274_v55  ;;  %6025 = vmatprep.mubr.bf16.mxu1 %v6275_v10  ;;  %v6295_v55 = vld [vmem:[#allocation12 + $0x1d0] sm:$0xff]   ;;  %v7300_v10 = vpop.permute.xlu1 %1946 }
 0x4fa   : > { %9892 = vst [vmem:[#allocation70_spill] sm:$0xff] %v7300_v10 }
 0x500   : > { %5958 = vmatmul.mubr.bf16.gmra.mrb[44].mxu0 %v6276_v38  ;;  %6026 = vmatmul.mubr.bf16.gmra.mrb[52].mxu1 %v6277_v60  ;;  %v7302_v38 = vpop.permute.xlu0 %1941  ;;  %v6296_v60 = vld [vmem:[#allocation12 + $0xc8] sm:$0xff]  }
 0x501   : > { %5961 = vmatprep.mubr.bf16.mxu0 %v6278_v32  ;;  %6029 = vmatprep.mubr.bf16.mxu1 %v6279_v50  ;;  %9893 = vst [vmem:[#allocation71_spill] sm:$0xff] %v7302_v38  ;;  %v6297_v32 = vld [vmem:[#allocation12 + $0x1d8] sm:$0xff]   ;;  %v6298_v50 = vld [vmem:[#allocation12 + $0xd0] sm:$0xff]  }
 0x508   : > { %5962 = vmatmul.mubr.bf16.gmra.mrb[48].mxu0 %v6280_v31  ;;  %6030 = vmatmul.mubr.bf16.gmra.mrb[56].mxu1 %v6281_v19  ;;  %v6299_v31 = vld [vmem:[#allocation12 + $0x1e0] sm:$0xff]   ;;  %v7304_v19 = vpop.permute.xlu1 %1956 }
 0x509   : > { %5965 = vmatprep.mubr.bf16.mxu0 %v6282_v49  ;;  %6033 = vmatprep.mubr.bf16.mxu1 %v6283_v58  ;;  %9894 = vst [vmem:[#allocation72_spill] sm:$0xff] %v7304_v19  ;;  %v7306_v49 = vpop.permute.xlu0 %1951  ;;  %v6300_v58 = vld [vmem:[#allocation12 + $0xd8] sm:$0xff]  }
 0x50a   : > { %9895 = vst [vmem:[#allocation73_spill] sm:$0xff] %v7306_v49 }
 0x510   : > { %5966 = vmatmul.mubr.bf16.gmra.mrb[52].mxu0 %v6284_v15  ;;  %6034 = vmatmul.mubr.bf16.gmra.mrb[60].mxu1 %v6285_v7  ;;  %v6301_v15 = vld [vmem:[#allocation12 + $0x1e8] sm:$0xff]   ;;  %v6302_v7 = vld [vmem:[#allocation12 + $0xe0] sm:$0xff]  }
 0x511   : > { %5969 = vmatprep.mubr.bf16.mxu0 %v6286_v29  ;;  %6037 = vmatprep.mubr.bf16.mxu1 %v6287_v42  ;;  %v6303_v29 = vld [vmem:[#allocation12 + $0x1f0] sm:$0xff]   ;;  %v7308_v42 = vpop.permute.xlu1 %1966 }
 0x512   : > { %9896 = vst [vmem:[#allocation74_spill] sm:$0xff] %v7308_v42 }
 0x518   : > { %5970 = vmatmul.mubr.bf16.gmra.mrb[56].mxu0 %v6288_v48  ;;  %6038 = vmatmul.mubr.bf16.gmra.mrb[64].mxu1 %v6289_v34  ;;  %v7310_v48 = vpop.permute.xlu0 %1961  ;;  %v7312_v34 = vpop.permute.xlu1 %1976 }
 0x519   : > { %5973 = vmatprep.mubr.bf16.mxu0 %v6290_v61  ;;  %6041 = vmatprep.mubr.bf16.mxu1 %v6291_v23  ;;  %9897 = vst [vmem:[#allocation75_spill] sm:$0xff] %v7310_v48  ;;  %9898 = vst [vmem:[#allocation76_spill] sm:$0xff] %v7312_v34  ;;  %v6304_v23 = vld [vmem:[#allocation12 + $0xe8] sm:$0xff]  }
 0x51c   : > { %v7314_v61 = vpop.permute.xlu0 %1971 }
 0x51d   : > { %9899 = vst [vmem:[#allocation77_spill] sm:$0xff] %v7314_v61 }
 0x520   : > { %5974 = vmatmul.mubr.bf16.gmra.mrb[60].mxu0 %v6292_v33  ;;  %6042 = vmatmul.mubr.bf16.gmra.mrb[68].mxu1 %v6293_v13  ;;  %v6305_v33 = vld [vmem:[#allocation12 + $0x1f8] sm:$0xff]   ;;  %v6306_v13 = vld [vmem:[#allocation12 + $0xf0] sm:$0xff]  }
 0x521   : > { %5977 = vmatprep.mubr.bf16.mxu0 %v6294_v0  ;;  %6045 = vmatprep.mubr.bf16.mxu1 %v6295_v55  ;;  %v7316_v0 = vpop.permute.xlu1 %1986  ;;  %v7318_v55 = vpop.permute.xlu0 %1981 }
 0x522   : > { %9900 = vst [vmem:[#allocation78_spill] sm:$0xff] %v7316_v0  ;;  %9901 = vst [vmem:[#allocation79_spill] sm:$0xff] %v7318_v55 }
 0x528   : > { %5978 = vmatmul.mubr.bf16.gmra.mrb[64].mxu0 %v6296_v60  ;;  %6046 = vmatmul.mubr.bf16.gmra.mrb[72].mxu1 %v6297_v32  ;;  %v6307_v60 = vld [vmem:[#allocation12 + $0xf8] sm:$0xff]   ;;  %v6308_v32 = vld [vmem:[#allocation12 + $0x100] sm:$0xff]  }
 0x529   : > { %5981 = vmatprep.mubr.bf16.mxu0 %v6298_v50  ;;  %6049 = vmatprep.mubr.bf16.mxu1 %v6299_v31  ;;  %v1997_v50 = vpop.permute.xlu1 %1996  ;;  %v1992_v31 = vpop.permute.xlu0 %1991 }
 0x530   : > { %5982 = vmatmul.mubr.bf16.gmra.mrb[68].mxu0 %v6300_v58  ;;  %6050 = vmatmul.mubr.bf16.gmra.mrb[76].mxu1 %v6301_v15  ;;  %v6309_v58 = vld [vmem:[#allocation12 + $0x108] sm:$0xff]   ;;  %v2007_v15 = vpop.permute.xlu1 %2006 }
 0x531   : > { %5985 = vmatprep.mubr.bf16.mxu0 %v6302_v7  ;;  %6053 = vmatprep.mubr.bf16.mxu1 %v6303_v29  ;;  %v2002_v7 = vpop.permute.xlu0 %2001 }
 0x534   : > { %v7320_v29 = vpop.permute.xlu1 %2016 }
 0x535   : > { %v7322_v34 = vpop.permute.xlu0 %2011 }
 0x538   : > { %5986 = vmatmul.mubr.bf16.gmra.mrb[72].mxu0 %v6304_v23  ;;  %6054 = vmatmul.mubr.bf16.gmra.mrb[80].mxu1 %v6305_v33  ;;  %v7324_v23 = vpop.permute.xlu1 %2026 }
 0x539   : > { %5989 = vmatprep.mubr.bf16.mxu0 %v6306_v13  ;;  %v7326_v33 = vpop.permute.xlu0 %2021 }
 0x53c   : > { %v7328_v13 = vpop.permute.xlu1 %2036 }
 0x53d   : > { %v7330_v0 = vpop.permute.xlu0 %2031 }
 0x540   : > { %5990 = vmatmul.mubr.bf16.gmra.mrb[76].mxu0 %v6307_v60  ;;  %v7332_v61 = vpop.permute.xlu1 %2046 }
 0x541   : > { %5993 = vmatprep.mubr.bf16.mxu0 %v6308_v32  ;;  %v7334_v60 = vpop.permute.xlu0 %2041 }
 0x544   : > { %v7336_v32 = vpop.permute.xlu1 %2056 }
 0x545   : > { %v7338_v55 = vpop.permute.xlu0 %2051 }
 0x548   : > { %5994 = vmatmul.mubr.bf16.gmra.mrb[80].mxu0 %v6309_v58  ;;  %v7340_v58 = vpop.permute.xlu1 %2066 }
 0x549   : > { %v7342_v19 = vpop.permute.xlu0 %2061 }
 0x54c   : > { %v7344_v42 = vpop.permute.xlu1 %2076 }
 0x54d   : > { %v7346_v49 = vpop.permute.xlu0 %2071 }
 0x550   : > { %v7348_v48 = vpop.permute.xlu1 %2086 }
 0x551   : > { %v7350_v20 = vpop.permute.xlu0 %2081 }
 0x554   : > { %v7352_v10 = vpop.permute.xlu1 %2096 }
 0x555   : > { %v7354_v11 = vpop.permute.xlu0 %2091 }
 0x558   : > { %v7356_v38 = vpop.permute.xlu1 %2106 }
 0x559   : > { %v7358_v36 = vpop.permute.xlu0 %2101 }
 0x55c   : > { %v7360_v3 = vpop.permute.xlu1 %2116 }
 0x55d   : > { %v7362_v24 = vpop.permute.xlu0 %2111 }
 0x560   : > { %v7364_v44 = vpop.permute.xlu1 %2126 }
 0x561   : > { %v7366_v37 = vpop.permute.xlu0 %2121 }
 0x564   : > { %v7368_v63 = vpop.permute.xlu1 %2136 }
 0x565   : > { %9902 = vst [vmem:[#allocation80_spill] sm:$0xff] %v7368_v63  ;;  %v7370_v35 = vpop.permute.xlu0 %2131 }
 0x568   : > { %v7372_v8 = vpop.permute.xlu1 %2146 }
 0x569   : > { %9903 = vst [vmem:[#allocation81_spill] sm:$0xff] %v7372_v8  ;;  %v7374_v26 = vpop.permute.xlu0 %2141 }
 0x59b   : > { %v5931_v21 = vpop.f32.mrb[16].mxu0  ;;  %v5999_v40 = vpop.f32.mrb[24].mxu1 }
 0x59c   : > { %v2716_v46 = vadd.f32 %v5931_v21, %v7122_v2  ;;  %v2988_v54 = vadd.f32 %v5999_v40, %v2002_v7  ;;  %v2707_v53 = vpop.f32.mrb[17].mxu0  ;;  %v2979_v25 = vpop.f32.mrb[25].mxu1 }
 0x59d   : > { %v2708_v14 = vadd.f32 %v2707_v53, %v7117_v12  ;;  %v2980_v47 = vadd.f32 %v2979_v25, %v1992_v31  ;;  %v5932_v4 = vpop.f32.mrb[18].mxu0  ;;  %v6000_v62 = vpop.f32.mrb[26].mxu1 }
 0x59e   : > { %v3220_v41 = vmax.f32 %v2716_v46, 0.0  ;;  %v3288_v16 = vmax.f32 %v2988_v54, 0.0  ;;  %v2719_v39 = vadd.f32 %v5932_v4, %v7120_v17  ;;  %v7380_v51 = vadd.f32 %v6000_v62, %v2007_v15  ;;  %v2710_v18 = vpop.f32.mrb[19].mxu0  ;;  %v2982_v63 = vpop.f32.mrb[27].mxu1 }
 0x59f   : > { %v2711_v8 = vadd.f32 %v2710_v18, %v7112_v56  ;;  %v7383_v2 = vadd.f32 %v2982_v63, %v1997_v50  ;;  %v3218_v12 = vmax.f32 %v2708_v14, 0.0  ;;  %v3286_v25 = vmax.f32 %v2980_v47, 0.0  ;;  %v7387_v46 = vpop.permute.xlu1 %2156  ;;  %v7389_v17 = vpop.permute.xlu0 %2151 }
 0x5a0   : > { %v3221_v40 = vmax.f32 %v2719_v39, 0.0  ;;  %v3289_v21 = vmax.f32 %v7380_v51, 0.0  ;;  %4126 = vmax.xlane.f32.xlu1 %v3288_v16  ;;  %3990 = vmax.xlane.f32.xlu0 %v3220_v41 }
 0x5a1   : > { %v3219_v53 = vmax.f32 %v2711_v8, 0.0  ;;  %v3287_v54 = vmax.f32 %v7383_v2, 0.0 }
 0x5a2   : > { %v5367_v62 = vpack.c.bf16 %v3221_v40, %v3220_v41  ;;  %v5537_v4 = vpack.c.bf16 %v3289_v21, %v3288_v16 }
 0x5a3   : > { %v5362_v31 = vpack.c.bf16 %v3219_v53, %v3218_v12  ;;  %v5532_v56 = vpack.c.bf16 %v3287_v54, %v3286_v25  ;;  %v5935_v39 = vpop.f32.mrb[20].mxu0  ;;  %v6003_v18 = vpop.f32.mrb[28].mxu1 }
 0x5a4   : > { %5679 = vst [vmem:[%s7393_s24 + $0x8] sm:$0xff] %v5367_v62   ;;  %5713 = vst [vmem:[%s7393_s24 + $0x118] sm:$0xff] %v5537_v4   ;;  %v2732_v51 = vadd.f32 %v5935_v39, %v7130_v22  ;;  %v3004_v47 = vadd.f32 %v6003_v18, %v7326_v33  ;;  %v2995_v41 = vpop.f32.mrb[29].mxu1  ;;  %4122 = vmax.xlane.f32.xlu1 %v3286_v25  ;;  %v2723_v16 = vpop.f32.mrb[21].mxu0  ;;  %3986 = vmax.xlane.f32.xlu0 %v3218_v12 }
 0x5a5   : > { %5363 = vst [vmem:[%s7393_s24] sm:$0xff] %v5362_v31   ;;  %5712 = vst [vmem:[%s7393_s24 + $0x110] sm:$0xff] %v5532_v56   ;;  %v7402_v14 = vadd.f32 %v2995_v41, %v7322_v34  ;;  %v7405_v63 = vadd.f32 %v2723_v16, %v7126_v9  ;;  %v5936_v8 = vpop.f32.mrb[22].mxu0  ;;  %v6004_v50 = vpop.f32.mrb[30].mxu1 }
 0x5a6   : > { %v7408_v15 = vadd.f32 %v5936_v8, %v7128_v28  ;;  %v7411_v22 = vadd.f32 %v6004_v50, %v7324_v23  ;;  %v2726_v7 = vpop.f32.mrb[23].mxu0  ;;  %v2998_v33 = vpop.f32.mrb[31].mxu1  ;;  %v3224_v34 = vmax.f32 %v2732_v51, 0.0  ;;  %v3292_v62 = vmax.f32 %v3004_v47, 0.0 }
 0x5a7   : > { %v7414_v12 = vadd.f32 %v2726_v7, %v7124_v6  ;;  %v7417_v25 = vadd.f32 %v2998_v33, %v7320_v29  ;;  %v3290_v28 = vmax.f32 %v7402_v14, 0.0  ;;  %v3222_v23 = vmax.f32 %v7405_v63, 0.0  ;;  %v7425_v29 = vpop.permute.xlu1 %2166  ;;  %v7427_v56 = vpop.permute.xlu0 %2161 }
 0x5a8   : > { %v3225_v9 = vmax.f32 %v7408_v15, 0.0  ;;  %v3293_v4 = vmax.f32 %v7411_v22, 0.0  ;;  %3988 = vmax.xlane.f32.xlu1 %v3219_v53  ;;  %3992 = vmax.xlane.f32.xlu0 %v3221_v40 }
 0x5a9   : > { %v3223_v6 = vmax.f32 %v7414_v12, 0.0  ;;  %v3291_v31 = vmax.f32 %v7417_v25, 0.0  ;;  %v9908_v12 = vld [vmem:[#allocation30_spill] sm:$0xff] }
 0x5aa   : > { %v5377_v39 = vpack.c.bf16 %v3225_v9, %v3224_v34  ;;  %v5547_v18 = vpack.c.bf16 %v3293_v4, %v3292_v62 }
 0x5ab   : > { %v5372_v40 = vpack.c.bf16 %v3223_v6, %v3222_v23  ;;  %v5542_v53 = vpack.c.bf16 %v3291_v31, %v3290_v28  ;;  %v5939_v51 = vpop.f32.mrb[24].mxu0  ;;  %v6007_v47 = vpop.f32.mrb[32].mxu1 }
 0x5ac   : > { %5681 = vst [vmem:[%s7393_s24 + $0x18] sm:$0xff] %v5377_v39   ;;  %5715 = vst [vmem:[%s7393_s24 + $0x128] sm:$0xff] %v5547_v18   ;;  %v7440_v41 = vadd.f32 %v5939_v51, %v7138_v45  ;;  %v7443_v16 = vadd.f32 %v6007_v47, %v7334_v60  ;;  %v2739_v63 = vpop.f32.mrb[25].mxu0  ;;  %v3011_v8 = vpop.f32.mrb[33].mxu1  ;;  %3998 = vmax.xlane.f32.xlu1 %v3224_v34  ;;  %4128 = vmax.xlane.f32.xlu0 %v3289_v21 }
 0x5ad   : > { %5680 = vst [vmem:[%s7393_s24 + $0x10] sm:$0xff] %v5372_v40   ;;  %5714 = vst [vmem:[%s7393_s24 + $0x120] sm:$0xff] %v5542_v53   ;;  %v7448_v50 = vadd.f32 %v2739_v63, %v7134_v30  ;;  %v7451_v15 = vadd.f32 %v3011_v8, %v7330_v0  ;;  %v5940_v7 = vpop.f32.mrb[26].mxu0  ;;  %v6008_v33 = vpop.f32.mrb[34].mxu1 }
 0x5ae   : > { %v7454_v45 = vadd.f32 %v5940_v7, %v7136_v43  ;;  %v7457_v60 = vadd.f32 %v6008_v33, %v7332_v61  ;;  %v2742_v39 = vpop.f32.mrb[27].mxu0  ;;  %v3014_v18 = vpop.f32.mrb[35].mxu1  ;;  %v3228_v30 = vmax.f32 %v7440_v41, 0.0  ;;  %v3296_v0 = vmax.f32 %v7443_v16, 0.0 }
 0x5af   : > { %v7460_v21 = vadd.f32 %v2742_v39, %v7132_v27  ;;  %v7463_v34 = vadd.f32 %v3014_v18, %v7328_v13  ;;  %v3226_v27 = vmax.f32 %v7448_v50, 0.0  ;;  %v3294_v61 = vmax.f32 %v7451_v15, 0.0  ;;  %v7475_v51 = vpop.permute.xlu1 %2176  ;;  %v7477_v47 = vpop.permute.xlu0 %2171 }
 0x5b0   : > { %v3229_v40 = vmax.f32 %v7454_v45, 0.0  ;;  %v3297_v43 = vmax.f32 %v7457_v60, 0.0  ;;  %4134 = vmax.xlane.f32.xlu1 %v3292_v62  ;;  %4124 = vmax.xlane.f32.xlu0 %v3287_v54  ;;  %v9912_v45 = vld [vmem:[#allocation34_spill] sm:$0xff] }
 0x5b1   : > { %v9681_v13 = vmax.f32 %v7460_v21, 0.0  ;;  %v9682_v53 = vmax.f32 %v7463_v34, 0.0 }
 0x5b2   : > { %v5387_v62 = vpack.c.bf16 %v3229_v40, %v3228_v30  ;;  %v5557_v2 = vpack.c.bf16 %v3297_v43, %v3296_v0 }
 0x5b3   : > { %v5382_v54 = vpack.c.bf16 %v9681_v13, %v3226_v27  ;;  %v5552_v41 = vpack.c.bf16 %v9682_v53, %v3294_v61  ;;  %v5943_v63 = vpop.f32.mrb[28].mxu0  ;;  %v6011_v8 = vpop.f32.mrb[36].mxu1 }
 0x5b4   : > { %5683 = vst [vmem:[%s7393_s24 + $0x28] sm:$0xff] %v5387_v62   ;;  %5717 = vst [vmem:[%s7393_s24 + $0x138] sm:$0xff] %v5557_v2   ;;  %v7496_v7 = vadd.f32 %v5943_v63, %v7146_v5  ;;  %v7499_v33 = vadd.f32 %v6011_v8, %v7342_v19  ;;  %v2755_v39 = vpop.f32.mrb[29].mxu0  ;;  %v3027_v18 = vpop.f32.mrb[37].mxu1  ;;  %3994 = vmax.xlane.f32.xlu1 %v3222_v23  ;;  %4000 = vmax.xlane.f32.xlu0 %v3225_v9  ;;  %v9904_v23 = vld [vmem:[#allocation29_spill] sm:$0xff] }
 0x5b5   : > { %5682 = vst [vmem:[%s7393_s24 + $0x20] sm:$0xff] %v5382_v54   ;;  %5716 = vst [vmem:[%s7393_s24 + $0x130] sm:$0xff] %v5552_v41   ;;  %v7504_v13 = vadd.f32 %v2755_v39, %v7142_v59  ;;  %v7507_v53 = vadd.f32 %v3027_v18, %v7338_v55  ;;  %v5944_v62 = vpop.f32.mrb[30].mxu0  ;;  %v6012_v2 = vpop.f32.mrb[38].mxu1 }
 0x5b6   : > { %v7510_v5 = vadd.f32 %v5944_v62, %v7144_v1  ;;  %v7513_v19 = vadd.f32 %v6012_v2, %v7340_v58  ;;  %v2758_v63 = vpop.f32.mrb[31].mxu0  ;;  %v3030_v8 = vpop.f32.mrb[39].mxu1  ;;  %v9684_v59 = vmax.f32 %v7496_v7, 0.0  ;;  %v9686_v55 = vmax.f32 %v7499_v33, 0.0 }
 0x5b7   : > { %v7516_v9 = vadd.f32 %v2758_v63, %v9904_v23  ;;  %v7519_v54 = vadd.f32 %v3030_v8, %v7336_v32  ;;  %v3230_v58 = vmax.f32 %v7504_v13, 0.0  ;;  %v9689_v32 = vmax.f32 %v7507_v53, 0.0  ;;  %v7533_v62 = vpop.permute.xlu1 %2186  ;;  %v7535_v2 = vpop.permute.xlu0 %2181  ;;  %v9905_v23 = vld [vmem:[#allocation33_spill] sm:$0xff] }
 0x5b8   : > { %v9683_v41 = vmax.f32 %v7510_v5, 0.0  ;;  %v9685_v1 = vmax.f32 %v7513_v19, 0.0  ;;  %4130 = vmax.xlane.f32.xlu1 %v3290_v28  ;;  %4136 = vmax.xlane.f32.xlu0 %v3293_v4 }
 0x5b9   : > { %v9687_v39 = vmax.f32 %v7516_v9, 0.0  ;;  %v9688_v18 = vmax.f32 %v7519_v54, 0.0 }
 0x5ba   : > { %v5397_v14 = vpack.c.bf16 %v9683_v41, %v9684_v59  ;;  %v5567_v22 = vpack.c.bf16 %v9685_v1, %v9686_v55 }
 0x5bb   : > { %v5392_v4 = vpack.c.bf16 %v9687_v39, %v3230_v58  ;;  %v5562_v28 = vpack.c.bf16 %v9688_v18, %v9689_v32  ;;  %v5947_v63 = vpop.f32.mrb[32].mxu0  ;;  %v6015_v8 = vpop.f32.mrb[40].mxu1  ;;  %v9906_v39 = vld [vmem:[#allocation31_spill] sm:$0xff] }
 0x5bc   : > { %5685 = vst [vmem:[%s7393_s24 + $0x38] sm:$0xff] %v5397_v14   ;;  %5719 = vst [vmem:[%s7393_s24 + $0x148] sm:$0xff] %v5567_v22   ;;  %v7556_v41 = vadd.f32 %v5947_v63, %v9905_v23  ;;  %v7559_v59 = vadd.f32 %v6015_v8, %v7350_v20  ;;  %v2771_v1 = vpop.f32.mrb[33].mxu0  ;;  %v3043_v55 = vpop.f32.mrb[41].mxu1  ;;  %4006 = vmax.xlane.f32.xlu1 %v3228_v30  ;;  %3996 = vmax.xlane.f32.xlu0 %v3223_v6  ;;  %v9907_v23 = vld [vmem:[#allocation32_spill] sm:$0xff] }
 0x5bd   : > { %5684 = vst [vmem:[%s7393_s24 + $0x30] sm:$0xff] %v5392_v4   ;;  %5718 = vst [vmem:[%s7393_s24 + $0x140] sm:$0xff] %v5562_v28   ;;  %v7566_v18 = vadd.f32 %v2771_v1, %v9906_v39  ;;  %v7569_v14 = vadd.f32 %v3043_v55, %v7346_v49  ;;  %v5948_v22 = vpop.f32.mrb[34].mxu0  ;;  %v6016_v63 = vpop.f32.mrb[42].mxu1 }
 0x5be   : > { %v7572_v32 = vadd.f32 %v5948_v22, %v9907_v23  ;;  %v7575_v20 = vadd.f32 %v6016_v63, %v7348_v48  ;;  %v2774_v30 = vpop.f32.mrb[35].mxu0  ;;  %v3046_v8 = vpop.f32.mrb[43].mxu1  ;;  %v9691_v1 = vmax.f32 %v7556_v41, 0.0  ;;  %v9693_v49 = vmax.f32 %v7559_v59, 0.0 }
 0x5bf   : > { %v7578_v6 = vadd.f32 %v2774_v30, %v9908_v12  ;;  %v7581_v4 = vadd.f32 %v3046_v8, %v7344_v42  ;;  %v9713_v48 = vmax.f32 %v7566_v18, 0.0  ;;  %v9700_v42 = vmax.f32 %v7569_v14, 0.0  ;;  %v7595_v63 = vpop.permute.xlu1 %2196  ;;  %v7597_v23 = vpop.permute.xlu0 %2191  ;;  %v9909_v12 = vld [vmem:[#allocation37_spill] sm:$0xff] }
 0x5c0   : > { %v9690_v55 = vmax.f32 %v7572_v32, 0.0  ;;  %v9692_v39 = vmax.f32 %v7575_v20, 0.0  ;;  %4142 = vmax.xlane.f32.xlu1 %v3296_v0  ;;  %4132 = vmax.xlane.f32.xlu0 %v3291_v31 }
 0x5c1   : > { %v9695_v28 = vmax.f32 %v7578_v6, 0.0  ;;  %v9694_v22 = vmax.f32 %v7581_v4, 0.0 }
 0x5c2   : > { %v5407_v25 = vpack.c.bf16 %v9690_v55, %v9691_v1  ;;  %v5577_v31 = vpack.c.bf16 %v9692_v39, %v9693_v49 }
 0x5c3   : > { %v5402_v16 = vpack.c.bf16 %v9695_v28, %v9713_v48  ;;  %v5572_v0 = vpack.c.bf16 %v9694_v22, %v9700_v42  ;;  %v5951_v30 = vpop.f32.mrb[36].mxu0  ;;  %v6019_v8 = vpop.f32.mrb[44].mxu1  ;;  %v9910_v22 = vld [vmem:[#allocation35_spill] sm:$0xff]  ;;  %v9914_v42 = vmax.f32 %v7496_v7, 0.0 }
 0x5c4   : > { %5687 = vst [vmem:[%s7393_s24 + $0x48] sm:$0xff] %v5407_v25   ;;  %5721 = vst [vmem:[%s7393_s24 + $0x158] sm:$0xff] %v5577_v31   ;;  %v7618_v55 = vadd.f32 %v5951_v30, %v9909_v12  ;;  %v7621_v1 = vadd.f32 %v6019_v8, %v7358_v36  ;;  %v2787_v39 = vpop.f32.mrb[37].mxu0  ;;  %v3059_v49 = vpop.f32.mrb[45].mxu1  ;;  %4002 = vmax.xlane.f32.xlu1 %v3226_v27  ;;  %4008 = vmax.xlane.f32.xlu0 %v3229_v40  ;;  %v9911_v36 = vld [vmem:[#allocation36_spill] sm:$0xff] }
 0x5c5   : > { %5686 = vst [vmem:[%s7393_s24 + $0x40] sm:$0xff] %v5402_v16   ;;  %5720 = vst [vmem:[%s7393_s24 + $0x150] sm:$0xff] %v5572_v0   ;;  %v7630_v28 = vadd.f32 %v2787_v39, %v9910_v22  ;;  %v7633_v25 = vadd.f32 %v3059_v49, %v7354_v11  ;;  %v5952_v31 = vpop.f32.mrb[38].mxu0  ;;  %v6020_v30 = vpop.f32.mrb[46].mxu1 }
 0x5c6   : > { %v7636_v8 = vadd.f32 %v5952_v31, %v9911_v36  ;;  %v7639_v12 = vadd.f32 %v6020_v30, %v7356_v38  ;;  %v2790_v50 = vpop.f32.mrb[39].mxu0  ;;  %v3062_v27 = vpop.f32.mrb[47].mxu1  ;;  %v9697_v39 = vmax.f32 %v7618_v55, 0.0  ;;  %v9699_v11 = vmax.f32 %v7621_v1, 0.0 }
 0x5c7   : > { %v7642_v40 = vadd.f32 %v2790_v50, %v9912_v45  ;;  %v7645_v16 = vadd.f32 %v3062_v27, %v7352_v10  ;;  %v9704_v38 = vmax.f32 %v7630_v28, 0.0  ;;  %v9703_v10 = vmax.f32 %v7633_v25, 0.0  ;;  %v7659_v30 = vpop.permute.xlu1 %2206  ;;  %v7661_v36 = vpop.permute.xlu0 %2201  ;;  %v9913_v45 = vld [vmem:[#allocation41_spill] sm:$0xff] }
 0x5c8   : > { %v9696_v49 = vmax.f32 %v7636_v8, 0.0  ;;  %v9698_v22 = vmax.f32 %v7639_v12, 0.0  ;;  %4138 = vmax.xlane.f32.xlu1 %v3294_v61  ;;  %4144 = vmax.xlane.f32.xlu0 %v3297_v43 }
 0x5c9   : > { %v9701_v0 = vmax.f32 %v7642_v40, 0.0  ;;  %v9702_v31 = vmax.f32 %v7645_v16, 0.0 }
 0x5ca   : > { %v5417_v15 = vpack.c.bf16 %v9696_v49, %v9697_v39  ;;  %v5587_v60 = vpack.c.bf16 %v9698_v22, %v9699_v11 }
 0x5cb   : > { %v5412_v43 = vpack.c.bf16 %v9701_v0, %v9704_v38  ;;  %v5582_v61 = vpack.c.bf16 %v9702_v31, %v9703_v10  ;;  %v5955_v50 = vpop.f32.mrb[40].mxu0  ;;  %v6023_v27 = vpop.f32.mrb[48].mxu1  ;;  %v9915_v0 = vmax.f32 %v7460_v21, 0.0  ;;  %v9916_v31 = vld [vmem:[#allocation39_spill] sm:$0xff]  ;;  %v9918_v21 = vld [vmem:[#allocation38_spill] sm:$0xff] }
 0x5cc   : > { %5689 = vst [vmem:[%s7393_s24 + $0x58] sm:$0xff] %v5417_v15   ;;  %5723 = vst [vmem:[%s7393_s24 + $0x168] sm:$0xff] %v5587_v60   ;;  %v7682_v49 = vadd.f32 %v5955_v50, %v9913_v45  ;;  %v7685_v39 = vadd.f32 %v6023_v27, %v7366_v37  ;;  %v2803_v22 = vpop.f32.mrb[41].mxu0  ;;  %v3075_v11 = vpop.f32.mrb[49].mxu1  ;;  %4014 = vmax.xlane.f32.xlu1 %v9914_v42  ;;  %v9917_v37 = vld [vmem:[#allocation40_spill] sm:$0xff] }
 0x5cd   : > { %4004 = vmax.xlane.f32.xlu0 %v9915_v0  ;;  %5688 = vst [vmem:[%s7393_s24 + $0x50] sm:$0xff] %v5412_v43   ;;  %5722 = vst [vmem:[%s7393_s24 + $0x160] sm:$0xff] %v5582_v61   ;;  %v7694_v10 = vadd.f32 %v2803_v22, %v9916_v31  ;;  %v7697_v15 = vadd.f32 %v3075_v11, %v7362_v24  ;;  %v5956_v60 = vpop.f32.mrb[42].mxu0  ;;  %v6024_v50 = vpop.f32.mrb[50].mxu1  ;;  %v9920_v61 = vmax.f32 %v7463_v34, 0.0 }
 0x5ce   : > { %v7700_v27 = vadd.f32 %v5956_v60, %v9917_v37  ;;  %v7703_v45 = vadd.f32 %v6024_v50, %v7364_v44  ;;  %v2806_v7 = vpop.f32.mrb[43].mxu0  ;;  %v3078_v42 = vpop.f32.mrb[51].mxu1  ;;  %v9706_v22 = vmax.f32 %v7682_v49, 0.0  ;;  %v9708_v24 = vmax.f32 %v7685_v39, 0.0 }
 0x5cf   : > { %v7706_v0 = vadd.f32 %v2806_v7, %v9918_v21  ;;  %v7709_v43 = vadd.f32 %v3078_v42, %v7360_v3  ;;  %v9919_v44 = vmax.f32 %v7499_v33, 0.0  ;;  %v9712_v60 = vmax.f32 %v7694_v10, 0.0  ;;  %v7723_v7 = vpop.permute.xlu1 %2216  ;;  %v7725_v42 = vpop.permute.xlu0 %2211 }
 0x5d0   : > { %v9705_v11 = vmax.f32 %v7700_v27, 0.0  ;;  %v9707_v31 = vmax.f32 %v7703_v45, 0.0  ;;  %v9711_v3 = vmax.f32 %v7697_v15, 0.0 }
 0x5d1   : > { %4150 = vmax.xlane.f32.xlu1 %v9919_v44  ;;  %4140 = vmax.xlane.f32.xlu0 %v9920_v61  ;;  %v9709_v50 = vmax.f32 %v7706_v0, 0.0  ;;  %v9710_v37 = vmax.f32 %v7709_v43, 0.0 }
 0x5d2   : > { %v5427_v34 = vpack.c.bf16 %v9705_v11, %v9706_v22  ;;  %v5597_v33 = vpack.c.bf16 %v9707_v31, %v9708_v24 }
 0x5d3   : > { %v5422_v21 = vpack.c.bf16 %v9709_v50, %v9712_v60  ;;  %v5592_v44 = vpack.c.bf16 %v9710_v37, %v9711_v3  ;;  %v5959_v61 = vpop.f32.mrb[44].mxu0  ;;  %v6027_v38 = vpop.f32.mrb[52].mxu1  ;;  %v9921_v50 = vmax.f32 %v7510_v5, 0.0  ;;  %v9922_v37 = vld [vmem:[#allocation43_spill] sm:$0xff]  ;;  %v9925_v5 = vld [vmem:[#allocation42_spill] sm:$0xff] }
 0x5d4   : > { %5691 = vst [vmem:[%s7393_s24 + $0x68] sm:$0xff] %v5427_v34   ;;  %5725 = vst [vmem:[%s7393_s24 + $0x178] sm:$0xff] %v5597_v33   ;;  %v7746_v11 = vadd.f32 %v5959_v61, %v7246_v57  ;;  %v7749_v22 = vadd.f32 %v6027_v38, %v7374_v26  ;;  %v2819_v31 = vpop.f32.mrb[45].mxu0  ;;  %v3091_v24 = vpop.f32.mrb[53].mxu1  ;;  %v9923_v38 = vld [vmem:[#allocation81_spill] sm:$0xff] }
 0x5d5   : > { %4010 = vmax.xlane.f32.xlu1 %v3230_v58  ;;  %4016 = vmax.xlane.f32.xlu0 %v9921_v50  ;;  %5690 = vst [vmem:[%s7393_s24 + $0x60] sm:$0xff] %v5422_v21   ;;  %5724 = vst [vmem:[%s7393_s24 + $0x170] sm:$0xff] %v5592_v44   ;;  %v7758_v3 = vadd.f32 %v2819_v31, %v9922_v37  ;;  %v7761_v34 = vadd.f32 %v3091_v24, %v7370_v35  ;;  %v5960_v57 = vpop.f32.mrb[46].mxu0  ;;  %v6028_v33 = vpop.f32.mrb[54].mxu1  ;;  %v9927_v21 = vld [vmem:[#allocation80_spill] sm:$0xff]  ;;  %v9928_v37 = vmax.f32 %v7507_v53, 0.0 }
 0x5d6   : > { %v7764_v26 = vadd.f32 %v5960_v57, %v7244_v52  ;;  %v7767_v61 = vadd.f32 %v6028_v33, %v9923_v38  ;;  %v2822_v13 = vpop.f32.mrb[47].mxu0  ;;  %v3094_v58 = vpop.f32.mrb[55].mxu1  ;;  %v9715_v31 = vmax.f32 %v7746_v11, 0.0  ;;  %v9718_v35 = vmax.f32 %v7749_v22, 0.0 }
 0x5d7   : > { %v7770_v50 = vadd.f32 %v2822_v13, %v9925_v5  ;;  %v7773_v44 = vadd.f32 %v3094_v58, %v9927_v21  ;;  %v9929_v57 = vmax.f32 %v7513_v19, 0.0  ;;  %v9723_v33 = vmax.f32 %v7758_v3, 0.0  ;;  %v7787_v5 = vpop.permute.xlu1 %2226  ;;  %v7789_v21 = vpop.permute.xlu0 %2221 }
 0x5d8   : > { %9924 = vst [vmem:[#allocation29_spill] sm:$0xff] %v7767_v61  ;;  %v9714_v24 = vmax.f32 %v7764_v26, 0.0  ;;  %v9717_v52 = vmax.f32 %v7767_v61, 0.0  ;;  %v9722_v38 = vmax.f32 %v7761_v34, 0.0 }
 0x5d9   : > { %9926 = vst [vmem:[#allocation33_spill] sm:$0xff] %v7770_v50  ;;  %4146 = vmax.xlane.f32.xlu1 %v9928_v37  ;;  %4152 = vmax.xlane.f32.xlu0 %v9929_v57  ;;  %v9720_v13 = vmax.f32 %v7770_v50, 0.0  ;;  %v9721_v58 = vmax.f32 %v7773_v44, 0.0  ;;  %v9931_v50 = vmax.f32 %v7556_v41, 0.0 }
 0x5da   : > { %v5437_v53 = vpack.c.bf16 %v9714_v24, %v9715_v31  ;;  %v5607_v19 = vpack.c.bf16 %v9717_v52, %v9718_v35  ;;  %v9930_v24 = vld [vmem:[#allocation47_spill] sm:$0xff] }
 0x5db   : > { %v5432_v37 = vpack.c.bf16 %v9720_v13, %v9723_v33  ;;  %v5602_v57 = vpack.c.bf16 %v9721_v58, %v9722_v38  ;;  %v5963_v60 = vpop.f32.mrb[48].mxu0  ;;  %v6031_v48 = vpop.f32.mrb[56].mxu1  ;;  %v9932_v13 = vmax.f32 %v7516_v9, 0.0  ;;  %v9933_v58 = vld [vmem:[#allocation45_spill] sm:$0xff]  ;;  %v9936_v9 = vld [vmem:[#allocation44_spill] sm:$0xff] }
 0x5dc   : > { %5693 = vst [vmem:[%s7393_s24 + $0x78] sm:$0xff] %v5437_v53   ;;  %5727 = vst [vmem:[%s7393_s24 + $0x188] sm:$0xff] %v5607_v19   ;;  %v7810_v31 = vadd.f32 %v5963_v60, %v9930_v24  ;;  %v7813_v61 = vadd.f32 %v6031_v48, %v7427_v56  ;;  %v2835_v52 = vpop.f32.mrb[49].mxu0  ;;  %v3107_v35 = vpop.f32.mrb[57].mxu1  ;;  %v9934_v56 = vld [vmem:[#allocation46_spill] sm:$0xff] }
 0x5dd   : > { %4022 = vmax.xlane.f32.xlu1 %v9931_v50  ;;  %4012 = vmax.xlane.f32.xlu0 %v9932_v13  ;;  %5692 = vst [vmem:[%s7393_s24 + $0x70] sm:$0xff] %v5432_v37   ;;  %5726 = vst [vmem:[%s7393_s24 + $0x180] sm:$0xff] %v5602_v57   ;;  %v7822_v38 = vadd.f32 %v2835_v52, %v9933_v58  ;;  %v7825_v53 = vadd.f32 %v3107_v35, %v7389_v17  ;;  %v5964_v60 = vpop.f32.mrb[50].mxu0  ;;  %v6032_v24 = vpop.f32.mrb[58].mxu1  ;;  %v9939_v57 = vmax.f32 %v7519_v54, 0.0 }
 0x5de   : > { %v7828_v48 = vadd.f32 %v5964_v60, %v9934_v56  ;;  %v7831_v19 = vadd.f32 %v6032_v24, %v7425_v29  ;;  %v2838_v41 = vpop.f32.mrb[51].mxu0  ;;  %v3110_v50 = vpop.f32.mrb[59].mxu1  ;;  %v9725_v52 = vmax.f32 %v7810_v31, 0.0  ;;  %v9728_v17 = vmax.f32 %v7813_v61, 0.0 }
 0x5df   : > { %v7834_v13 = vadd.f32 %v2838_v41, %v9936_v9  ;;  %v7837_v37 = vadd.f32 %v3110_v50, %v7387_v46  ;;  %v9938_v29 = vmax.f32 %v7559_v59, 0.0  ;;  %v9733_v60 = vmax.f32 %v7822_v38, 0.0  ;;  %v7851_v41 = vpop.permute.xlu1 %2236  ;;  %v7853_v50 = vpop.permute.xlu0 %2231 }
 0x5e0   : > { %9935 = vst [vmem:[#allocation31_spill] sm:$0xff] %v7831_v19  ;;  %v9724_v35 = vmax.f32 %v7828_v48, 0.0  ;;  %v9727_v58 = vmax.f32 %v7831_v19, 0.0  ;;  %v9732_v46 = vmax.f32 %v7825_v53, 0.0 }
 0x5e1   : > { %9937 = vst [vmem:[#allocation32_spill] sm:$0xff] %v7834_v13  ;;  %4158 = vmax.xlane.f32.xlu1 %v9938_v29  ;;  %4148 = vmax.xlane.f32.xlu0 %v9939_v57  ;;  %v9730_v24 = vmax.f32 %v7834_v13, 0.0  ;;  %v9731_v56 = vmax.f32 %v7837_v37, 0.0  ;;  %v9941_v13 = vmax.f32 %v7566_v18, 0.0 }
 0x5e2   : > { %v5447_v54 = vpack.c.bf16 %v9724_v35, %v9725_v52  ;;  %v5617_v59 = vpack.c.bf16 %v9727_v58, %v9728_v17  ;;  %v9940_v35 = vld [vmem:[#allocation51_spill] sm:$0xff] }
 0x5e3   : > { %v5442_v9 = vpack.c.bf16 %v9730_v24, %v9733_v60  ;;  %v5612_v29 = vpack.c.bf16 %v9731_v56, %v9732_v46  ;;  %v5967_v57 = vpop.f32.mrb[52].mxu0  ;;  %v6035_v33 = vpop.f32.mrb[60].mxu1  ;;  %v9942_v24 = vmax.f32 %v7572_v32, 0.0  ;;  %v9943_v56 = vld [vmem:[#allocation49_spill] sm:$0xff]  ;;  %v9946_v32 = vld [vmem:[#allocation48_spill] sm:$0xff] }
 0x5e4   : > { %5695 = vst [vmem:[%s7393_s24 + $0x88] sm:$0xff] %v5447_v54   ;;  %5729 = vst [vmem:[%s7393_s24 + $0x198] sm:$0xff] %v5617_v59   ;;  %v7874_v52 = vadd.f32 %v5967_v57, %v9940_v35  ;;  %v7877_v19 = vadd.f32 %v6035_v33, %v7535_v2  ;;  %v2851_v58 = vpop.f32.mrb[53].mxu0  ;;  %v3123_v17 = vpop.f32.mrb[61].mxu1  ;;  %v9944_v2 = vld [vmem:[#allocation50_spill] sm:$0xff] }
 0x5e5   : > { %4018 = vmax.xlane.f32.xlu1 %v9941_v13  ;;  %4024 = vmax.xlane.f32.xlu0 %v9942_v24  ;;  %5694 = vst [vmem:[%s7393_s24 + $0x80] sm:$0xff] %v5442_v9   ;;  %5728 = vst [vmem:[%s7393_s24 + $0x190] sm:$0xff] %v5612_v29   ;;  %v7886_v46 = vadd.f32 %v2851_v58, %v9943_v56  ;;  %v7889_v54 = vadd.f32 %v3123_v17, %v7477_v47  ;;  %v5968_v35 = vpop.f32.mrb[54].mxu0  ;;  %v6036_v59 = vpop.f32.mrb[62].mxu1  ;;  %v9949_v29 = vmax.f32 %v7575_v20, 0.0 }
 0x5e6   : > { %v7892_v33 = vadd.f32 %v5968_v35, %v9944_v2  ;;  %v7895_v57 = vadd.f32 %v6036_v59, %v7533_v62  ;;  %v2854_v18 = vpop.f32.mrb[55].mxu0  ;;  %v3126_v13 = vpop.f32.mrb[63].mxu1  ;;  %v9735_v58 = vmax.f32 %v7874_v52, 0.0  ;;  %v9738_v47 = vmax.f32 %v7877_v19, 0.0 }
 0x5e7   : > { %v7898_v24 = vadd.f32 %v2854_v18, %v9946_v32  ;;  %v7901_v9 = vadd.f32 %v3126_v13, %v7475_v51  ;;  %v9948_v62 = vmax.f32 %v7569_v14, 0.0  ;;  %v9743_v35 = vmax.f32 %v7886_v46, 0.0  ;;  %v7915_v18 = vpop.permute.xlu1 %2246  ;;  %v7917_v13 = vpop.permute.xlu0 %2241 }
 0x5e8   : > { %9945 = vst [vmem:[#allocation30_spill] sm:$0xff] %v7895_v57  ;;  %v9734_v17 = vmax.f32 %v7892_v33, 0.0  ;;  %v9737_v56 = vmax.f32 %v7895_v57, 0.0  ;;  %v9742_v51 = vmax.f32 %v7889_v54, 0.0 }
 0x5e9   : > { %9947 = vst [vmem:[#allocation37_spill] sm:$0xff] %v7898_v24  ;;  %4154 = vmax.xlane.f32.xlu1 %v9948_v62  ;;  %4160 = vmax.xlane.f32.xlu0 %v9949_v29  ;;  %v9740_v59 = vmax.f32 %v7898_v24, 0.0  ;;  %v9741_v2 = vmax.f32 %v7901_v9, 0.0  ;;  %v9951_v24 = vmax.f32 %v7618_v55, 0.0 }
 0x5ea   : > { %v5457_v14 = vpack.c.bf16 %v9734_v17, %v9735_v58  ;;  %v5627_v20 = vpack.c.bf16 %v9737_v56, %v9738_v47  ;;  %v9950_v17 = vld [vmem:[#allocation55_spill] sm:$0xff] }
 0x5eb   : > { %v5452_v32 = vpack.c.bf16 %v9740_v59, %v9743_v35  ;;  %v5622_v62 = vpack.c.bf16 %v9741_v2, %v9742_v51  ;;  %v5971_v29 = vpop.f32.mrb[56].mxu0  ;;  %v6039_v60 = vpop.f32.mrb[64].mxu1  ;;  %v9952_v59 = vmax.f32 %v7578_v6, 0.0  ;;  %v9953_v2 = vld [vmem:[#allocation53_spill] sm:$0xff]  ;;  %v9956_v6 = vld [vmem:[#allocation52_spill] sm:$0xff] }
 0x5ec   : > { %5697 = vst [vmem:[%s7393_s24 + $0x98] sm:$0xff] %v5457_v14   ;;  %5731 = vst [vmem:[%s7393_s24 + $0x1a8] sm:$0xff] %v5627_v20   ;;  %v7938_v58 = vadd.f32 %v5971_v29, %v9950_v17  ;;  %v7941_v57 = vadd.f32 %v6039_v60, %v7661_v36  ;;  %v2867_v56 = vpop.f32.mrb[57].mxu0  ;;  %v3139_v47 = vpop.f32.mrb[65].mxu1  ;;  %v9954_v36 = vld [vmem:[#allocation54_spill] sm:$0xff] }
 0x5ed   : > { %4030 = vmax.xlane.f32.xlu1 %v9951_v24  ;;  %4020 = vmax.xlane.f32.xlu0 %v9952_v59  ;;  %5696 = vst [vmem:[%s7393_s24 + $0x90] sm:$0xff] %v5452_v32   ;;  %5730 = vst [vmem:[%s7393_s24 + $0x1a0] sm:$0xff] %v5622_v62   ;;  %v7950_v51 = vadd.f32 %v2867_v56, %v9953_v2  ;;  %v7953_v14 = vadd.f32 %v3139_v47, %v7597_v23  ;;  %v5972_v17 = vpop.f32.mrb[58].mxu0  ;;  %v6040_v20 = vpop.f32.mrb[66].mxu1  ;;  %v9959_v62 = vmax.f32 %v7581_v4, 0.0 }
 0x5ee   : > { %v7956_v60 = vadd.f32 %v5972_v17, %v9954_v36  ;;  %v7959_v29 = vadd.f32 %v6040_v20, %v7659_v30  ;;  %v2870_v55 = vpop.f32.mrb[59].mxu0  ;;  %v3142_v24 = vpop.f32.mrb[67].mxu1  ;;  %v9745_v56 = vmax.f32 %v7938_v58, 0.0  ;;  %v9748_v23 = vmax.f32 %v7941_v57, 0.0 }
 0x5ef   : > { %v7962_v59 = vadd.f32 %v2870_v55, %v9956_v6  ;;  %v7965_v32 = vadd.f32 %v3142_v24, %v7595_v63  ;;  %v9958_v30 = vmax.f32 %v7621_v1, 0.0  ;;  %v9753_v17 = vmax.f32 %v7950_v51, 0.0  ;;  %v7979_v55 = vpop.permute.xlu1 %2256  ;;  %v7981_v24 = vpop.permute.xlu0 %2251 }
 0x5f0   : > { %9955 = vst [vmem:[#allocation35_spill] sm:$0xff] %v7959_v29  ;;  %v9744_v47 = vmax.f32 %v7956_v60, 0.0  ;;  %v9747_v2 = vmax.f32 %v7959_v29, 0.0  ;;  %v9752_v63 = vmax.f32 %v7953_v14, 0.0 }
 0x5f1   : > { %9957 = vst [vmem:[#allocation36_spill] sm:$0xff] %v7962_v59  ;;  %4166 = vmax.xlane.f32.xlu1 %v9958_v30  ;;  %4156 = vmax.xlane.f32.xlu0 %v9959_v62  ;;  %v9750_v20 = vmax.f32 %v7962_v59, 0.0  ;;  %v9751_v36 = vmax.f32 %v7965_v32, 0.0  ;;  %v9961_v59 = vmax.f32 %v7630_v28, 0.0 }
 0x5f2   : > { %v5467_v4 = vpack.c.bf16 %v9744_v47, %v9745_v56  ;;  %v5637_v1 = vpack.c.bf16 %v9747_v2, %v9748_v23  ;;  %v9960_v47 = vld [vmem:[#allocation59_spill] sm:$0xff] }
 0x5f3   : > { %v5462_v6 = vpack.c.bf16 %v9750_v20, %v9753_v17  ;;  %v5632_v30 = vpack.c.bf16 %v9751_v36, %v9752_v63  ;;  %v5975_v62 = vpop.f32.mrb[60].mxu0  ;;  %v6043_v35 = vpop.f32.mrb[68].mxu1  ;;  %v9962_v20 = vmax.f32 %v7636_v8, 0.0  ;;  %v9963_v36 = vld [vmem:[#allocation57_spill] sm:$0xff]  ;;  %v9966_v8 = vld [vmem:[#allocation56_spill] sm:$0xff] }
 0x5f4   : > { %5699 = vst [vmem:[%s7393_s24 + $0xa8] sm:$0xff] %v5467_v4   ;;  %5733 = vst [vmem:[%s7393_s24 + $0x1b8] sm:$0xff] %v5637_v1   ;;  %v8002_v56 = vadd.f32 %v5975_v62, %v9960_v47  ;;  %v8005_v29 = vadd.f32 %v6043_v35, %v7789_v21  ;;  %v2883_v2 = vpop.f32.mrb[61].mxu0  ;;  %v3155_v23 = vpop.f32.mrb[69].mxu1  ;;  %v9964_v21 = vld [vmem:[#allocation58_spill] sm:$0xff] }
 0x5f5   : > { %4026 = vmax.xlane.f32.xlu1 %v9961_v59  ;;  %4032 = vmax.xlane.f32.xlu0 %v9962_v20  ;;  %5698 = vst [vmem:[%s7393_s24 + $0xa0] sm:$0xff] %v5462_v6   ;;  %5732 = vst [vmem:[%s7393_s24 + $0x1b0] sm:$0xff] %v5632_v30   ;;  %v8014_v63 = vadd.f32 %v2883_v2, %v9963_v36  ;;  %v8017_v4 = vadd.f32 %v3155_v23, %v7725_v42  ;;  %v5976_v47 = vpop.f32.mrb[62].mxu0  ;;  %v6044_v1 = vpop.f32.mrb[70].mxu1  ;;  %v9969_v30 = vmax.f32 %v7639_v12, 0.0 }
 0x5f6   : > { %v8020_v35 = vadd.f32 %v5976_v47, %v9964_v21  ;;  %v8023_v62 = vadd.f32 %v6044_v1, %v7787_v5  ;;  %v2886_v28 = vpop.f32.mrb[63].mxu0  ;;  %v3158_v59 = vpop.f32.mrb[71].mxu1  ;;  %v9755_v2 = vmax.f32 %v8002_v56, 0.0  ;;  %v9758_v42 = vmax.f32 %v8005_v29, 0.0 }
 0x5f7   : > { %v8026_v20 = vadd.f32 %v2886_v28, %v9966_v8  ;;  %v8029_v6 = vadd.f32 %v3158_v59, %v7723_v7  ;;  %v9968_v5 = vmax.f32 %v7633_v25, 0.0  ;;  %v9763_v47 = vmax.f32 %v8014_v63, 0.0  ;;  %v2267_v28 = vpop.permute.xlu1 %2266  ;;  %v2262_v59 = vpop.permute.xlu0 %2261 }
 0x5f8   : > { %9965 = vst [vmem:[#allocation34_spill] sm:$0xff] %v8023_v62  ;;  %v9754_v23 = vmax.f32 %v8020_v35, 0.0  ;;  %v9757_v36 = vmax.f32 %v8023_v62, 0.0  ;;  %v9762_v7 = vmax.f32 %v8017_v4, 0.0 }
 0x5f9   : > { %9967 = vst [vmem:[#allocation41_spill] sm:$0xff] %v8026_v20  ;;  %4162 = vmax.xlane.f32.xlu1 %v9968_v5  ;;  %4168 = vmax.xlane.f32.xlu0 %v9969_v30  ;;  %v9760_v1 = vmax.f32 %v8026_v20, 0.0  ;;  %v9761_v21 = vmax.f32 %v8029_v6, 0.0  ;;  %v9971_v20 = vmax.f32 %v7682_v49, 0.0 }
 0x5fa   : > { %v5477_v25 = vpack.c.bf16 %v9754_v23, %v9755_v2  ;;  %v5647_v12 = vpack.c.bf16 %v9757_v36, %v9758_v42  ;;  %v9970_v23 = vld [vmem:[#allocation63_spill] sm:$0xff] }
 0x5fb   : > { %v5472_v8 = vpack.c.bf16 %v9760_v1, %v9763_v47  ;;  %v5642_v5 = vpack.c.bf16 %v9761_v21, %v9762_v7  ;;  %v5979_v30 = vpop.f32.mrb[64].mxu0  ;;  %v6047_v17 = vpop.f32.mrb[72].mxu1  ;;  %v9972_v1 = vmax.f32 %v7642_v40, 0.0  ;;  %v9973_v21 = vld [vmem:[#allocation61_spill] sm:$0xff]  ;;  %v9977_v40 = vld [vmem:[#allocation60_spill] sm:$0xff] }
 0x5fc   : > { %5701 = vst [vmem:[%s7393_s24 + $0xb8] sm:$0xff] %v5477_v25   ;;  %5735 = vst [vmem:[%s7393_s24 + $0x1c8] sm:$0xff] %v5647_v12   ;;  %v8062_v2 = vadd.f32 %v5979_v30, %v9970_v23  ;;  %v8065_v62 = vadd.f32 %v6047_v17, %v7917_v13  ;;  %v2899_v36 = vpop.f32.mrb[65].mxu0  ;;  %v3171_v42 = vpop.f32.mrb[73].mxu1  ;;  %v9974_v13 = vld [vmem:[#allocation62_spill] sm:$0xff] }
 0x5fd   : > { %4038 = vmax.xlane.f32.xlu1 %v9971_v20  ;;  %4028 = vmax.xlane.f32.xlu0 %v9972_v1  ;;  %5700 = vst [vmem:[%s7393_s24 + $0xb0] sm:$0xff] %v5472_v8   ;;  %5734 = vst [vmem:[%s7393_s24 + $0x1c0] sm:$0xff] %v5642_v5   ;;  %v8074_v7 = vadd.f32 %v2899_v36, %v9973_v21  ;;  %v8077_v25 = vadd.f32 %v3171_v42, %v7853_v50  ;;  %v5980_v23 = vpop.f32.mrb[66].mxu0  ;;  %v6048_v12 = vpop.f32.mrb[74].mxu1  ;;  %v9979_v5 = vmax.f32 %v7645_v16, 0.0 }
 0x5fe   : > { %v8080_v17 = vadd.f32 %v5980_v23, %v9974_v13  ;;  %v8083_v30 = vadd.f32 %v6048_v12, %v7915_v18  ;;  %v2902_v49 = vpop.f32.mrb[67].mxu0  ;;  %v3174_v20 = vpop.f32.mrb[75].mxu1  ;;  %v9765_v36 = vmax.f32 %v8062_v2, 0.0  ;;  %v9768_v50 = vmax.f32 %v8065_v62, 0.0 }
 0x5ff   : > { %v8086_v1 = vadd.f32 %v2902_v49, %v9977_v40  ;;  %v8089_v8 = vadd.f32 %v3174_v20, %v7851_v41  ;;  %v9978_v18 = vmax.f32 %v7685_v39, 0.0  ;;  %v9773_v23 = vmax.f32 %v8074_v7, 0.0  ;;  %v8103_v49 = vpop.permute.xlu1 %2276  ;;  %v2272_v20 = vpop.permute.xlu0 %2271 }
 0x600   : > { %9975 = vst [vmem:[#allocation39_spill] sm:$0xff] %v8080_v17  ;;  %9976 = vst [vmem:[#allocation40_spill] sm:$0xff] %v8083_v30  ;;  %v9764_v42 = vmax.f32 %v8080_v17, 0.0  ;;  %v9767_v21 = vmax.f32 %v8083_v30, 0.0  ;;  %v9772_v41 = vmax.f32 %v8077_v25, 0.0  ;;  %v9981_v30 = vmax.f32 %v7694_v10, 0.0 }
 0x601   : > { %4174 = vmax.xlane.f32.xlu1 %v9978_v18  ;;  %4164 = vmax.xlane.f32.xlu0 %v9979_v5  ;;  %v9770_v12 = vmax.f32 %v8086_v1, 0.0  ;;  %v9771_v13 = vmax.f32 %v8089_v8, 0.0 }
 0x602   : > { %v5487_v39 = vpack.c.bf16 %v9764_v42, %v9765_v36  ;;  %v5657_v16 = vpack.c.bf16 %v9767_v21, %v9768_v50  ;;  %v9980_v42 = vld [vmem:[#allocation67_spill] sm:$0xff] }
 0x603   : > { %v5482_v40 = vpack.c.bf16 %v9770_v12, %v9773_v23  ;;  %v5652_v18 = vpack.c.bf16 %v9771_v13, %v9772_v41  ;;  %v5983_v5 = vpop.f32.mrb[68].mxu0  ;;  %v6051_v47 = vpop.f32.mrb[76].mxu1  ;;  %v9982_v12 = vmax.f32 %v7700_v27, 0.0  ;;  %v9983_v13 = vld [vmem:[#allocation65_spill] sm:$0xff]  ;;  %v9987_v23 = vld [vmem:[#allocation64_spill] sm:$0xff] }
 0x604   : > { %5703 = vst [vmem:[%s7393_s24 + $0xc8] sm:$0xff] %v5487_v39   ;;  %5737 = vst [vmem:[%s7393_s24 + $0x1d8] sm:$0xff] %v5657_v16   ;;  %v8124_v36 = vadd.f32 %v5983_v5, %v9980_v42  ;;  %v8126_v17 = vadd.f32 %v6051_v47, %v2262_v59  ;;  %v2915_v21 = vpop.f32.mrb[69].mxu0  ;;  %v3187_v50 = vpop.f32.mrb[77].mxu1  ;;  %v9984_v47 = vld [vmem:[#allocation66_spill] sm:$0xff] }
 0x605   : > { %4034 = vmax.xlane.f32.xlu1 %v9981_v30  ;;  %4040 = vmax.xlane.f32.xlu0 %v9982_v12  ;;  %5702 = vst [vmem:[%s7393_s24 + $0xc0] sm:$0xff] %v5482_v40   ;;  %5736 = vst [vmem:[%s7393_s24 + $0x1d0] sm:$0xff] %v5652_v18   ;;  %v8135_v41 = vadd.f32 %v2915_v21, %v9983_v13  ;;  %v8138_v39 = vadd.f32 %v3187_v50, %v7981_v24  ;;  %v5984_v42 = vpop.f32.mrb[70].mxu0  ;;  %v6052_v16 = vpop.f32.mrb[78].mxu1  ;;  %v9990_v40 = vmax.f32 %v7703_v45, 0.0 }
 0x606   : > { %v8141_v59 = vadd.f32 %v5984_v42, %v9984_v47  ;;  %v8143_v5 = vadd.f32 %v6052_v16, %v2267_v28  ;;  %v2918_v10 = vpop.f32.mrb[71].mxu0  ;;  %v3190_v30 = vpop.f32.mrb[79].mxu1  ;;  %v9775_v21 = vmax.f32 %v8124_v36, 0.0  ;;  %v9778_v24 = vmax.f32 %v8126_v17, 0.0 }
 0x607   : > { %v8146_v27 = vadd.f32 %v2918_v10, %v9987_v23  ;;  %v8149_v12 = vadd.f32 %v3190_v30, %v7979_v55  ;;  %v9989_v28 = vmax.f32 %v7697_v15, 0.0  ;;  %v9783_v23 = vmax.f32 %v8135_v41, 0.0  ;;  %v2287_v16 = vpop.permute.xlu1 %2286  ;;  %v2282_v47 = vpop.permute.xlu0 %2281 }
 0x608   : > { %9985 = vst [vmem:[#allocation38_spill] sm:$0xff] %v8141_v59  ;;  %9986 = vst [vmem:[#allocation43_spill] sm:$0xff] %v8143_v5  ;;  %v9774_v50 = vmax.f32 %v8141_v59, 0.0  ;;  %v9777_v13 = vmax.f32 %v8143_v5, 0.0  ;;  %v9782_v55 = vmax.f32 %v8138_v39, 0.0  ;;  %v9992_v5 = vmax.f32 %v7746_v11, 0.0 }
 0x609   : > { %9988 = vst [vmem:[#allocation81_spill] sm:$0xff] %v8149_v12  ;;  %4170 = vmax.xlane.f32.xlu1 %v9989_v28  ;;  %4176 = vmax.xlane.f32.xlu0 %v9990_v40  ;;  %v9780_v18 = vmax.f32 %v8146_v27, 0.0  ;;  %v9781_v42 = vmax.f32 %v8149_v12, 0.0 }
 0x60a   : > { %v5497_v15 = vpack.c.bf16 %v9774_v50, %v9775_v21  ;;  %v5667_v45 = vpack.c.bf16 %v9777_v13, %v9778_v24  ;;  %v9991_v50 = vld [vmem:[#allocation71_spill] sm:$0xff] }
 0x60b   : > { %v5492_v10 = vpack.c.bf16 %v9780_v18, %v9783_v23  ;;  %v5662_v30 = vpack.c.bf16 %v9781_v42, %v9782_v55  ;;  %v5987_v28 = vpop.f32.mrb[72].mxu0  ;;  %v6055_v40 = vpop.f32.mrb[80].mxu1  ;;  %v9993_v18 = vmax.f32 %v7706_v0, 0.0  ;;  %v9994_v42 = vld [vmem:[#allocation69_spill] sm:$0xff] }
 0x60c   : > { %5705 = vst [vmem:[%s7393_s24 + $0xd8] sm:$0xff] %v5497_v15   ;;  %5739 = vst [vmem:[%s7393_s24 + $0x1e8] sm:$0xff] %v5667_v45   ;;  %v8182_v21 = vadd.f32 %v5987_v28, %v9991_v50  ;;  %v8184_v59 = vadd.f32 %v6055_v40, %v2282_v47  ;;  %v2931_v13 = vpop.f32.mrb[73].mxu0  ;;  %v3203_v24 = vpop.f32.mrb[81].mxu1  ;;  %v9995_v28 = vld [vmem:[#allocation70_spill] sm:$0xff] }
 0x60d   : > { %4046 = vmax.xlane.f32.xlu1 %v9992_v5  ;;  %4036 = vmax.xlane.f32.xlu0 %v9993_v18  ;;  %5704 = vst [vmem:[%s7393_s24 + $0xd0] sm:$0xff] %v5492_v10   ;;  %5738 = vst [vmem:[%s7393_s24 + $0x1e0] sm:$0xff] %v5662_v30   ;;  %v8193_v55 = vadd.f32 %v2931_v13, %v9994_v42  ;;  %v8195_v15 = vadd.f32 %v3203_v24, %v2272_v20  ;;  %v5988_v45 = vpop.f32.mrb[74].mxu0  ;;  %v6056_v50 = vpop.f32.mrb[82].mxu1  ;;  %v9996_v5 = vld [vmem:[#allocation68_spill] sm:$0xff]  ;;  %v9997_v42 = vmax.f32 %v7749_v22, 0.0 }
 0x60e   : > { %v8198_v47 = vadd.f32 %v5988_v45, %v9995_v28  ;;  %v8200_v40 = vadd.f32 %v6056_v50, %v2287_v16  ;;  %v2934_v23 = vpop.f32.mrb[75].mxu0  ;;  %v3206_v11 = vpop.f32.mrb[83].mxu1  ;;  %v9800_v13 = vmax.f32 %v8182_v21, 0.0  ;;  %v9786_v20 = vmax.f32 %v8184_v59, 0.0 }
 0x60f   : > { %v8203_v12 = vadd.f32 %v2934_v23, %v9996_v5  ;;  %v8206_v0 = vadd.f32 %v3206_v11, %v8103_v49  ;;  %v9998_v16 = vmax.f32 %v7709_v43, 0.0  ;;  %v9799_v49 = vmax.f32 %v8193_v55, 0.0  ;;  %v9999_v11 = vld [vmem:[#allocation75_spill] sm:$0xff] }
 0x610   : > { %v9789_v24 = vmax.f32 %v8198_v47, 0.0  ;;  %v9785_v18 = vmax.f32 %v8200_v40, 0.0  ;;  %v9792_v23 = vmax.f32 %v8195_v15, 0.0 }
 0x611   : > { %4182 = vmax.xlane.f32.xlu1 %v9997_v42  ;;  %4172 = vmax.xlane.f32.xlu0 %v9998_v16  ;;  %v9787_v10 = vmax.f32 %v8203_v12, 0.0  ;;  %v9788_v30 = vmax.f32 %v8206_v0, 0.0  ;;  %v10000_v16 = vmax.f32 %v7758_v3, 0.0 }
 0x612   : > { %v5507_v45 = vpack.c.bf16 %v9789_v24, %v9800_v13  ;;  %v5677_v43 = vpack.c.bf16 %v9785_v18, %v9786_v20  ;;  %v10001_v18 = vmax.f32 %v7764_v26, 0.0  ;;  %v10002_v20 = vld [vmem:[#allocation73_spill] sm:$0xff]  ;;  %v10003_v24 = vld [vmem:[#allocation74_spill] sm:$0xff] }
 0x613   : > { %v5502_v22 = vpack.c.bf16 %v9787_v10, %v9799_v49  ;;  %v5672_v50 = vpack.c.bf16 %v9788_v30, %v9792_v23  ;;  %v5991_v28 = vpop.f32.mrb[76].mxu0 }
 0x614   : > { %5707 = vst [vmem:[%s7393_s24 + $0xe8] sm:$0xff] %v5507_v45   ;;  %5741 = vst [vmem:[%s7393_s24 + $0x1f8] sm:$0xff] %v5677_v43   ;;  %v8239_v5 = vadd.f32 %v5991_v28, %v9999_v11  ;;  %v2947_v42 = vpop.f32.mrb[77].mxu0  ;;  %v10004_v28 = vld [vmem:[#allocation72_spill] sm:$0xff] }
 0x615   : > { %4042 = vmax.xlane.f32.xlu1 %v10000_v16  ;;  %4048 = vmax.xlane.f32.xlu0 %v10001_v18  ;;  %5706 = vst [vmem:[%s7393_s24 + $0xe0] sm:$0xff] %v5502_v22   ;;  %5740 = vst [vmem:[%s7393_s24 + $0x1f0] sm:$0xff] %v5672_v50   ;;  %v8248_v10 = vadd.f32 %v2947_v42, %v10002_v20  ;;  %v5992_v30 = vpop.f32.mrb[78].mxu0  ;;  %v10005_v18 = vmax.f32 %v7761_v34, 0.0  ;;  %v10006_v22 = vld [vmem:[#allocation29_spill] sm:$0xff]  ;;  %v10008_v34 = vld [vmem:[#allocation79_spill] sm:$0xff] }
 0x616   : > { %v8251_v45 = vadd.f32 %v5992_v30, %v10003_v24  ;;  %v2950_v43 = vpop.f32.mrb[79].mxu0  ;;  %v9791_v3 = vmax.f32 %v8239_v5, 0.0  ;;  %v10007_v50 = vmax.f32 %v10006_v22, 0.0  ;;  %v10010_v22 = vld [vmem:[#allocation33_spill] sm:$0xff] }
 0x617   : > { %v8254_v11 = vadd.f32 %v2950_v43, %v10004_v28  ;;  %v9794_v20 = vmax.f32 %v8248_v10, 0.0 }
 0x618   : > { %v9790_v26 = vmax.f32 %v8251_v45, 0.0 }
 0x619   : > { %4178 = vmax.xlane.f32.xlu1 %v10005_v18  ;;  %4184 = vmax.xlane.f32.xlu0 %v10007_v50  ;;  %v9793_v24 = vmax.f32 %v8254_v11, 0.0  ;;  %v10009_v18 = vmax.f32 %v7810_v31, 0.0  ;;  %v10011_v50 = vmax.f32 %v10010_v22, 0.0  ;;  %v10015_v22 = vmax.f32 %v7813_v61, 0.0 }
 0x61a   : > { %v5517_v30 = vpack.c.bf16 %v9790_v26, %v9791_v3  ;;  %v10012_v26 = vld [vmem:[#allocation77_spill] sm:$0xff]  ;;  %v10017_v61 = vmax.f32 %v7822_v38, 0.0 }
 0x61b   : > { %v5512_v42 = vpack.c.bf16 %v9793_v24, %v9794_v20  ;;  %v5995_v16 = vpop.f32.mrb[80].mxu0  ;;  %v10013_v24 = vld [vmem:[#allocation78_spill] sm:$0xff] }
 0x61c   : > { %5709 = vst [vmem:[%s7393_s24 + $0xf8] sm:$0xff] %v5517_v30   ;;  %v8274_v43 = vadd.f32 %v5995_v16, %v10008_v34  ;;  %v2963_v28 = vpop.f32.mrb[81].mxu0  ;;  %v10014_v16 = vld [vmem:[#allocation76_spill] sm:$0xff] }
 0x61d   : > { %4054 = vmax.xlane.f32.xlu1 %v10009_v18  ;;  %4044 = vmax.xlane.f32.xlu0 %v10011_v50  ;;  %5708 = vst [vmem:[%s7393_s24 + $0xf0] sm:$0xff] %v5512_v42   ;;  %v8282_v3 = vadd.f32 %v2963_v28, %v10012_v26  ;;  %v5996_v23 = vpop.f32.mrb[82].mxu0  ;;  %v10016_v42 = vmax.f32 %v7773_v44, 0.0  ;;  %v10018_v44 = vmax.f32 %v7828_v48, 0.0  ;;  %v10019_v50 = vmax.f32 %v7825_v53, 0.0 }
 0x61e   : > { %v8285_v20 = vadd.f32 %v5996_v23, %v10013_v24  ;;  %v2966_v30 = vpop.f32.mrb[83].mxu0  ;;  %v9798_v31 = vmax.f32 %v8274_v43, 0.0  ;;  %v10026_v48 = vmax.f32 %v7877_v19, 0.0  ;;  %v10031_v19 = vmax.f32 %v7889_v54, 0.0 }
 0x61f   : > { %v8288_v34 = vadd.f32 %v2966_v30, %v10014_v16  ;;  %v9797_v26 = vmax.f32 %v8282_v3, 0.0  ;;  %v10020_v30 = vld [vmem:[#allocation31_spill] sm:$0xff]  ;;  %v10040_v54 = vmax.f32 %v7941_v57, 0.0  ;;  %v10046_v57 = vmax.f32 %v7953_v14, 0.0 }
 0x620   : > { %v9795_v18 = vmax.f32 %v8285_v20, 0.0  ;;  %v10021_v16 = vmax.f32 %v10020_v30, 0.0  ;;  %v10032_v30 = vld [vmem:[#allocation30_spill] sm:$0xff]  ;;  %v10054_v14 = vmax.f32 %v8005_v29, 0.0  ;;  %v10060_v29 = vmax.f32 %v8017_v4, 0.0 }
 0x621   : > { %4190 = vmax.xlane.f32.xlu1 %v10015_v22  ;;  %4180 = vmax.xlane.f32.xlu0 %v10016_v42  ;;  %v9796_v28 = vmax.f32 %v8288_v34, 0.0  ;;  %v10022_v22 = vmax.f32 %v7874_v52, 0.0  ;;  %v10023_v42 = vld [vmem:[#allocation32_spill] sm:$0xff]  ;;  %v10029_v52 = vmax.f32 %v7886_v46, 0.0  ;;  %v10035_v46 = vmax.f32 %v7938_v58, 0.0 }
 0x622   : > { %v5527_v23 = vpack.c.bf16 %v9795_v18, %v9798_v31  ;;  %v10024_v18 = vmax.f32 %v10023_v42, 0.0  ;;  %v10036_v42 = vld [vmem:[#allocation37_spill] sm:$0xff]  ;;  %v10042_v58 = vmax.f32 %v7950_v51, 0.0  ;;  %v10049_v51 = vmax.f32 %v8002_v56, 0.0 }
 0x623   : > { %v5522_v24 = vpack.c.bf16 %v9796_v28, %v9797_v26  ;;  %v10056_v56 = vmax.f32 %v8014_v63, 0.0  ;;  %v10063_v63 = vmax.f32 %v8062_v2, 0.0  ;;  %v10068_v4 = vmax.f32 %v8065_v62, 0.0 }
 0x624   : > { %5711 = vst [vmem:[%s7393_s24 + $0x108] sm:$0xff] %v5527_v23   ;;  %v10070_v2 = vmax.f32 %v8074_v7, 0.0  ;;  %v10075_v62 = vmax.f32 %v8077_v25, 0.0  ;;  %v10078_v7 = vmax.f32 %v8124_v36, 0.0  ;;  %v10082_v25 = vmax.f32 %v8126_v17, 0.0 }
 0x625   : > { %4050 = vmax.xlane.f32.xlu1 %v10017_v61  ;;  %4056 = vmax.xlane.f32.xlu0 %v10018_v44  ;;  %5710 = vst [vmem:[%s7393_s24 + $0x100] sm:$0xff] %v5522_v24   ;;  %v10027_v24 = vmax.f32 %v7837_v37, 0.0  ;;  %v10030_v44 = vmax.f32 %v7892_v33, 0.0  ;;  %v10033_v37 = vmax.f32 %v10032_v30, 0.0  ;;  %v10037_v33 = vmax.f32 %v10036_v42, 0.0  ;;  %v10047_v42 = vld [vmem:[#allocation35_spill] sm:$0xff] }
 0x626   : > { %v10043_v30 = vmax.f32 %v7956_v60, 0.0  ;;  %v10084_v36 = vmax.f32 %v8135_v41, 0.0  ;;  %v10089_v17 = vmax.f32 %v8138_v39, 0.0  ;;  %v10092_v41 = vmax.f32 %v8182_v21, 0.0 }
 0x627   : > { %v10096_v39 = vmax.f32 %v8193_v55, 0.0  ;;  %v10099_v21 = vmax.f32 %v8195_v15, 0.0  ;;  %v10103_v55 = vmax.f32 %v8239_v5, 0.0  ;;  %v10105_v15 = vmax.f32 %v8248_v10, 0.0 }
 0x628   : > { %v10109_v5 = vmax.f32 %v8274_v43, 0.0  ;;  %v10111_v10 = vmax.f32 %v8282_v3, 0.0  ;;  %v10115_v43 = vmax.f32 %v8184_v59, 0.0  ;;  %v10117_v3 = vmax.f32 %v8288_v34, 0.0 }
 0x629   : > { %4186 = vmax.xlane.f32.xlu1 %v10019_v50  ;;  %4192 = vmax.xlane.f32.xlu0 %v10021_v16 }
 0x62d   : > { %4062 = vmax.xlane.f32.xlu1 %v10022_v22  ;;  %4052 = vmax.xlane.f32.xlu0 %v10024_v18  ;;  %v8320_v23 = vpop.xlane.xlu1 %4126  ;;  %v8322_v38 = vpop.xlane.xlu0 %3990 }
 0x62e   : > { %10025 = vst [vmem:[#allocation42_spill] sm:$0xff] %v8320_v23  ;;  %4249 = vst.msk [vmem:[%s6994_s3 + $0x10] sm:$0xff] (!%p5223_p13), %vm4246_vm2, %v8322_v38 }
 0x631   : > { %4198 = vmax.xlane.f32.xlu1 %v10026_v48  ;;  %4188 = vmax.xlane.f32.xlu0 %v10027_v24  ;;  %v8328_v53 = vpop.xlane.xlu1 %4122  ;;  %v8330_v61 = vpop.xlane.xlu0 %3986 }
 0x632   : > { %10028 = vst [vmem:[#allocation80_spill] sm:$0xff] %v8328_v53  ;;  %4247 = vst.msk [vmem:[%s6994_s3] sm:$0xff] (!%p5223_p13), %vm4246_vm2, %v8330_v61 }
 0x635   : > { %4058 = vmax.xlane.f32.xlu1 %v10029_v52  ;;  %4064 = vmax.xlane.f32.xlu0 %v10030_v44  ;;  %v8336_v18 = vpop.xlane.xlu1 %3988  ;;  %v8338_v50 = vpop.xlane.xlu0 %3992  ;;  %v10041_v52 = vmax.f32 %v7901_v9, 0.0  ;;  %v10048_v9 = vmax.f32 %v10047_v42, 0.0 }
 0x636   : > { %4248 = vst.msk [vmem:[%s6994_s3 + $0x8] sm:$0xff] (!%p5223_p13), %vm4246_vm2, %v8336_v18  ;;  %4250 = vst.msk [vmem:[%s6994_s3 + $0x18] sm:$0xff] (!%p5223_p13), %vm4246_vm2, %v8338_v50 }
 0x639   : > { %4194 = vmax.xlane.f32.xlu1 %v10031_v19  ;;  %4200 = vmax.xlane.f32.xlu0 %v10033_v37  ;;  %v8344_v16 = vpop.xlane.xlu1 %3998  ;;  %v8346_v22 = vpop.xlane.xlu0 %4128 }
 0x63a   : > { %10034 = vst [vmem:[#allocation47_spill] sm:$0xff] %v8346_v22  ;;  %4253 = vst.msk [vmem:[%s6994_s3 + $0x30] sm:$0xff] (!%p5223_p13), %vm4246_vm2, %v8344_v16 }
 0x63d   : > { %4070 = vmax.xlane.f32.xlu1 %v10035_v46  ;;  %4060 = vmax.xlane.f32.xlu0 %v10037_v33  ;;  %v8352_v48 = vpop.xlane.xlu1 %4134  ;;  %v8354_v24 = vpop.xlane.xlu0 %4124 }
 0x63e   : > { %10038 = vst [vmem:[#allocation45_spill] sm:$0xff] %v8352_v48  ;;  %10039 = vst [vmem:[#allocation46_spill] sm:$0xff] %v8354_v24 }
 0x641   : > { %4206 = vmax.xlane.f32.xlu1 %v10040_v54  ;;  %4196 = vmax.xlane.f32.xlu0 %v10041_v52  ;;  %v8360_v44 = vpop.xlane.xlu1 %3994  ;;  %v8362_v19 = vpop.xlane.xlu0 %4000  ;;  %v10050_v52 = vld [vmem:[#allocation36_spill] sm:$0xff] }
 0x642   : > { %v10051_v60 = vmax.f32 %v10050_v52, 0.0  ;;  %4251 = vst.msk [vmem:[%s6994_s3 + $0x20] sm:$0xff] (!%p5223_p13), %vm4246_vm2, %v8360_v44  ;;  %4254 = vst.msk [vmem:[%s6994_s3 + $0x38] sm:$0xff] (!%p5223_p13), %vm4246_vm2, %v8362_v19 }
 0x645   : > { %4066 = vmax.xlane.f32.xlu1 %v10042_v58  ;;  %4072 = vmax.xlane.f32.xlu0 %v10043_v30  ;;  %v8368_v37 = vpop.xlane.xlu1 %4130  ;;  %v8370_v46 = vpop.xlane.xlu0 %4136 }
 0x646   : > { %10044 = vst [vmem:[#allocation44_spill] sm:$0xff] %v8368_v37  ;;  %10045 = vst [vmem:[#allocation51_spill] sm:$0xff] %v8370_v46 }
 0x649   : > { %4202 = vmax.xlane.f32.xlu1 %v10046_v57  ;;  %4208 = vmax.xlane.f32.xlu0 %v10048_v9  ;;  %v8376_v33 = vpop.xlane.xlu1 %4006  ;;  %v8378_v54 = vpop.xlane.xlu0 %3996  ;;  %v10055_v57 = vmax.f32 %v7965_v32, 0.0 }
 0x64a   : > { %4252 = vst.msk [vmem:[%s6994_s3 + $0x28] sm:$0xff] (!%p5223_p13), %vm4246_vm2, %v8378_v54  ;;  %4257 = vst.msk [vmem:[%s6994_s3 + $0x50] sm:$0xff] (!%p5223_p13), %vm4246_vm2, %v8376_v33 }
 0x64d   : > { %4078 = vmax.xlane.f32.xlu1 %v10049_v51  ;;  %4068 = vmax.xlane.f32.xlu0 %v10051_v60  ;;  %v8384_v58 = vpop.xlane.xlu1 %4142  ;;  %v8386_v30 = vpop.xlane.xlu0 %4132  ;;  %v10057_v51 = vmax.f32 %v8020_v35, 0.0 }
 0x64e   : > { %10052 = vst [vmem:[#allocation49_spill] sm:$0xff] %v8384_v58  ;;  %10053 = vst [vmem:[#allocation50_spill] sm:$0xff] %v8386_v30 }
 0x651   : > { %4214 = vmax.xlane.f32.xlu1 %v10054_v14  ;;  %4204 = vmax.xlane.f32.xlu0 %v10055_v57  ;;  %v8392_v42 = vpop.xlane.xlu1 %4002  ;;  %v8394_v9 = vpop.xlane.xlu0 %4008  ;;  %v10061_v14 = vld [vmem:[#allocation34_spill] sm:$0xff] }
 0x652   : > { %v10062_v32 = vmax.f32 %v10061_v14, 0.0  ;;  %4255 = vst.msk [vmem:[%s6994_s3 + $0x40] sm:$0xff] (!%p5223_p13), %vm4246_vm2, %v8392_v42  ;;  %4258 = vst.msk [vmem:[%s6994_s3 + $0x58] sm:$0xff] (!%p5223_p13), %vm4246_vm2, %v8394_v9 }
 0x655   : > { %4074 = vmax.xlane.f32.xlu1 %v10056_v56  ;;  %4080 = vmax.xlane.f32.xlu0 %v10057_v51  ;;  %v8400_v52 = vpop.xlane.xlu1 %4138  ;;  %v8402_v60 = vpop.xlane.xlu0 %4144  ;;  %v10064_v56 = vld [vmem:[#allocation41_spill] sm:$0xff] }
 0x656   : > { %10058 = vst [vmem:[#allocation48_spill] sm:$0xff] %v8400_v52  ;;  %10059 = vst [vmem:[#allocation55_spill] sm:$0xff] %v8402_v60  ;;  %v10065_v35 = vmax.f32 %v10064_v56, 0.0 }
 0x659   : > { %4210 = vmax.xlane.f32.xlu1 %v10060_v29  ;;  %4216 = vmax.xlane.f32.xlu0 %v10062_v32  ;;  %v8408_v57 = vpop.xlane.xlu1 %4014  ;;  %v10069_v29 = vmax.f32 %v8029_v6, 0.0 }
 0x65a   : > { %v8410_v28 = vpop.xlane.xlu0 %4004  ;;  %4261 = vst.msk [vmem:[%s6994_s3 + $0x70] sm:$0xff] (!%p5223_p13), %vm4246_vm2, %v8408_v57 }
 0x65b   : > { %4256 = vst.msk [vmem:[%s6994_s3 + $0x48] sm:$0xff] (!%p5223_p13), %vm4246_vm2, %v8410_v28 }
 0x65d   : > { %4086 = vmax.xlane.f32.xlu1 %v10063_v63  ;;  %4076 = vmax.xlane.f32.xlu0 %v10065_v35  ;;  %v10071_v63 = vld [vmem:[#allocation39_spill] sm:$0xff] }
 0x65e   : > { %v8416_v51 = vpop.xlane.xlu1 %4150  ;;  %v8418_v26 = vpop.xlane.xlu0 %4140  ;;  %v10072_v56 = vmax.f32 %v10071_v63, 0.0 }
 0x65f   : > { %10066 = vst [vmem:[#allocation53_spill] sm:$0xff] %v8416_v51  ;;  %10067 = vst [vmem:[#allocation54_spill] sm:$0xff] %v8418_v26 }
 0x661   : > { %4222 = vmax.xlane.f32.xlu1 %v10068_v4  ;;  %4212 = vmax.xlane.f32.xlu0 %v10069_v29  ;;  %v10076_v4 = vld [vmem:[#allocation40_spill] sm:$0xff] }
 0x662   : > { %v8424_v14 = vpop.xlane.xlu1 %4010  ;;  %v8426_v32 = vpop.xlane.xlu0 %4016  ;;  %v10077_v6 = vmax.f32 %v10076_v4, 0.0 }
 0x663   : > { %4259 = vst.msk [vmem:[%s6994_s3 + $0x60] sm:$0xff] (!%p5223_p13), %vm4246_vm2, %v8424_v14  ;;  %4262 = vst.msk [vmem:[%s6994_s3 + $0x78] sm:$0xff] (!%p5223_p13), %vm4246_vm2, %v8426_v32 }
 0x665   : > { %4082 = vmax.xlane.f32.xlu1 %v10070_v2  ;;  %4088 = vmax.xlane.f32.xlu0 %v10072_v56  ;;  %v10079_v2 = vmax.f32 %v8086_v1, 0.0 }
 0x666   : > { %v8432_v35 = vpop.xlane.xlu1 %4146  ;;  %v8434_v31 = vpop.xlane.xlu0 %4152 }
 0x667   : > { %10073 = vst [vmem:[#allocation52_spill] sm:$0xff] %v8432_v35  ;;  %10074 = vst [vmem:[#allocation59_spill] sm:$0xff] %v8434_v31 }
 0x669   : > { %4218 = vmax.xlane.f32.xlu1 %v10075_v62  ;;  %4224 = vmax.xlane.f32.xlu0 %v10077_v6  ;;  %v10083_v62 = vmax.f32 %v8089_v8, 0.0 }
 0x66a   : > { %v8440_v29 = vpop.xlane.xlu1 %4022  ;;  %v8442_v49 = vpop.xlane.xlu0 %4012 }
 0x66b   : > { %4260 = vst.msk [vmem:[%s6994_s3 + $0x68] sm:$0xff] (!%p5223_p13), %vm4246_vm2, %v8442_v49  ;;  %4265 = vst.msk [vmem:[%s6994_s3 + $0x90] sm:$0xff] (!%p5223_p13), %vm4246_vm2, %v8440_v29 }
 0x66d   : > { %4094 = vmax.xlane.f32.xlu1 %v10078_v7  ;;  %4084 = vmax.xlane.f32.xlu0 %v10079_v2  ;;  %v10085_v7 = vld [vmem:[#allocation38_spill] sm:$0xff] }
 0x66e   : > { %v8448_v63 = vpop.xlane.xlu1 %4158  ;;  %v8450_v56 = vpop.xlane.xlu0 %4148  ;;  %v10086_v1 = vmax.f32 %v10085_v7, 0.0 }
 0x66f   : > { %10080 = vst [vmem:[#allocation57_spill] sm:$0xff] %v8448_v63  ;;  %10081 = vst [vmem:[#allocation58_spill] sm:$0xff] %v8450_v56 }
 0x671   : > { %4230 = vmax.xlane.f32.xlu1 %v10082_v25  ;;  %4220 = vmax.xlane.f32.xlu0 %v10083_v62  ;;  %v10090_v25 = vld [vmem:[#allocation43_spill] sm:$0xff] }
 0x672   : > { %v8456_v4 = vpop.xlane.xlu1 %4018  ;;  %v8458_v6 = vpop.xlane.xlu0 %4024  ;;  %v10091_v8 = vmax.f32 %v10090_v25, 0.0 }
 0x673   : > { %4263 = vst.msk [vmem:[%s6994_s3 + $0x80] sm:$0xff] (!%p5223_p13), %vm4246_vm2, %v8456_v4  ;;  %4266 = vst.msk [vmem:[%s6994_s3 + $0x98] sm:$0xff] (!%p5223_p13), %vm4246_vm2, %v8458_v6 }
 0x675   : > { %4090 = vmax.xlane.f32.xlu1 %v10084_v36  ;;  %4096 = vmax.xlane.f32.xlu0 %v10086_v1  ;;  %v10093_v36 = vmax.f32 %v8146_v27, 0.0  ;;  %v10100_v27 = vmax.f32 %v8198_v47, 0.0  ;;  %v10106_v47 = vmax.f32 %v8206_v0, 0.0  ;;  %v10112_v0 = vmax.f32 %v8254_v11, 0.0 }
 0x676   : > { %v8464_v2 = vpop.xlane.xlu1 %4154  ;;  %v8466_v13 = vpop.xlane.xlu0 %4160 }
 0x677   : > { %10087 = vst [vmem:[#allocation56_spill] sm:$0xff] %v8464_v2  ;;  %10088 = vst [vmem:[#allocation63_spill] sm:$0xff] %v8466_v13 }
 0x679   : > { %4226 = vmax.xlane.f32.xlu1 %v10089_v17  ;;  %4232 = vmax.xlane.f32.xlu0 %v10091_v8  ;;  %v10097_v17 = vld [vmem:[#allocation81_spill] sm:$0xff] }
 0x67a   : > { %v8472_v62 = vpop.xlane.xlu1 %4030  ;;  %v8474_v63 = vpop.xlane.xlu0 %4020  ;;  %v10098_v25 = vmax.f32 %v10097_v17, 0.0 }
 0x67b   : > { %4264 = vst.msk [vmem:[%s6994_s3 + $0x88] sm:$0xff] (!%p5223_p13), %vm4246_vm2, %v8474_v63  ;;  %4269 = vst.msk [vmem:[%s6994_s3 + $0xb0] sm:$0xff] (!%p5223_p13), %vm4246_vm2, %v8472_v62 }
 0x67d   : > { %4102 = vmax.xlane.f32.xlu1 %v10092_v41  ;;  %4092 = vmax.xlane.f32.xlu0 %v10093_v36 }
 0x67e   : > { %v8480_v7 = vpop.xlane.xlu1 %4166  ;;  %v8482_v1 = vpop.xlane.xlu0 %4156 }
 0x67f   : > { %10094 = vst [vmem:[#allocation61_spill] sm:$0xff] %v8480_v7  ;;  %10095 = vst [vmem:[#allocation62_spill] sm:$0xff] %v8482_v1 }
 0x681   : > { %4098 = vmax.xlane.f32.xlu1 %v10096_v39  ;;  %4228 = vmax.xlane.f32.xlu0 %v10098_v25  ;;  %v10104_v39 = vmax.f32 %v8203_v12, 0.0  ;;  %v10110_v12 = vmax.f32 %v8251_v45, 0.0  ;;  %v10116_v45 = vmax.f32 %v8285_v20, 0.0 }
 0x682   : > { %v8488_v8 = vpop.xlane.xlu1 %4026  ;;  %v8490_v13 = vpop.xlane.xlu0 %4032 }
 0x683   : > { %4267 = vst.msk [vmem:[%s6994_s3 + $0xa0] sm:$0xff] (!%p5223_p13), %vm4246_vm2, %v8488_v8  ;;  %4270 = vst.msk [vmem:[%s6994_s3 + $0xb8] sm:$0xff] (!%p5223_p13), %vm4246_vm2, %v8490_v13 }
 0x685   : > { %4234 = vmax.xlane.f32.xlu1 %v10099_v21  ;;  %4104 = vmax.xlane.f32.xlu0 %v10100_v27 }
 0x686   : > { %v8496_v41 = vpop.xlane.xlu1 %4162  ;;  %v8498_v36 = vpop.xlane.xlu0 %4168 }
 0x687   : > { %10101 = vst [vmem:[#allocation60_spill] sm:$0xff] %v8496_v41  ;;  %10102 = vst [vmem:[#allocation67_spill] sm:$0xff] %v8498_v36 }
 0x689   : > { %4110 = vmax.xlane.f32.xlu1 %v10103_v55  ;;  %4100 = vmax.xlane.f32.xlu0 %v10104_v39 }
 0x68a   : > { %v8504_v17 = vpop.xlane.xlu1 %4038  ;;  %v8506_v25 = vpop.xlane.xlu0 %4028 }
 0x68b   : > { %4268 = vst.msk [vmem:[%s6994_s3 + $0xa8] sm:$0xff] (!%p5223_p13), %vm4246_vm2, %v8506_v25  ;;  %4273 = vst.msk [vmem:[%s6994_s3 + $0xd0] sm:$0xff] (!%p5223_p13), %vm4246_vm2, %v8504_v17 }
 0x68d   : > { %4106 = vmax.xlane.f32.xlu1 %v10105_v15  ;;  %4236 = vmax.xlane.f32.xlu0 %v10106_v47 }
 0x68e   : > { %v8512_v21 = vpop.xlane.xlu1 %4174  ;;  %v8514_v27 = vpop.xlane.xlu0 %4164 }
 0x68f   : > { %10107 = vst [vmem:[#allocation65_spill] sm:$0xff] %v8512_v21  ;;  %10108 = vst [vmem:[#allocation66_spill] sm:$0xff] %v8514_v27 }
 0x691   : > { %4118 = vmax.xlane.f32.xlu1 %v10109_v5  ;;  %4112 = vmax.xlane.f32.xlu0 %v10110_v12 }
 0x692   : > { %v8520_v55 = vpop.xlane.xlu1 %4034  ;;  %v8522_v39 = vpop.xlane.xlu0 %4040 }
 0x693   : > { %4271 = vst.msk [vmem:[%s6994_s3 + $0xc0] sm:$0xff] (!%p5223_p13), %vm4246_vm2, %v8520_v55  ;;  %4274 = vst.msk [vmem:[%s6994_s3 + $0xd8] sm:$0xff] (!%p5223_p13), %vm4246_vm2, %v8522_v39 }
 0x695   : > { %4114 = vmax.xlane.f32.xlu1 %v10111_v10  ;;  %4108 = vmax.xlane.f32.xlu0 %v10112_v0  ;;  %v10120_v0 = vmax.f32 %v8200_v40, 0.0 }
 0x696   : > { %v8528_v15 = vpop.xlane.xlu1 %4170  ;;  %v8530_v47 = vpop.xlane.xlu0 %4176 }
 0x697   : > { %10113 = vst [vmem:[#allocation64_spill] sm:$0xff] %v8528_v15  ;;  %10114 = vst [vmem:[#allocation71_spill] sm:$0xff] %v8530_v47 }
 0x699   : > { %4238 = vmax.xlane.f32.xlu1 %v10115_v43  ;;  %4120 = vmax.xlane.f32.xlu0 %v10116_v45 }
 0x69a   : > { %v8536_v5 = vpop.xlane.xlu1 %4046  ;;  %v8538_v12 = vpop.xlane.xlu0 %4036 }
 0x69b   : > { %4272 = vst.msk [vmem:[%s6994_s3 + $0xc8] sm:$0xff] (!%p5223_p13), %vm4246_vm2, %v8538_v12  ;;  %4277 = vst.msk [vmem:[%s6994_s3 + $0xf0] sm:$0xff] (!%p5223_p13), %vm4246_vm2, %v8536_v5 }
 0x69d   : > { %4116 = vmax.xlane.f32.xlu0 %v10117_v3 }
 0x69e   : > { %v8542_v10 = vpop.xlane.xlu1 %4182  ;;  %v8544_v11 = vpop.xlane.xlu0 %4172 }
 0x69f   : > { %10118 = vst [vmem:[#allocation69_spill] sm:$0xff] %v8542_v10  ;;  %10119 = vst [vmem:[#allocation70_spill] sm:$0xff] %v8544_v11 }
 0x6a1   : > { %4240 = vmax.xlane.f32.xlu0 %v10120_v0 }
 0x6a2   : > { %v8548_v47 = vpop.xlane.xlu1 %4042  ;;  %v8550_v59 = vpop.xlane.xlu0 %4048 }
 0x6a3   : > { %4275 = vst.msk [vmem:[%s6994_s3 + $0xe0] sm:$0xff] (!%p5223_p13), %vm4246_vm2, %v8548_v47  ;;  %4278 = vst.msk [vmem:[%s6994_s3 + $0xf8] sm:$0xff] (!%p5223_p13), %vm4246_vm2, %v8550_v59 }
 0x6a6   : > { %v8552_v20 = vpop.xlane.xlu1 %4178  ;;  %v8554_v43 = vpop.xlane.xlu0 %4184 }
 0x6a7   : > { %10121 = vst [vmem:[#allocation68_spill] sm:$0xff] %v8552_v20  ;;  %10122 = vst [vmem:[#allocation75_spill] sm:$0xff] %v8554_v43 }
 0x6aa   : > { %v8556_v45 = vpop.xlane.xlu1 %4054  ;;  %v8558_v21 = vpop.xlane.xlu0 %4044 }
 0x6ab   : > { %4276 = vst.msk [vmem:[%s6994_s3 + $0xe8] sm:$0xff] (!%p5223_p13), %vm4246_vm2, %v8558_v21  ;;  %4281 = vst.msk [vmem:[%s6994_s3 + $0x110] sm:$0xff] (!%p5223_p13), %vm4246_vm2, %v8556_v45 }
 0x6ae   : > { %v8560_v34 = vpop.xlane.xlu1 %4190  ;;  %v8562_v3 = vpop.xlane.xlu0 %4180 }
 0x6af   : > { %10123 = vst [vmem:[#allocation73_spill] sm:$0xff] %v8560_v34  ;;  %10124 = vst [vmem:[#allocation74_spill] sm:$0xff] %v8562_v3 }
 0x6b2   : > { %v8564_v10 = vpop.xlane.xlu1 %4050  ;;  %v8566_v40 = vpop.xlane.xlu0 %4056 }
 0x6b3   : > { %4279 = vst.msk [vmem:[%s6994_s3 + $0x100] sm:$0xff] (!%p5223_p13), %vm4246_vm2, %v8564_v10  ;;  %4282 = vst.msk [vmem:[%s6994_s3 + $0x118] sm:$0xff] (!%p5223_p13), %vm4246_vm2, %v8566_v40 }
 0x6b6   : > { %v8568_v0 = vpop.xlane.xlu1 %4186  ;;  %v8570_v11 = vpop.xlane.xlu0 %4192 }
 0x6b7   : > { %10125 = vst [vmem:[#allocation72_spill] sm:$0xff] %v8568_v0  ;;  %10126 = vst [vmem:[#allocation29_spill] sm:$0xff] %v8570_v11 }
 0x6ba   : > { %v8572_v15 = vpop.xlane.xlu1 %4062  ;;  %v8574_v20 = vpop.xlane.xlu0 %4052 }
 0x6bb   : > { %4280 = vst.msk [vmem:[%s6994_s3 + $0x108] sm:$0xff] (!%p5223_p13), %vm4246_vm2, %v8574_v20  ;;  %4285 = vst.msk [vmem:[%s6994_s3 + $0x130] sm:$0xff] (!%p5223_p13), %vm4246_vm2, %v8572_v15 }
 0x6be   : > { %v8576_v43 = vpop.xlane.xlu1 %4198  ;;  %v8578_v36 = vpop.xlane.xlu0 %4188 }
 0x6bf   : > { %10127 = vst [vmem:[#allocation79_spill] sm:$0xff] %v8576_v43  ;;  %10128 = vst [vmem:[#allocation33_spill] sm:$0xff] %v8578_v36 }
 0x6c2   : > { %v8580_v7 = vpop.xlane.xlu1 %4058  ;;  %v8582_v34 = vpop.xlane.xlu0 %4064 }
 0x6c3   : > { %4283 = vst.msk [vmem:[%s6994_s3 + $0x120] sm:$0xff] (!%p5223_p13), %vm4246_vm2, %v8580_v7  ;;  %4286 = vst.msk [vmem:[%s6994_s3 + $0x138] sm:$0xff] (!%p5223_p13), %vm4246_vm2, %v8582_v34 }
 0x6c6   : > { %v8584_v3 = vpop.xlane.xlu1 %4194  ;;  %v8586_v27 = vpop.xlane.xlu0 %4200 }
 0x6c7   : > { %10129 = vst [vmem:[#allocation77_spill] sm:$0xff] %v8584_v3  ;;  %10130 = vst [vmem:[#allocation78_spill] sm:$0xff] %v8586_v27 }
 0x6ca   : > { %v8588_v41 = vpop.xlane.xlu1 %4070  ;;  %v8590_v0 = vpop.xlane.xlu0 %4060 }
 0x6cb   : > { %4284 = vst.msk [vmem:[%s6994_s3 + $0x128] sm:$0xff] (!%p5223_p13), %vm4246_vm2, %v8590_v0  ;;  %4289 = vst.msk [vmem:[%s6994_s3 + $0x150] sm:$0xff] (!%p5223_p13), %vm4246_vm2, %v8588_v41 }
 0x6ce   : > { %v8592_v11 = vpop.xlane.xlu1 %4206  ;;  %v8594_v1 = vpop.xlane.xlu0 %4196 }
 0x6cf   : > { %10131 = vst [vmem:[#allocation76_spill] sm:$0xff] %v8592_v11  ;;  %10132 = vst [vmem:[#allocation31_spill] sm:$0xff] %v8594_v1 }
 0x6d2   : > { %v8596_v2 = vpop.xlane.xlu1 %4066  ;;  %v8598_v43 = vpop.xlane.xlu0 %4072 }
 0x6d3   : > { %4287 = vst.msk [vmem:[%s6994_s3 + $0x140] sm:$0xff] (!%p5223_p13), %vm4246_vm2, %v8596_v2  ;;  %4290 = vst.msk [vmem:[%s6994_s3 + $0x158] sm:$0xff] (!%p5223_p13), %vm4246_vm2, %v8598_v43 }
 0x6d6   : > { %v8600_v36 = vpop.xlane.xlu1 %4202  ;;  %v8602_v31 = vpop.xlane.xlu0 %4208 }
 0x6d7   : > { %10133 = vst [vmem:[#allocation32_spill] sm:$0xff] %v8600_v36  ;;  %10134 = vst [vmem:[#allocation30_spill] sm:$0xff] %v8602_v31 }
 0x6da   : > { %v8604_v51 = vpop.xlane.xlu1 %4078  ;;  %v8606_v3 = vpop.xlane.xlu0 %4068 }
 0x6db   : > { %4288 = vst.msk [vmem:[%s6994_s3 + $0x148] sm:$0xff] (!%p5223_p13), %vm4246_vm2, %v8606_v3  ;;  %4293 = vst.msk [vmem:[%s6994_s3 + $0x170] sm:$0xff] (!%p5223_p13), %vm4246_vm2, %v8604_v51 }
 0x6de   : > { %v8608_v27 = vpop.xlane.xlu1 %4214  ;;  %v8610_v56 = vpop.xlane.xlu0 %4204 }
 0x6df   : > { %10135 = vst [vmem:[#allocation37_spill] sm:$0xff] %v8608_v27  ;;  %10136 = vst [vmem:[#allocation35_spill] sm:$0xff] %v8610_v56 }
 0x6e2   : > { %v8612_v35 = vpop.xlane.xlu1 %4074  ;;  %v8614_v11 = vpop.xlane.xlu0 %4080 }
 0x6e3   : > { %10137 = vst [vmem:[#allocation36_spill] sm:$0xff] %v8614_v11  ;;  %4291 = vst.msk [vmem:[%s6994_s3 + $0x160] sm:$0xff] (!%p5223_p13), %vm4246_vm2, %v8612_v35 }
 0x6e4   : > { %4294 = vst.msk [vmem:[%s6994_s3 + $0x178] sm:$0xff] (!%p5223_p13), %vm4246_vm2, %v8614_v11 }
 0x6e6   : > { %v8616_v1 = vpop.xlane.xlu1 %4210  ;;  %v8618_v60 = vpop.xlane.xlu0 %4216 }
 0x6e7   : > { %10138 = vst [vmem:[#allocation34_spill] sm:$0xff] %v8616_v1  ;;  %10139 = vst [vmem:[#allocation41_spill] sm:$0xff] %v8618_v60 }
 0x6ea   : > { %v8620_v58 = vpop.xlane.xlu1 %4086  ;;  %v8622_v36 = vpop.xlane.xlu0 %4076 }
 0x6eb   : > { %10140 = vst [vmem:[#allocation39_spill] sm:$0xff] %v8620_v58  ;;  %4292 = vst.msk [vmem:[%s6994_s3 + $0x168] sm:$0xff] (!%p5223_p13), %vm4246_vm2, %v8622_v36 }
 0x6ec   : > { %4297 = vst.msk [vmem:[%s6994_s3 + $0x190] sm:$0xff] (!%p5223_p13), %vm4246_vm2, %v8620_v58 }
 0x6ee   : > { %v8624_v31 = vpop.xlane.xlu1 %4222  ;;  %v8626_v26 = vpop.xlane.xlu0 %4212 }
 0x6ef   : > { %10141 = vst [vmem:[#allocation40_spill] sm:$0xff] %v8624_v31  ;;  %10142 = vst [vmem:[#allocation38_spill] sm:$0xff] %v8626_v26 }
 0x6f2   : > { %v8628_v52 = vpop.xlane.xlu1 %4082  ;;  %v8630_v27 = vpop.xlane.xlu0 %4088 }
 0x6f3   : > { %10143 = vst [vmem:[#allocation43_spill] sm:$0xff] %v8628_v52  ;;  %4295 = vst.msk [vmem:[%s6994_s3 + $0x180] sm:$0xff] (!%p5223_p13), %vm4246_vm2, %v8628_v52 }
 0x6f4   : > { %4298 = vst.msk [vmem:[%s6994_s3 + $0x198] sm:$0xff] (!%p5223_p13), %vm4246_vm2, %v8630_v27 }
 0x6f6   : > { %v8632_v56 = vpop.xlane.xlu1 %4218  ;;  %v8634_v46 = vpop.xlane.xlu0 %4224 }
 0x6f7   : > { %10144 = vst [vmem:[#allocation81_spill] sm:$0xff] %v8632_v56  ;;  %10145 = vst [vmem:[#allocation82_spill] sm:$0xff] %v8634_v46 }
 0x6fa   : > { %v8636_v48 = vpop.xlane.xlu1 %4094  ;;  %v8638_v1 = vpop.xlane.xlu0 %4084 }
 0x6fb   : > { %10146 = vst [vmem:[#allocation83_spill] sm:$0xff] %v8636_v48  ;;  %10147 = vst [vmem:[#allocation84_spill] sm:$0xff] %v8638_v1 }
 0x6fc   : > { %4296 = vst.msk [vmem:[%s6994_s3 + $0x188] sm:$0xff] (!%p5223_p13), %vm4246_vm2, %v8638_v1 }
 0x6fe   : > { %v8640_v60 = vpop.xlane.xlu1 %4230  ;;  %v8642_v30 = vpop.xlane.xlu0 %4220 }
 0x6ff   : > { %10148 = vst [vmem:[#allocation85_spill] sm:$0xff] %v8640_v60  ;;  %10149 = vst [vmem:[#allocation86_spill] sm:$0xff] %v8642_v30 }
 0x702   : > { %v8644_v37 = vpop.xlane.xlu1 %4090  ;;  %v8646_v31 = vpop.xlane.xlu0 %4096  ;;  %v10170_v52 = vld [vmem:[#allocation83_spill] sm:$0xff] (!%p5223_p13) }
 0x703   : > { %10150 = vst [vmem:[#allocation87_spill] sm:$0xff] %v8644_v37  ;;  %10151 = vst [vmem:[#allocation88_spill] sm:$0xff] %v8646_v31 }
 0x704   : > { %4299 = vst.msk [vmem:[%s6994_s3 + $0x1a0] sm:$0xff] (!%p5223_p13), %vm4246_vm2, %v8644_v37  ;;  %4301 = vst.msk [vmem:[%s6994_s3 + $0x1b0] sm:$0xff] (!%p5223_p13), %vm4246_vm2, %v10170_v52  ;;  %v10177_v52 = vld [vmem:[#allocation46_spill] sm:$0xff] (!%p5223_p13) }
 0x705   : > { %4316 = vst.msk [vmem:[%s6994_s3 + $0x228] sm:$0xff] (!%p5223_p13), %vm4246_vm2, %v10177_v52  ;;  %v10183_v52 = vld [vmem:[#allocation51_spill] sm:$0xff] (!%p5223_p13) }
 0x706   : > { %v8648_v26 = vpop.xlane.xlu1 %4226  ;;  %v8650_v22 = vpop.xlane.xlu0 %4232  ;;  %4322 = vst.msk [vmem:[%s6994_s3 + $0x258] sm:$0xff] (!%p5223_p13), %vm4246_vm2, %v10183_v52  ;;  %v10189_v52 = vld [vmem:[#allocation58_spill] sm:$0xff] (!%p5223_p13) }
 0x707   : > { %10152 = vst [vmem:[#allocation89_spill] sm:$0xff] %v8648_v26  ;;  %10153 = vst [vmem:[#allocation90_spill] sm:$0xff] %v8650_v22 }
 0x708   : > { %4328 = vst.msk [vmem:[%s6994_s3 + $0x288] sm:$0xff] (!%p5223_p13), %vm4246_vm2, %v10189_v52  ;;  %v10195_v52 = vld [vmem:[#allocation63_spill] sm:$0xff] (!%p5223_p13) }
 0x709   : > { %4334 = vst.msk [vmem:[%s6994_s3 + $0x2b8] sm:$0xff] (!%p5223_p13), %vm4246_vm2, %v10195_v52  ;;  %v10201_v52 = vld [vmem:[#allocation70_spill] sm:$0xff] (!%p5223_p13) }
 0x70a   : > { %v8652_v23 = vpop.xlane.xlu1 %4102  ;;  %v8654_v56 = vpop.xlane.xlu0 %4092  ;;  %v10171_v1 = vld [vmem:[#allocation88_spill] sm:$0xff] (!%p5223_p13)  ;;  %4340 = vst.msk [vmem:[%s6994_s3 + $0x2e8] sm:$0xff] (!%p5223_p13), %vm4246_vm2, %v10201_v52  ;;  %v10207_v52 = vld [vmem:[#allocation75_spill] sm:$0xff] (!%p5223_p13) }
 0x70b   : > { %10154 = vst [vmem:[#allocation91_spill] sm:$0xff] %v8652_v23  ;;  %10155 = vst [vmem:[#allocation92_spill] sm:$0xff] %v8654_v56 }
 0x70c   : > { %4302 = vst.msk [vmem:[%s6994_s3 + $0x1b8] sm:$0xff] (!%p5223_p13), %vm4246_vm2, %v10171_v1  ;;  %v10178_v1 = vld [vmem:[#allocation42_spill] sm:$0xff] (!%p5223_p13)  ;;  %4346 = vst.msk [vmem:[%s6994_s3 + $0x318] sm:$0xff] (!%p5223_p13), %vm4246_vm2, %v10207_v52  ;;  %v10213_v52 = vld [vmem:[#allocation31_spill] sm:$0xff] (!%p5223_p13) }
 0x70d   : > { %4317 = vst.msk [vmem:[%s6994_s3 + $0x230] sm:$0xff] (!%p5223_p13), %vm4246_vm2, %v10178_v1  ;;  %v10184_v1 = vld [vmem:[#allocation48_spill] sm:$0xff] (!%p5223_p13)  ;;  %4352 = vst.msk [vmem:[%s6994_s3 + $0x348] sm:$0xff] (!%p5223_p13), %vm4246_vm2, %v10213_v52  ;;  %v10219_v52 = vld [vmem:[#allocation30_spill] sm:$0xff] (!%p5223_p13) }
 0x70e   : > { %v8656_v46 = vpop.xlane.xlu1 %4098  ;;  %v8658_v24 = vpop.xlane.xlu0 %4228  ;;  %4323 = vst.msk [vmem:[%s6994_s3 + $0x260] sm:$0xff] (!%p5223_p13), %vm4246_vm2, %v10184_v1  ;;  %v10190_v1 = vld [vmem:[#allocation53_spill] sm:$0xff] (!%p5223_p13)  ;;  %4358 = vst.msk [vmem:[%s6994_s3 + $0x378] sm:$0xff] (!%p5223_p13), %vm4246_vm2, %v10219_v52  ;;  %v10226_v52 = vld [vmem:[#allocation40_spill] sm:$0xff] (!%p5223_p13) }
 0x70f   : > { %10156 = vst [vmem:[#allocation93_spill] sm:$0xff] %v8656_v46  ;;  %10157 = vst [vmem:[#allocation94_spill] sm:$0xff] %v8658_v24 }
 0x710   : > { %4329 = vst.msk [vmem:[%s6994_s3 + $0x290] sm:$0xff] (!%p5223_p13), %vm4246_vm2, %v10190_v1  ;;  %v10196_v1 = vld [vmem:[#allocation60_spill] sm:$0xff] (!%p5223_p13)  ;;  %4365 = vst.msk [vmem:[%s6994_s3 + $0x3b0] sm:$0xff] (!%p5223_p13), %vm4246_vm2, %v10226_v52 }
 0x711   : > { %4335 = vst.msk [vmem:[%s6994_s3 + $0x2c0] sm:$0xff] (!%p5223_p13), %vm4246_vm2, %v10196_v1  ;;  %v10202_v1 = vld [vmem:[#allocation65_spill] sm:$0xff] (!%p5223_p13) }
 0x712   : > { %v8660_v53 = vpop.xlane.xlu1 %4234  ;;  %v8662_v60 = vpop.xlane.xlu0 %4104  ;;  %v10169_v11 = vld [vmem:[#allocation92_spill] sm:$0xff] (!%p5223_p13)  ;;  %v10173_v37 = vld [vmem:[#allocation91_spill] sm:$0xff] (!%p5223_p13)  ;;  %4341 = vst.msk [vmem:[%s6994_s3 + $0x2f0] sm:$0xff] (!%p5223_p13), %vm4246_vm2, %v10202_v1 }
 0x713   : > { %10158 = vst [vmem:[#allocation95_spill] sm:$0xff] %v8660_v53  ;;  %10159 = vst [vmem:[#allocation96_spill] sm:$0xff] %v8662_v60  ;;  %v10208_v1 = vld [vmem:[#allocation72_spill] sm:$0xff] (!%p5223_p13) }
 0x714   : > { %4300 = vst.msk [vmem:[%s6994_s3 + $0x1a8] sm:$0xff] (!%p5223_p13), %vm4246_vm2, %v10169_v11  ;;  %4305 = vst.msk [vmem:[%s6994_s3 + $0x1d0] sm:$0xff] (!%p5223_p13), %vm4246_vm2, %v10173_v37  ;;  %v10176_v37 = vld [vmem:[#allocation80_spill] sm:$0xff] (!%p5223_p13) }
 0x715   : > { %4315 = vst.msk [vmem:[%s6994_s3 + $0x220] sm:$0xff] (!%p5223_p13), %vm4246_vm2, %v10176_v37  ;;  %v10182_v37 = vld [vmem:[#allocation45_spill] sm:$0xff] (!%p5223_p13)  ;;  %4347 = vst.msk [vmem:[%s6994_s3 + $0x320] sm:$0xff] (!%p5223_p13), %vm4246_vm2, %v10208_v1  ;;  %v10214_v1 = vld [vmem:[#allocation79_spill] sm:$0xff] (!%p5223_p13) }
 0x716   : > { %v8664_v30 = vpop.xlane.xlu1 %4110  ;;  %v8666_v48 = vpop.xlane.xlu0 %4100  ;;  %v10172_v58 = vld [vmem:[#allocation93_spill] sm:$0xff] (!%p5223_p13)  ;;  %4321 = vst.msk [vmem:[%s6994_s3 + $0x250] sm:$0xff] (!%p5223_p13), %vm4246_vm2, %v10182_v37  ;;  %v10188_v37 = vld [vmem:[#allocation52_spill] sm:$0xff] (!%p5223_p13)  ;;  %4353 = vst.msk [vmem:[%s6994_s3 + $0x350] sm:$0xff] (!%p5223_p13), %vm4246_vm2, %v10214_v1 }
 0x717   : > { %10160 = vst [vmem:[#allocation97_spill] sm:$0xff] %v8664_v30  ;;  %4303 = vst.msk [vmem:[%s6994_s3 + $0x1c0] sm:$0xff] (!%p5223_p13), %vm4246_vm2, %v10172_v58  ;;  %v10220_v1 = vld [vmem:[#allocation34_spill] sm:$0xff] (!%p5223_p13) }
 0x718   : > { %4304 = vst.msk [vmem:[%s6994_s3 + $0x1c8] sm:$0xff] (!%p5223_p13), %vm4246_vm2, %v8666_v48  ;;  %4327 = vst.msk [vmem:[%s6994_s3 + $0x280] sm:$0xff] (!%p5223_p13), %vm4246_vm2, %v10188_v37  ;;  %v10194_v37 = vld [vmem:[#allocation57_spill] sm:$0xff] (!%p5223_p13) }
 0x719   : > { %4333 = vst.msk [vmem:[%s6994_s3 + $0x2b0] sm:$0xff] (!%p5223_p13), %vm4246_vm2, %v10194_v37  ;;  %v10200_v37 = vld [vmem:[#allocation64_spill] sm:$0xff] (!%p5223_p13)  ;;  %4359 = vst.msk [vmem:[%s6994_s3 + $0x380] sm:$0xff] (!%p5223_p13), %vm4246_vm2, %v10220_v1  ;;  %v10228_v1 = vld [vmem:[#allocation89_spill] sm:$0xff] (!%p5223_p13) }
 0x71a   : > { %v8668_v31 = vpop.xlane.xlu1 %4106  ;;  %v8670_v26 = vpop.xlane.xlu0 %4236  ;;  %v10174_v11 = vld [vmem:[#allocation96_spill] sm:$0xff] (!%p5223_p13)  ;;  %4339 = vst.msk [vmem:[%s6994_s3 + $0x2e0] sm:$0xff] (!%p5223_p13), %vm4246_vm2, %v10200_v37  ;;  %v10206_v37 = vld [vmem:[#allocation69_spill] sm:$0xff] (!%p5223_p13)  ;;  %4367 = vst.msk [vmem:[%s6994_s3 + $0x3c0] sm:$0xff] (!%p5223_p13), %vm4246_vm2, %v10228_v1 }
 0x71b   : > { %10161 = vst [vmem:[#allocation98_spill] sm:$0xff] %v8670_v26  ;;  %4306 = vst.msk [vmem:[%s6994_s3 + $0x1d8] sm:$0xff] (!%p5223_p13), %vm4246_vm2, %v10174_v11  ;;  %v10179_v11 = vld [vmem:[#allocation47_spill] sm:$0xff] (!%p5223_p13) }
 0x71c   : > { %4307 = vst.msk [vmem:[%s6994_s3 + $0x1e0] sm:$0xff] (!%p5223_p13), %vm4246_vm2, %v8668_v31  ;;  %4318 = vst.msk [vmem:[%s6994_s3 + $0x238] sm:$0xff] (!%p5223_p13), %vm4246_vm2, %v10179_v11  ;;  %v10185_v11 = vld [vmem:[#allocation54_spill] sm:$0xff] (!%p5223_p13) }
 0x71d   : > { %4324 = vst.msk [vmem:[%s6994_s3 + $0x268] sm:$0xff] (!%p5223_p13), %vm4246_vm2, %v10185_v11  ;;  %v10191_v11 = vld [vmem:[#allocation59_spill] sm:$0xff] (!%p5223_p13)  ;;  %4345 = vst.msk [vmem:[%s6994_s3 + $0x310] sm:$0xff] (!%p5223_p13), %vm4246_vm2, %v10206_v37  ;;  %v10212_v37 = vld [vmem:[#allocation77_spill] sm:$0xff] (!%p5223_p13) }
 0x71e   : > { %v8672_v22 = vpop.xlane.xlu1 %4118  ;;  %v8674_v23 = vpop.xlane.xlu0 %4112  ;;  %v10175_v58 = vld [vmem:[#allocation97_spill] sm:$0xff] (!%p5223_p13)  ;;  %4330 = vst.msk [vmem:[%s6994_s3 + $0x298] sm:$0xff] (!%p5223_p13), %vm4246_vm2, %v10191_v11  ;;  %v10197_v11 = vld [vmem:[#allocation66_spill] sm:$0xff] (!%p5223_p13)  ;;  %4351 = vst.msk [vmem:[%s6994_s3 + $0x340] sm:$0xff] (!%p5223_p13), %vm4246_vm2, %v10212_v37 }
 0x71f   : > { %10162 = vst [vmem:[#allocation99_spill] sm:$0xff] %v8672_v22  ;;  %4309 = vst.msk [vmem:[%s6994_s3 + $0x1f0] sm:$0xff] (!%p5223_p13), %vm4246_vm2, %v10175_v58  ;;  %v10180_v58 = vld [vmem:[#allocation44_spill] sm:$0xff] (!%p5223_p13) }
 0x720   : > { %4310 = vst.msk [vmem:[%s6994_s3 + $0x1f8] sm:$0xff] (!%p5223_p13), %vm4246_vm2, %v8674_v23  ;;  %4313 = vst.msk [vmem:[%s6994_s3 + $0x210] sm:$0xff] (!%p5223_p13), %vm4246_vm2, %v8672_v22  ;;  %v10218_v37 = vld [vmem:[#allocation76_spill] sm:$0xff] (!%p5223_p13)  ;;  %v10223_v22 = vld [vmem:[#allocation41_spill] sm:$0xff] (!%p5223_p13) }
 0x721   : > { %4319 = vst.msk [vmem:[%s6994_s3 + $0x240] sm:$0xff] (!%p5223_p13), %vm4246_vm2, %v10180_v58  ;;  %v10186_v58 = vld [vmem:[#allocation49_spill] sm:$0xff] (!%p5223_p13)  ;;  %4336 = vst.msk [vmem:[%s6994_s3 + $0x2c8] sm:$0xff] (!%p5223_p13), %vm4246_vm2, %v10197_v11  ;;  %v10203_v11 = vld [vmem:[#allocation71_spill] sm:$0xff] (!%p5223_p13) }
 0x722   : > { %v8676_v56 = vpop.xlane.xlu1 %4114  ;;  %v8678_v46 = vpop.xlane.xlu0 %4108  ;;  %4325 = vst.msk [vmem:[%s6994_s3 + $0x270] sm:$0xff] (!%p5223_p13), %vm4246_vm2, %v10186_v58  ;;  %v10192_v58 = vld [vmem:[#allocation56_spill] sm:$0xff] (!%p5223_p13)  ;;  %4342 = vst.msk [vmem:[%s6994_s3 + $0x2f8] sm:$0xff] (!%p5223_p13), %vm4246_vm2, %v10203_v11  ;;  %v10209_v11 = vld [vmem:[#allocation33_spill] sm:$0xff] (!%p5223_p13) }
 0x723   : > { %10163 = vst [vmem:[#allocation100_spill] sm:$0xff] %v8676_v56  ;;  %4308 = vst.msk [vmem:[%s6994_s3 + $0x1e8] sm:$0xff] (!%p5223_p13), %vm4246_vm2, %v8678_v46 }
 0x724   : > { %4311 = vst.msk [vmem:[%s6994_s3 + $0x200] sm:$0xff] (!%p5223_p13), %vm4246_vm2, %v8676_v56  ;;  %4331 = vst.msk [vmem:[%s6994_s3 + $0x2a0] sm:$0xff] (!%p5223_p13), %vm4246_vm2, %v10192_v58  ;;  %v10198_v58 = vld [vmem:[#allocation61_spill] sm:$0xff] (!%p5223_p13) }
 0x725   : > { %4337 = vst.msk [vmem:[%s6994_s3 + $0x2d0] sm:$0xff] (!%p5223_p13), %vm4246_vm2, %v10198_v58  ;;  %v10204_v58 = vld [vmem:[#allocation68_spill] sm:$0xff] (!%p5223_p13)  ;;  %4348 = vst.msk [vmem:[%s6994_s3 + $0x328] sm:$0xff] (!%p5223_p13), %vm4246_vm2, %v10209_v11  ;;  %v10215_v11 = vld [vmem:[#allocation78_spill] sm:$0xff] (!%p5223_p13) }
 0x726   : > { %v8680_v24 = vpop.xlane.xlu1 %4238  ;;  %v8682_v53 = vpop.xlane.xlu0 %4120  ;;  %4343 = vst.msk [vmem:[%s6994_s3 + $0x300] sm:$0xff] (!%p5223_p13), %vm4246_vm2, %v10204_v58  ;;  %v10210_v58 = vld [vmem:[#allocation73_spill] sm:$0xff] (!%p5223_p13)  ;;  %4354 = vst.msk [vmem:[%s6994_s3 + $0x358] sm:$0xff] (!%p5223_p13), %vm4246_vm2, %v10215_v11  ;;  %v10221_v11 = vld [vmem:[#allocation38_spill] sm:$0xff] (!%p5223_p13) }
 0x727   : > { %10164 = vst [vmem:[#allocation101_spill] sm:$0xff] %v8680_v24  ;;  %10165 = vst [vmem:[#allocation102_spill] sm:$0xff] %v8682_v53 }
 0x728   : > { %4314 = vst.msk [vmem:[%s6994_s3 + $0x218] sm:$0xff] (!%p5223_p13), %vm4246_vm2, %v8682_v53  ;;  %v10181_v53 = vld [vmem:[#allocation50_spill] sm:$0xff] (!%p5223_p13)  ;;  %4349 = vst.msk [vmem:[%s6994_s3 + $0x330] sm:$0xff] (!%p5223_p13), %vm4246_vm2, %v10210_v58  ;;  %v10216_v58 = vld [vmem:[#allocation32_spill] sm:$0xff] (!%p5223_p13) }
 0x729   : > { %4245 = sbr.rel (%p5223_p13) target bundleno = 1846 (0x736), region = 137  ;;  %4320 = vst.msk [vmem:[%s6994_s3 + $0x248] sm:$0xff] (!%p5223_p13), %vm4246_vm2, %v10181_v53  ;;  %v10187_v53 = vld [vmem:[#allocation55_spill] sm:$0xff] (!%p5223_p13)  ;;  %4355 = vst.msk [vmem:[%s6994_s3 + $0x360] sm:$0xff] (!%p5223_p13), %vm4246_vm2, %v10216_v58  ;;  %v10222_v58 = vld [vmem:[#allocation37_spill] sm:$0xff] (!%p5223_p13) }
 0x72a   : > { %v8684_v60 = vpop.xlane.xlu0 %4116  ;;  %4326 = vst.msk [vmem:[%s6994_s3 + $0x278] sm:$0xff] (!%p5223_p13), %vm4246_vm2, %v10187_v53  ;;  %v10193_v53 = vld [vmem:[#allocation62_spill] sm:$0xff] (!%p5223_p13)  ;;  %4357 = vst.msk [vmem:[%s6994_s3 + $0x370] sm:$0xff] (!%p5223_p13), %vm4246_vm2, %v10218_v37 }
 0x72b   : > { %10166 = vst [vmem:[#allocation103_spill] sm:$0xff] %v8684_v60  ;;  %4312 = vst.msk [vmem:[%s6994_s3 + $0x208] sm:$0xff] (!%p5223_p13), %vm4246_vm2, %v8684_v60  ;;  %v10225_v37 = vld [vmem:[#allocation86_spill] sm:$0xff] (!%p5223_p13) }
 0x72c   : > { %4332 = vst.msk [vmem:[%s6994_s3 + $0x2a8] sm:$0xff] (!%p5223_p13), %vm4246_vm2, %v10193_v53  ;;  %v10199_v53 = vld [vmem:[#allocation67_spill] sm:$0xff] (!%p5223_p13)  ;;  %4360 = vst.msk [vmem:[%s6994_s3 + $0x388] sm:$0xff] (!%p5223_p13), %vm4246_vm2, %v10221_v11  ;;  %v10227_v60 = vld [vmem:[#allocation82_spill] sm:$0xff] (!%p5223_p13) }
 0x72d   : > { %4338 = vst.msk [vmem:[%s6994_s3 + $0x2d8] sm:$0xff] (!%p5223_p13), %vm4246_vm2, %v10199_v53  ;;  %v10205_v53 = vld [vmem:[#allocation74_spill] sm:$0xff] (!%p5223_p13)  ;;  %4361 = vst.msk [vmem:[%s6994_s3 + $0x390] sm:$0xff] (!%p5223_p13), %vm4246_vm2, %v10222_v58  ;;  %v10230_v58 = vld [vmem:[#allocation85_spill] sm:$0xff] (!%p5223_p13) }
 0x72e   : > { %v8686_v30 = vpop.xlane.xlu0 %4240  ;;  %4344 = vst.msk [vmem:[%s6994_s3 + $0x308] sm:$0xff] (!%p5223_p13), %vm4246_vm2, %v10205_v53  ;;  %v10211_v53 = vld [vmem:[#allocation29_spill] sm:$0xff] (!%p5223_p13)  ;;  %4362 = vst.msk [vmem:[%s6994_s3 + $0x398] sm:$0xff] (!%p5223_p13), %vm4246_vm2, %v10223_v22  ;;  %v10229_v11 = vld [vmem:[#allocation94_spill] sm:$0xff] (!%p5223_p13) }
 0x72f   : > { %10167 = vst [vmem:[#allocation104_spill] sm:$0xff] %v8686_v30  ;;  %4350 = vst.msk [vmem:[%s6994_s3 + $0x338] sm:$0xff] (!%p5223_p13), %vm4246_vm2, %v10211_v53  ;;  %v10217_v53 = vld [vmem:[#allocation35_spill] sm:$0xff] (!%p5223_p13)  ;;  %v10231_v22 = vld [vmem:[#allocation90_spill] sm:$0xff] (!%p5223_p13) }
 0x730   : > { %4356 = vst.msk [vmem:[%s6994_s3 + $0x368] sm:$0xff] %vm4246_vm2, %v10217_v53  ;;  %v10224_v53 = vld [vmem:[#allocation81_spill] sm:$0xff]  ;;  %4364 = vst.msk [vmem:[%s6994_s3 + $0x3a8] sm:$0xff] %vm4246_vm2, %v10225_v37 }
 0x731   : > { %4363 = vst.msk [vmem:[%s6994_s3 + $0x3a0] sm:$0xff] %vm4246_vm2, %v10224_v53  ;;  %4366 = vst.msk [vmem:[%s6994_s3 + $0x3b8] sm:$0xff] %vm4246_vm2, %v10227_v60  ;;  %v10232_v53 = vld [vmem:[#allocation95_spill] sm:$0xff] }
 0x732   : > { %4368 = vst.msk [vmem:[%s6994_s3 + $0x3c8] sm:$0xff] %vm4246_vm2, %v10229_v11  ;;  %4369 = vst.msk [vmem:[%s6994_s3 + $0x3d0] sm:$0xff] %vm4246_vm2, %v10230_v58 }
 0x733   : > { %4370 = vst.msk [vmem:[%s6994_s3 + $0x3d8] sm:$0xff] %vm4246_vm2, %v10231_v22  ;;  %4371 = vst.msk [vmem:[%s6994_s3 + $0x3e0] sm:$0xff] %vm4246_vm2, %v10232_v53 }
 0x734   : > { %4372 = vst.msk [vmem:[%s6994_s3 + $0x3e8] sm:$0xff] %vm4246_vm2, %v8670_v26  ;;  %4373 = vst.msk [vmem:[%s6994_s3 + $0x3f0] sm:$0xff] %vm4246_vm2, %v8680_v24 }
 0x735   : > { %4374 = vst.msk [vmem:[%s6994_s3 + $0x3f8] sm:$0xff] %vm4246_vm2, %v8686_v30 }
 0x736 PF: > { %s10233_s14 = sld [smem:[#allocation22_spill]] }
 0x73c   : > { %p5224_p0 = scmp.le.s32.totalorder %s10233_s14, 0 }
 0x73d   : > { %v4379_v60 = vld [vmem:[%s6994_s3] sm:$0xff] (!%p5224_p0)  ;;  %vm4635_vm3 = vcmask (!%p5224_p0), 7168   ;;  %v4380_v37 = vld [vmem:[%s6994_s3 + $0x8] sm:$0xff] (!%p5224_p0)  ;;  %v4381_v52 = vld [vmem:[%s6994_s3 + $0x10] sm:$0xff] (!%p5224_p0) }
 0x73e   : > { %4378 = sbr.rel (%p5224_p0) target bundleno = 1939 (0x793), region = 141  ;;  %v4507_v1 = vmax.f32 (!%p5224_p0), %v4379_v60, %v8330_v61  ;;  %v4508_v11 = vmax.f32 (!%p5224_p0), %v4380_v37, %v8336_v18  ;;  %v4509_v58 = vmax.f32 (!%p5224_p0), %v4381_v52, %v8322_v38  ;;  %v4382_v22 = vld [vmem:[%s6994_s3 + $0x18] sm:$0xff] (!%p5224_p0)  ;;  %v4383_v53 = vld [vmem:[%s6994_s3 + $0x20] sm:$0xff] (!%p5224_p0)  ;;  %v4384_v30 = vld [vmem:[%s6994_s3 + $0x28] sm:$0xff] (!%p5224_p0) }
 0x73f   : > { %v4510_v24 = vmax.f32 (!%p5224_p0), %v4382_v22, %v8338_v50  ;;  %v4511_v26 = vmax.f32 (!%p5224_p0), %v4383_v53, %v8360_v44  ;;  %v4512_v56 = vmax.f32 (!%p5224_p0), %v4384_v30, %v8378_v54  ;;  %v4385_v61 = vld [vmem:[%s6994_s3 + $0x30] sm:$0xff] (!%p5224_p0)  ;;  %v4386_v60 = vld [vmem:[%s6994_s3 + $0x38] sm:$0xff] (!%p5224_p0)  ;;  %v4387_v18 = vld [vmem:[%s6994_s3 + $0x40] sm:$0xff] (!%p5224_p0) }
 0x740   : > { %4636 = vst.msk [vmem:[%s6994_s3] sm:$0xff] (!%p5224_p0), %vm4635_vm3, %v4507_v1  ;;  %4637 = vst.msk [vmem:[%s6994_s3 + $0x8] sm:$0xff] (!%p5224_p0), %vm4635_vm3, %v4508_v11  ;;  %v4513_v38 = vmax.f32 (!%p5224_p0), %v4385_v61, %v8344_v16  ;;  %v4514_v50 = vmax.f32 (!%p5224_p0), %v4386_v60, %v8362_v19  ;;  %v4515_v44 = vmax.f32 (!%p5224_p0), %v4387_v18, %v8392_v42  ;;  %v4388_v54 = vld [vmem:[%s6994_s3 + $0x48] sm:$0xff] (!%p5224_p0)  ;;  %v4389_v30 = vld [vmem:[%s6994_s3 + $0x50] sm:$0xff] (!%p5224_p0) }
 0x741   : > { %4638 = vst.msk [vmem:[%s6994_s3 + $0x10] sm:$0xff] (!%p5224_p0), %vm4635_vm3, %v4509_v58  ;;  %v4390_v37 = vld [vmem:[%s6994_s3 + $0x58] sm:$0xff] (!%p5224_p0)  ;;  %4639 = vst.msk [vmem:[%s6994_s3 + $0x18] sm:$0xff] (!%p5224_p0), %vm4635_vm3, %v4510_v24  ;;  %v4516_v16 = vmax.f32 (!%p5224_p0), %v4388_v54, %v8410_v28  ;;  %v4517_v19 = vmax.f32 (!%p5224_p0), %v4389_v30, %v8376_v33  ;;  %v4391_v52 = vld [vmem:[%s6994_s3 + $0x60] sm:$0xff] (!%p5224_p0) }
 0x742   : > { %4640 = vst.msk [vmem:[%s6994_s3 + $0x20] sm:$0xff] (!%p5224_p0), %vm4635_vm3, %v4511_v26  ;;  %4641 = vst.msk [vmem:[%s6994_s3 + $0x28] sm:$0xff] (!%p5224_p0), %vm4635_vm3, %v4512_v56  ;;  %v4518_v42 = vmax.f32 (!%p5224_p0), %v4390_v37, %v8394_v9  ;;  %v4392_v1 = vld [vmem:[%s6994_s3 + $0x68] sm:$0xff] (!%p5224_p0)  ;;  %v4393_v11 = vld [vmem:[%s6994_s3 + $0x70] sm:$0xff] (!%p5224_p0)  ;;  %v4519_v26 = vmax.f32 (!%p5224_p0), %v4391_v52, %v8424_v14 }
 0x743   : > { %4642 = vst.msk [vmem:[%s6994_s3 + $0x30] sm:$0xff] (!%p5224_p0), %vm4635_vm3, %v4513_v38  ;;  %4643 = vst.msk [vmem:[%s6994_s3 + $0x38] sm:$0xff] (!%p5224_p0), %vm4635_vm3, %v4514_v50  ;;  %v4520_v28 = vmax.f32 (!%p5224_p0), %v4392_v1, %v8442_v49  ;;  %v4521_v24 = vmax.f32 (!%p5224_p0), %v4393_v11, %v8408_v57  ;;  %v4394_v33 = vld [vmem:[%s6994_s3 + $0x78] sm:$0xff] (!%p5224_p0)  ;;  %v4395_v9 = vld [vmem:[%s6994_s3 + $0x80] sm:$0xff] (!%p5224_p0) }
 0x744   : > { %4644 = vst.msk [vmem:[%s6994_s3 + $0x40] sm:$0xff] (!%p5224_p0), %vm4635_vm3, %v4515_v44  ;;  %v4396_v56 = vld [vmem:[%s6994_s3 + $0x88] sm:$0xff] (!%p5224_p0)  ;;  %4645 = vst.msk [vmem:[%s6994_s3 + $0x48] sm:$0xff] (!%p5224_p0), %vm4635_vm3, %v4516_v16  ;;  %v4522_v14 = vmax.f32 (!%p5224_p0), %v4394_v33, %v8426_v32  ;;  %v4523_v49 = vmax.f32 (!%p5224_p0), %v4395_v9, %v8456_v4  ;;  %v4397_v58 = vld [vmem:[%s6994_s3 + $0x90] sm:$0xff] (!%p5224_p0) }
 0x745   : > { %4646 = vst.msk [vmem:[%s6994_s3 + $0x50] sm:$0xff] %vm4635_vm3, %v4517_v19  ;;  %4647 = vst.msk [vmem:[%s6994_s3 + $0x58] sm:$0xff] %vm4635_vm3, %v4518_v42  ;;  %v4524_v57 = vmax.f32 %v4396_v56, %v8474_v63  ;;  %v4398_v22 = vld [vmem:[%s6994_s3 + $0x98] sm:$0xff]  ;;  %v4399_v53 = vld [vmem:[%s6994_s3 + $0xa0] sm:$0xff]  ;;  %v4525_v32 = vmax.f32 %v4397_v58, %v8440_v29 }
 0x746   : > { %4648 = vst.msk [vmem:[%s6994_s3 + $0x60] sm:$0xff] %vm4635_vm3, %v4519_v26  ;;  %4649 = vst.msk [vmem:[%s6994_s3 + $0x68] sm:$0xff] %vm4635_vm3, %v4520_v28  ;;  %v4526_v4 = vmax.f32 %v4398_v22, %v8458_v6  ;;  %v4527_v63 = vmax.f32 %v4399_v53, %v8488_v8  ;;  %v4400_v61 = vld [vmem:[%s6994_s3 + $0xa8] sm:$0xff]  ;;  %v4401_v60 = vld [vmem:[%s6994_s3 + $0xb0] sm:$0xff] }
 0x747   : > { %4650 = vst.msk [vmem:[%s6994_s3 + $0x70] sm:$0xff] %vm4635_vm3, %v4521_v24  ;;  %v4402_v18 = vld [vmem:[%s6994_s3 + $0xb8] sm:$0xff]  ;;  %4651 = vst.msk [vmem:[%s6994_s3 + $0x78] sm:$0xff] %vm4635_vm3, %v4522_v14  ;;  %v4528_v29 = vmax.f32 %v4400_v61, %v8506_v25  ;;  %v4529_v6 = vmax.f32 %v4401_v60, %v8472_v62  ;;  %v4403_v38 = vld [vmem:[%s6994_s3 + $0xc0] sm:$0xff] }
 0x748   : > { %4652 = vst.msk [vmem:[%s6994_s3 + $0x80] sm:$0xff] %vm4635_vm3, %v4523_v49  ;;  %4653 = vst.msk [vmem:[%s6994_s3 + $0x88] sm:$0xff] %vm4635_vm3, %v4524_v57  ;;  %v4530_v8 = vmax.f32 %v4402_v18, %v8490_v13  ;;  %v4404_v50 = vld [vmem:[%s6994_s3 + $0xc8] sm:$0xff]  ;;  %v4405_v44 = vld [vmem:[%s6994_s3 + $0xd0] sm:$0xff]  ;;  %v4531_v25 = vmax.f32 %v4403_v38, %v8520_v55 }
 0x749   : > { %4654 = vst.msk [vmem:[%s6994_s3 + $0x90] sm:$0xff] %vm4635_vm3, %v4525_v32  ;;  %4655 = vst.msk [vmem:[%s6994_s3 + $0x98] sm:$0xff] %vm4635_vm3, %v4526_v4  ;;  %v4532_v62 = vmax.f32 %v4404_v50, %v8538_v12  ;;  %v4533_v13 = vmax.f32 %v4405_v44, %v8504_v17  ;;  %v4406_v54 = vld [vmem:[%s6994_s3 + $0xd8] sm:$0xff]  ;;  %v4407_v30 = vld [vmem:[%s6994_s3 + $0xe0] sm:$0xff] }
 0x74a   : > { %4656 = vst.msk [vmem:[%s6994_s3 + $0xa0] sm:$0xff] %vm4635_vm3, %v4527_v63  ;;  %v4408_v37 = vld [vmem:[%s6994_s3 + $0xe8] sm:$0xff]  ;;  %4657 = vst.msk [vmem:[%s6994_s3 + $0xa8] sm:$0xff] %vm4635_vm3, %v4528_v29  ;;  %v4534_v55 = vmax.f32 %v4406_v54, %v8522_v39  ;;  %v4535_v12 = vmax.f32 %v4407_v30, %v8548_v47  ;;  %v4409_v16 = vld [vmem:[%s6994_s3 + $0xf0] sm:$0xff] }
 0x74b   : > { %4658 = vst.msk [vmem:[%s6994_s3 + $0xb0] sm:$0xff] %vm4635_vm3, %v4529_v6  ;;  %4659 = vst.msk [vmem:[%s6994_s3 + $0xb8] sm:$0xff] %vm4635_vm3, %v4530_v8  ;;  %v4536_v17 = vmax.f32 %v4408_v37, %v8558_v21  ;;  %v4410_v19 = vld [vmem:[%s6994_s3 + $0xf8] sm:$0xff]  ;;  %v4411_v42 = vld [vmem:[%s6994_s3 + $0x100] sm:$0xff]  ;;  %v4537_v39 = vmax.f32 %v4409_v16, %v8536_v5 }
 0x74c   : > { %4660 = vst.msk [vmem:[%s6994_s3 + $0xc0] sm:$0xff] %vm4635_vm3, %v4531_v25  ;;  %4661 = vst.msk [vmem:[%s6994_s3 + $0xc8] sm:$0xff] %vm4635_vm3, %v4532_v62  ;;  %v4538_v47 = vmax.f32 %v4410_v19, %v8550_v59  ;;  %v4539_v21 = vmax.f32 %v4411_v42, %v8564_v10  ;;  %v4412_v52 = vld [vmem:[%s6994_s3 + $0x108] sm:$0xff]  ;;  %v4413_v1 = vld [vmem:[%s6994_s3 + $0x110] sm:$0xff] }
 0x74d   : > { %4662 = vst.msk [vmem:[%s6994_s3 + $0xd0] sm:$0xff] %vm4635_vm3, %v4533_v13  ;;  %v4414_v11 = vld [vmem:[%s6994_s3 + $0x118] sm:$0xff]  ;;  %4663 = vst.msk [vmem:[%s6994_s3 + $0xd8] sm:$0xff] %vm4635_vm3, %v4534_v55  ;;  %v4540_v5 = vmax.f32 %v4412_v52, %v8574_v20  ;;  %v4541_v59 = vmax.f32 %v4413_v1, %v8556_v45  ;;  %v4415_v26 = vld [vmem:[%s6994_s3 + $0x120] sm:$0xff] }
 0x74e   : > { %4664 = vst.msk [vmem:[%s6994_s3 + $0xe0] sm:$0xff] %vm4635_vm3, %v4535_v12  ;;  %4665 = vst.msk [vmem:[%s6994_s3 + $0xe8] sm:$0xff] %vm4635_vm3, %v4536_v17  ;;  %v4542_v10 = vmax.f32 %v4414_v11, %v8566_v40  ;;  %v4416_v28 = vld [vmem:[%s6994_s3 + $0x128] sm:$0xff]  ;;  %v4417_v24 = vld [vmem:[%s6994_s3 + $0x130] sm:$0xff]  ;;  %v4543_v20 = vmax.f32 %v4415_v26, %v8580_v7 }
 0x74f   : > { %4666 = vst.msk [vmem:[%s6994_s3 + $0xf0] sm:$0xff] %vm4635_vm3, %v4537_v39  ;;  %4667 = vst.msk [vmem:[%s6994_s3 + $0xf8] sm:$0xff] %vm4635_vm3, %v4538_v47  ;;  %v4544_v45 = vmax.f32 %v4416_v28, %v8590_v0  ;;  %v4545_v40 = vmax.f32 %v4417_v24, %v8572_v15  ;;  %v4418_v33 = vld [vmem:[%s6994_s3 + $0x138] sm:$0xff]  ;;  %v4419_v9 = vld [vmem:[%s6994_s3 + $0x140] sm:$0xff] }
 0x750   : > { %4668 = vst.msk [vmem:[%s6994_s3 + $0x100] sm:$0xff] %vm4635_vm3, %v4539_v21  ;;  %v4420_v56 = vld [vmem:[%s6994_s3 + $0x148] sm:$0xff]  ;;  %4669 = vst.msk [vmem:[%s6994_s3 + $0x108] sm:$0xff] %vm4635_vm3, %v4540_v5  ;;  %v4546_v7 = vmax.f32 %v4418_v33, %v8582_v34  ;;  %v4547_v0 = vmax.f32 %v4419_v9, %v8596_v2  ;;  %v4421_v14 = vld [vmem:[%s6994_s3 + $0x150] sm:$0xff] }
 0x751   : > { %4670 = vst.msk [vmem:[%s6994_s3 + $0x110] sm:$0xff] %vm4635_vm3, %v4541_v59  ;;  %4671 = vst.msk [vmem:[%s6994_s3 + $0x118] sm:$0xff] %vm4635_vm3, %v4542_v10  ;;  %v4548_v15 = vmax.f32 %v4420_v56, %v8606_v3  ;;  %v4422_v49 = vld [vmem:[%s6994_s3 + $0x158] sm:$0xff]  ;;  %v4423_v57 = vld [vmem:[%s6994_s3 + $0x160] sm:$0xff]  ;;  %v4549_v34 = vmax.f32 %v4421_v14, %v8588_v41 }
 0x752   : > { %4672 = vst.msk [vmem:[%s6994_s3 + $0x120] sm:$0xff] %vm4635_vm3, %v4543_v20  ;;  %4673 = vst.msk [vmem:[%s6994_s3 + $0x128] sm:$0xff] %vm4635_vm3, %v4544_v45  ;;  %v4550_v2 = vmax.f32 %v4422_v49, %v8598_v43  ;;  %v4551_v3 = vmax.f32 %v4423_v57, %v8612_v35  ;;  %v4424_v58 = vld [vmem:[%s6994_s3 + $0x168] sm:$0xff]  ;;  %v4425_v22 = vld [vmem:[%s6994_s3 + $0x170] sm:$0xff] }
 0x753   : > { %4674 = vst.msk [vmem:[%s6994_s3 + $0x130] sm:$0xff] %vm4635_vm3, %v4545_v40  ;;  %v4426_v53 = vld [vmem:[%s6994_s3 + $0x178] sm:$0xff]  ;;  %4675 = vst.msk [vmem:[%s6994_s3 + $0x138] sm:$0xff] %vm4635_vm3, %v4546_v7  ;;  %v4552_v41 = vmax.f32 %v4424_v58, %v8622_v36  ;;  %v4553_v43 = vmax.f32 %v4425_v22, %v8604_v51  ;;  %v10234_v32 = vld [vmem:[#allocation36_spill] sm:$0xff] }
 0x754   : > { %4676 = vst.msk [vmem:[%s6994_s3 + $0x140] sm:$0xff] %vm4635_vm3, %v4547_v0  ;;  %4677 = vst.msk [vmem:[%s6994_s3 + $0x148] sm:$0xff] %vm4635_vm3, %v4548_v15  ;;  %v4554_v35 = vmax.f32 %v4426_v53, %v10234_v32  ;;  %v4427_v4 = vld [vmem:[%s6994_s3 + $0x180] sm:$0xff]  ;;  %v4428_v63 = vld [vmem:[%s6994_s3 + $0x188] sm:$0xff] }
 0x755   : > { %v4429_v61 = vld [vmem:[%s6994_s3 + $0x190] sm:$0xff]  ;;  %4678 = vst.msk [vmem:[%s6994_s3 + $0x150] sm:$0xff] %vm4635_vm3, %v4549_v34  ;;  %4679 = vst.msk [vmem:[%s6994_s3 + $0x158] sm:$0xff] %vm4635_vm3, %v4550_v2  ;;  %v10235_v60 = vld [vmem:[#allocation43_spill] sm:$0xff] }
 0x756   : > { %4680 = vst.msk [vmem:[%s6994_s3 + $0x160] sm:$0xff] %vm4635_vm3, %v4551_v3  ;;  %v4555_v36 = vmax.f32 %v4427_v4, %v10235_v60  ;;  %v10236_v18 = vld [vmem:[#allocation84_spill] sm:$0xff]  ;;  %v10237_v29 = vld [vmem:[#allocation39_spill] sm:$0xff]  ;;  %v4430_v8 = vld [vmem:[%s6994_s3 + $0x198] sm:$0xff] }
 0x757   : > { %v4556_v51 = vmax.f32 %v4428_v63, %v10236_v18  ;;  %v4557_v6 = vmax.f32 %v4429_v61, %v10237_v29  ;;  %v4431_v38 = vld [vmem:[%s6994_s3 + $0x1a0] sm:$0xff]  ;;  %v4432_v50 = vld [vmem:[%s6994_s3 + $0x1a8] sm:$0xff]  ;;  %4681 = vst.msk [vmem:[%s6994_s3 + $0x168] sm:$0xff] %vm4635_vm3, %v4552_v41  ;;  %4682 = vst.msk [vmem:[%s6994_s3 + $0x170] sm:$0xff] %vm4635_vm3, %v4553_v43  ;;  %v4558_v44 = vmax.f32 %v4430_v8, %v8630_v27 }
 0x758   : > { %4683 = vst.msk [vmem:[%s6994_s3 + $0x178] sm:$0xff] %vm4635_vm3, %v4554_v35  ;;  %v10238_v25 = vld [vmem:[#allocation87_spill] sm:$0xff]  ;;  %v10239_v13 = vld [vmem:[#allocation92_spill] sm:$0xff]  ;;  %v4433_v30 = vld [vmem:[%s6994_s3 + $0x1b0] sm:$0xff] }
 0x759   : > { %v4559_v62 = vmax.f32 %v4431_v38, %v10238_v25  ;;  %v4560_v54 = vmax.f32 %v4432_v50, %v10239_v13  ;;  %v4434_v37 = vld [vmem:[%s6994_s3 + $0x1b8] sm:$0xff]  ;;  %v4435_v55 = vld [vmem:[%s6994_s3 + $0x1c0] sm:$0xff]  ;;  %4684 = vst.msk [vmem:[%s6994_s3 + $0x180] sm:$0xff] %vm4635_vm3, %v4555_v36  ;;  %4685 = vst.msk [vmem:[%s6994_s3 + $0x188] sm:$0xff] %vm4635_vm3, %v4556_v51 }
 0x75a   : > { %4686 = vst.msk [vmem:[%s6994_s3 + $0x190] sm:$0xff] %vm4635_vm3, %v4557_v6  ;;  %v10240_v12 = vld [vmem:[#allocation83_spill] sm:$0xff]  ;;  %v10241_v17 = vld [vmem:[#allocation88_spill] sm:$0xff]  ;;  %v10242_v19 = vld [vmem:[#allocation93_spill] sm:$0xff] }
 0x75b   : > { %v4561_v27 = vmax.f32 %v4433_v30, %v10240_v12  ;;  %v4562_v16 = vmax.f32 %v4434_v37, %v10241_v17  ;;  %v4563_v42 = vmax.f32 %v4435_v55, %v10242_v19  ;;  %v4436_v39 = vld [vmem:[%s6994_s3 + $0x1c8] sm:$0xff]  ;;  %v4437_v47 = vld [vmem:[%s6994_s3 + $0x1d0] sm:$0xff]  ;;  %v4438_v21 = vld [vmem:[%s6994_s3 + $0x1d8] sm:$0xff]  ;;  %4687 = vst.msk [vmem:[%s6994_s3 + $0x198] sm:$0xff] %vm4635_vm3, %v4558_v44 }
 0x75c   : > { %4688 = vst.msk [vmem:[%s6994_s3 + $0x1a0] sm:$0xff] %vm4635_vm3, %v4559_v62  ;;  %4689 = vst.msk [vmem:[%s6994_s3 + $0x1a8] sm:$0xff] %vm4635_vm3, %v4560_v54  ;;  %v4564_v52 = vmax.f32 %v4436_v39, %v8666_v48  ;;  %v10243_v1 = vld [vmem:[#allocation91_spill] sm:$0xff]  ;;  %v10244_v5 = vld [vmem:[#allocation96_spill] sm:$0xff] }
 0x75d   : > { %v4565_v11 = vmax.f32 %v4437_v47, %v10243_v1  ;;  %v4566_v59 = vmax.f32 %v4438_v21, %v10244_v5  ;;  %v4439_v10 = vld [vmem:[%s6994_s3 + $0x1e0] sm:$0xff]  ;;  %v4440_v26 = vld [vmem:[%s6994_s3 + $0x1e8] sm:$0xff]  ;;  %v4441_v28 = vld [vmem:[%s6994_s3 + $0x1f0] sm:$0xff]  ;;  %4690 = vst.msk [vmem:[%s6994_s3 + $0x1b0] sm:$0xff] %vm4635_vm3, %v4561_v27 }
 0x75e   : > { %4691 = vst.msk [vmem:[%s6994_s3 + $0x1b8] sm:$0xff] %vm4635_vm3, %v4562_v16  ;;  %4692 = vst.msk [vmem:[%s6994_s3 + $0x1c0] sm:$0xff] %vm4635_vm3, %v4563_v42  ;;  %v4567_v48 = vmax.f32 %v4439_v10, %v8668_v31  ;;  %v4568_v24 = vmax.f32 %v4440_v26, %v8678_v46  ;;  %v10245_v20 = vld [vmem:[#allocation97_spill] sm:$0xff]  ;;  %v4442_v40 = vld [vmem:[%s6994_s3 + $0x1f8] sm:$0xff] }
 0x75f   : > { %v4569_v45 = vmax.f32 %v4441_v28, %v10245_v20  ;;  %v4443_v33 = vld [vmem:[%s6994_s3 + $0x200] sm:$0xff]  ;;  %v4444_v9 = vld [vmem:[%s6994_s3 + $0x208] sm:$0xff]  ;;  %4693 = vst.msk [vmem:[%s6994_s3 + $0x1c8] sm:$0xff] %vm4635_vm3, %v4564_v52  ;;  %4694 = vst.msk [vmem:[%s6994_s3 + $0x1d0] sm:$0xff] %vm4635_vm3, %v4565_v11  ;;  %v4570_v31 = vmax.f32 %v4442_v40, %v8674_v23 }
 0x760   : > { %4695 = vst.msk [vmem:[%s6994_s3 + $0x1d8] sm:$0xff] %vm4635_vm3, %v4566_v59  ;;  %v10246_v56 = vld [vmem:[#allocation100_spill] sm:$0xff]  ;;  %v10247_v7 = vld [vmem:[#allocation103_spill] sm:$0xff]  ;;  %v4445_v15 = vld [vmem:[%s6994_s3 + $0x210] sm:$0xff] }
 0x761   : > { %v4571_v46 = vmax.f32 %v4443_v33, %v10246_v56  ;;  %v4572_v0 = vmax.f32 %v4444_v9, %v10247_v7  ;;  %v4446_v14 = vld [vmem:[%s6994_s3 + $0x218] sm:$0xff]  ;;  %v4447_v49 = vld [vmem:[%s6994_s3 + $0x220] sm:$0xff]  ;;  %4696 = vst.msk [vmem:[%s6994_s3 + $0x1e0] sm:$0xff] %vm4635_vm3, %v4567_v48  ;;  %4697 = vst.msk [vmem:[%s6994_s3 + $0x1e8] sm:$0xff] %vm4635_vm3, %v4568_v24 }
 0x762   : > { %4698 = vst.msk [vmem:[%s6994_s3 + $0x1f0] sm:$0xff] %vm4635_vm3, %v4569_v45  ;;  %v10248_v57 = vld [vmem:[#allocation99_spill] sm:$0xff]  ;;  %v10249_v34 = vld [vmem:[#allocation102_spill] sm:$0xff]  ;;  %v10250_v3 = vld [vmem:[#allocation80_spill] sm:$0xff] }
 0x763   : > { %v4573_v23 = vmax.f32 %v4445_v15, %v10248_v57  ;;  %v4574_v2 = vmax.f32 %v4446_v14, %v10249_v34  ;;  %v4575_v58 = vmax.f32 %v4447_v49, %v10250_v3  ;;  %v4448_v22 = vld [vmem:[%s6994_s3 + $0x228] sm:$0xff]  ;;  %v4449_v53 = vld [vmem:[%s6994_s3 + $0x230] sm:$0xff]  ;;  %v4450_v41 = vld [vmem:[%s6994_s3 + $0x238] sm:$0xff]  ;;  %4699 = vst.msk [vmem:[%s6994_s3 + $0x1f8] sm:$0xff] %vm4635_vm3, %v4570_v31 }
 0x764   : > { %4700 = vst.msk [vmem:[%s6994_s3 + $0x200] sm:$0xff] %vm4635_vm3, %v4571_v46  ;;  %4701 = vst.msk [vmem:[%s6994_s3 + $0x208] sm:$0xff] %vm4635_vm3, %v4572_v0  ;;  %v10251_v43 = vld [vmem:[#allocation46_spill] sm:$0xff]  ;;  %v10253_v63 = vld [vmem:[#allocation47_spill] sm:$0xff] }
 0x765   : > { %v4576_v32 = vmax.f32 %v4448_v22, %v10251_v43  ;;  %v10252_v35 = vld [vmem:[#allocation42_spill] sm:$0xff]  ;;  %v4578_v61 = vmax.f32 %v4450_v41, %v10253_v63  ;;  %v4451_v60 = vld [vmem:[%s6994_s3 + $0x240] sm:$0xff]  ;;  %v4452_v36 = vld [vmem:[%s6994_s3 + $0x248] sm:$0xff]  ;;  %4702 = vst.msk [vmem:[%s6994_s3 + $0x210] sm:$0xff] %vm4635_vm3, %v4573_v23 }
 0x766   : > { %v4577_v4 = vmax.f32 %v4449_v53, %v10252_v35  ;;  %v4453_v18 = vld [vmem:[%s6994_s3 + $0x250] sm:$0xff]  ;;  %4703 = vst.msk [vmem:[%s6994_s3 + $0x218] sm:$0xff] %vm4635_vm3, %v4574_v2  ;;  %4704 = vst.msk [vmem:[%s6994_s3 + $0x220] sm:$0xff] %vm4635_vm3, %v4575_v58  ;;  %v10254_v51 = vld [vmem:[#allocation44_spill] sm:$0xff] }
 0x767   : > { %v4579_v29 = vmax.f32 %v4451_v60, %v10254_v51  ;;  %v10255_v6 = vld [vmem:[#allocation50_spill] sm:$0xff]  ;;  %v10256_v38 = vld [vmem:[#allocation45_spill] sm:$0xff]  ;;  %v4455_v25 = vld [vmem:[%s6994_s3 + $0x260] sm:$0xff]  ;;  %4705 = vst.msk [vmem:[%s6994_s3 + $0x228] sm:$0xff] %vm4635_vm3, %v4576_v32 }
 0x768   : > { %v4580_v8 = vmax.f32 %v4452_v36, %v10255_v6  ;;  %v4581_v50 = vmax.f32 %v4453_v18, %v10256_v38  ;;  %v4454_v44 = vld [vmem:[%s6994_s3 + $0x258] sm:$0xff]  ;;  %v4456_v62 = vld [vmem:[%s6994_s3 + $0x268] sm:$0xff]  ;;  %4706 = vst.msk [vmem:[%s6994_s3 + $0x230] sm:$0xff] %vm4635_vm3, %v4577_v4  ;;  %4707 = vst.msk [vmem:[%s6994_s3 + $0x238] sm:$0xff] %vm4635_vm3, %v4578_v61 }
 0x769   : > { %v10257_v13 = vld [vmem:[#allocation51_spill] sm:$0xff]  ;;  %v10258_v30 = vld [vmem:[#allocation48_spill] sm:$0xff]  ;;  %v10259_v55 = vld [vmem:[#allocation54_spill] sm:$0xff]  ;;  %4708 = vst.msk [vmem:[%s6994_s3 + $0x240] sm:$0xff] %vm4635_vm3, %v4579_v29 }
 0x76a   : > { %v4582_v54 = vmax.f32 %v4454_v44, %v10257_v13  ;;  %v4583_v37 = vmax.f32 %v4455_v25, %v10258_v30  ;;  %v4584_v12 = vmax.f32 %v4456_v62, %v10259_v55  ;;  %v4457_v27 = vld [vmem:[%s6994_s3 + $0x270] sm:$0xff]  ;;  %v4458_v17 = vld [vmem:[%s6994_s3 + $0x278] sm:$0xff]  ;;  %v4459_v16 = vld [vmem:[%s6994_s3 + $0x280] sm:$0xff]  ;;  %4709 = vst.msk [vmem:[%s6994_s3 + $0x248] sm:$0xff] %vm4635_vm3, %v4580_v8 }
 0x76b   : > { %4710 = vst.msk [vmem:[%s6994_s3 + $0x250] sm:$0xff] %vm4635_vm3, %v4581_v50  ;;  %v10260_v19 = vld [vmem:[#allocation49_spill] sm:$0xff]  ;;  %v10261_v39 = vld [vmem:[#allocation55_spill] sm:$0xff]  ;;  %v10262_v21 = vld [vmem:[#allocation52_spill] sm:$0xff] }
 0x76c   : > { %v4585_v42 = vmax.f32 %v4457_v27, %v10260_v19  ;;  %v4586_v47 = vmax.f32 %v4458_v17, %v10261_v39  ;;  %v4587_v52 = vmax.f32 %v4459_v16, %v10262_v21  ;;  %v4460_v1 = vld [vmem:[%s6994_s3 + $0x288] sm:$0xff]  ;;  %v4461_v11 = vld [vmem:[%s6994_s3 + $0x290] sm:$0xff]  ;;  %v4462_v5 = vld [vmem:[%s6994_s3 + $0x298] sm:$0xff]  ;;  %4711 = vst.msk [vmem:[%s6994_s3 + $0x258] sm:$0xff] %vm4635_vm3, %v4582_v54 }
 0x76d   : > { %4712 = vst.msk [vmem:[%s6994_s3 + $0x260] sm:$0xff] %vm4635_vm3, %v4583_v37  ;;  %4713 = vst.msk [vmem:[%s6994_s3 + $0x268] sm:$0xff] %vm4635_vm3, %v4584_v12  ;;  %v10263_v59 = vld [vmem:[#allocation58_spill] sm:$0xff]  ;;  %v10264_v26 = vld [vmem:[#allocation53_spill] sm:$0xff] }
 0x76e   : > { %v4588_v10 = vmax.f32 %v4460_v1, %v10263_v59  ;;  %v4589_v28 = vmax.f32 %v4461_v11, %v10264_v26  ;;  %v10265_v48 = vld [vmem:[#allocation59_spill] sm:$0xff]  ;;  %v4464_v45 = vld [vmem:[%s6994_s3 + $0x2a8] sm:$0xff]  ;;  %v4465_v40 = vld [vmem:[%s6994_s3 + $0x2b0] sm:$0xff]  ;;  %4714 = vst.msk [vmem:[%s6994_s3 + $0x270] sm:$0xff] %vm4635_vm3, %v4585_v42 }
 0x76f   : > { %v4590_v24 = vmax.f32 %v4462_v5, %v10265_v48  ;;  %v4463_v20 = vld [vmem:[%s6994_s3 + $0x2a0] sm:$0xff]  ;;  %4715 = vst.msk [vmem:[%s6994_s3 + $0x278] sm:$0xff] %vm4635_vm3, %v4586_v47  ;;  %4716 = vst.msk [vmem:[%s6994_s3 + $0x280] sm:$0xff] %vm4635_vm3, %v4587_v52  ;;  %v10266_v33 = vld [vmem:[#allocation56_spill] sm:$0xff] }
 0x770   : > { %v4591_v9 = vmax.f32 %v4463_v20, %v10266_v33  ;;  %v10267_v31 = vld [vmem:[#allocation62_spill] sm:$0xff]  ;;  %v10268_v46 = vld [vmem:[#allocation57_spill] sm:$0xff]  ;;  %v4467_v15 = vld [vmem:[%s6994_s3 + $0x2c0] sm:$0xff]  ;;  %4717 = vst.msk [vmem:[%s6994_s3 + $0x288] sm:$0xff] %vm4635_vm3, %v4588_v10 }
 0x771   : > { %v4592_v56 = vmax.f32 %v4464_v45, %v10267_v31  ;;  %v4593_v7 = vmax.f32 %v4465_v40, %v10268_v46  ;;  %v4466_v0 = vld [vmem:[%s6994_s3 + $0x2b8] sm:$0xff]  ;;  %v4468_v14 = vld [vmem:[%s6994_s3 + $0x2c8] sm:$0xff]  ;;  %4718 = vst.msk [vmem:[%s6994_s3 + $0x290] sm:$0xff] %vm4635_vm3, %v4589_v28  ;;  %4719 = vst.msk [vmem:[%s6994_s3 + $0x298] sm:$0xff] %vm4635_vm3, %v4590_v24 }
 0x772   : > { %v10269_v49 = vld [vmem:[#allocation63_spill] sm:$0xff]  ;;  %v10270_v23 = vld [vmem:[#allocation60_spill] sm:$0xff]  ;;  %v10271_v2 = vld [vmem:[#allocation66_spill] sm:$0xff]  ;;  %4720 = vst.msk [vmem:[%s6994_s3 + $0x2a0] sm:$0xff] %vm4635_vm3, %v4591_v9 }
 0x773   : > { %v4594_v57 = vmax.f32 %v4466_v0, %v10269_v49  ;;  %v4595_v34 = vmax.f32 %v4467_v15, %v10270_v23  ;;  %v4596_v3 = vmax.f32 %v4468_v14, %v10271_v2  ;;  %v4469_v58 = vld [vmem:[%s6994_s3 + $0x2d0] sm:$0xff]  ;;  %v4470_v22 = vld [vmem:[%s6994_s3 + $0x2d8] sm:$0xff]  ;;  %v4471_v53 = vld [vmem:[%s6994_s3 + $0x2e0] sm:$0xff]  ;;  %4721 = vst.msk [vmem:[%s6994_s3 + $0x2a8] sm:$0xff] %vm4635_vm3, %v4592_v56 }
 0x774   : > { %4722 = vst.msk [vmem:[%s6994_s3 + $0x2b0] sm:$0xff] %vm4635_vm3, %v4593_v7  ;;  %v10272_v41 = vld [vmem:[#allocation61_spill] sm:$0xff]  ;;  %v10273_v32 = vld [vmem:[#allocation67_spill] sm:$0xff]  ;;  %v10274_v4 = vld [vmem:[#allocation64_spill] sm:$0xff] }
 0x775   : > { %v4597_v43 = vmax.f32 %v4469_v58, %v10272_v41  ;;  %v4598_v35 = vmax.f32 %v4470_v22, %v10273_v32  ;;  %v4599_v63 = vmax.f32 %v4471_v53, %v10274_v4  ;;  %v4472_v61 = vld [vmem:[%s6994_s3 + $0x2e8] sm:$0xff]  ;;  %v4473_v60 = vld [vmem:[%s6994_s3 + $0x2f0] sm:$0xff]  ;;  %v4474_v36 = vld [vmem:[%s6994_s3 + $0x2f8] sm:$0xff]  ;;  %4723 = vst.msk [vmem:[%s6994_s3 + $0x2b8] sm:$0xff] %vm4635_vm3, %v4594_v57 }
 0x776   : > { %4724 = vst.msk [vmem:[%s6994_s3 + $0x2c0] sm:$0xff] %vm4635_vm3, %v4595_v34  ;;  %4725 = vst.msk [vmem:[%s6994_s3 + $0x2c8] sm:$0xff] %vm4635_vm3, %v4596_v3  ;;  %v10275_v18 = vld [vmem:[#allocation70_spill] sm:$0xff]  ;;  %v10276_v29 = vld [vmem:[#allocation65_spill] sm:$0xff] }
 0x777   : > { %v4600_v51 = vmax.f32 %v4472_v61, %v10275_v18  ;;  %v4601_v6 = vmax.f32 %v4473_v60, %v10276_v29  ;;  %v10277_v8 = vld [vmem:[#allocation71_spill] sm:$0xff]  ;;  %v4476_v44 = vld [vmem:[%s6994_s3 + $0x308] sm:$0xff]  ;;  %v4477_v25 = vld [vmem:[%s6994_s3 + $0x310] sm:$0xff]  ;;  %4726 = vst.msk [vmem:[%s6994_s3 + $0x2d0] sm:$0xff] %vm4635_vm3, %v4597_v43 }
 0x778   : > { %v4602_v38 = vmax.f32 %v4474_v36, %v10277_v8  ;;  %v4475_v50 = vld [vmem:[%s6994_s3 + $0x300] sm:$0xff]  ;;  %4727 = vst.msk [vmem:[%s6994_s3 + $0x2d8] sm:$0xff] %vm4635_vm3, %v4598_v35  ;;  %4728 = vst.msk [vmem:[%s6994_s3 + $0x2e0] sm:$0xff] %vm4635_vm3, %v4599_v63  ;;  %v10278_v62 = vld [vmem:[#allocation68_spill] sm:$0xff] }
 0x779   : > { %v4603_v13 = vmax.f32 %v4475_v50, %v10278_v62  ;;  %v10279_v54 = vld [vmem:[#allocation74_spill] sm:$0xff]  ;;  %v10280_v37 = vld [vmem:[#allocation69_spill] sm:$0xff]  ;;  %v4479_v27 = vld [vmem:[%s6994_s3 + $0x320] sm:$0xff]  ;;  %4729 = vst.msk [vmem:[%s6994_s3 + $0x2e8] sm:$0xff] %vm4635_vm3, %v4600_v51 }
 0x77a   : > { %v4604_v30 = vmax.f32 %v4476_v44, %v10279_v54  ;;  %v4605_v55 = vmax.f32 %v4477_v25, %v10280_v37  ;;  %v4478_v12 = vld [vmem:[%s6994_s3 + $0x318] sm:$0xff]  ;;  %v4480_v17 = vld [vmem:[%s6994_s3 + $0x328] sm:$0xff]  ;;  %4730 = vst.msk [vmem:[%s6994_s3 + $0x2f0] sm:$0xff] %vm4635_vm3, %v4601_v6  ;;  %4731 = vst.msk [vmem:[%s6994_s3 + $0x2f8] sm:$0xff] %vm4635_vm3, %v4602_v38 }
 0x77b   : > { %v10281_v16 = vld [vmem:[#allocation75_spill] sm:$0xff]  ;;  %v10282_v42 = vld [vmem:[#allocation72_spill] sm:$0xff]  ;;  %v10283_v47 = vld [vmem:[#allocation33_spill] sm:$0xff]  ;;  %4732 = vst.msk [vmem:[%s6994_s3 + $0x300] sm:$0xff] %vm4635_vm3, %v4603_v13 }
 0x77c   : > { %v4606_v19 = vmax.f32 %v4478_v12, %v10281_v16  ;;  %v4607_v39 = vmax.f32 %v4479_v27, %v10282_v42  ;;  %v4608_v21 = vmax.f32 %v4480_v17, %v10283_v47  ;;  %v4481_v52 = vld [vmem:[%s6994_s3 + $0x330] sm:$0xff]  ;;  %v4482_v1 = vld [vmem:[%s6994_s3 + $0x338] sm:$0xff]  ;;  %v4483_v11 = vld [vmem:[%s6994_s3 + $0x340] sm:$0xff]  ;;  %4733 = vst.msk [vmem:[%s6994_s3 + $0x308] sm:$0xff] %vm4635_vm3, %v4604_v30 }
 0x77d   : > { %4734 = vst.msk [vmem:[%s6994_s3 + $0x310] sm:$0xff] %vm4635_vm3, %v4605_v55  ;;  %v10284_v5 = vld [vmem:[#allocation73_spill] sm:$0xff]  ;;  %v4484_v24 = vld [vmem:[%s6994_s3 + $0x348] sm:$0xff]  ;;  %v4486_v45 = vld [vmem:[%s6994_s3 + $0x358] sm:$0xff] }
 0x77e   : > { %v4609_v59 = vmax.f32 %v4481_v52, %v10284_v5  ;;  %v10285_v10 = vld [vmem:[#allocation29_spill] sm:$0xff]  ;;  %4735 = vst.msk [vmem:[%s6994_s3 + $0x318] sm:$0xff] %vm4635_vm3, %v4606_v19  ;;  %4736 = vst.msk [vmem:[%s6994_s3 + $0x320] sm:$0xff] %vm4635_vm3, %v4607_v39  ;;  %v10287_v40 = vld [vmem:[#allocation31_spill] sm:$0xff] }
 0x77f   : > { %v4610_v26 = vmax.f32 %v4482_v1, %v10285_v10  ;;  %v10286_v28 = vld [vmem:[#allocation77_spill] sm:$0xff]  ;;  %4737 = vst.msk [vmem:[%s6994_s3 + $0x328] sm:$0xff] %vm4635_vm3, %v4608_v21  ;;  %v4612_v33 = vmax.f32 %v4484_v24, %v10287_v40  ;;  %v10288_v9 = vld [vmem:[#allocation79_spill] sm:$0xff]  ;;  %v10289_v56 = vld [vmem:[#allocation78_spill] sm:$0xff] }
 0x780   : > { %v4611_v48 = vmax.f32 %v4483_v11, %v10286_v28  ;;  %v4485_v20 = vld [vmem:[%s6994_s3 + $0x350] sm:$0xff]  ;;  %v4614_v46 = vmax.f32 %v4486_v45, %v10289_v56  ;;  %v4487_v7 = vld [vmem:[%s6994_s3 + $0x360] sm:$0xff]  ;;  %v4488_v0 = vld [vmem:[%s6994_s3 + $0x368] sm:$0xff]  ;;  %4738 = vst.msk [vmem:[%s6994_s3 + $0x330] sm:$0xff] %vm4635_vm3, %v4609_v59 }
 0x781   : > { %v4613_v31 = vmax.f32 %v4485_v20, %v10288_v9  ;;  %v4489_v15 = vld [vmem:[%s6994_s3 + $0x370] sm:$0xff]  ;;  %4739 = vst.msk [vmem:[%s6994_s3 + $0x338] sm:$0xff] %vm4635_vm3, %v4610_v26  ;;  %v10290_v14 = vld [vmem:[#allocation32_spill] sm:$0xff]  ;;  %v10291_v57 = vld [vmem:[#allocation35_spill] sm:$0xff] }
 0x782   : > { %4740 = vst.msk [vmem:[%s6994_s3 + $0x340] sm:$0xff] %vm4635_vm3, %v4611_v48  ;;  %v4615_v49 = vmax.f32 %v4487_v7, %v10290_v14  ;;  %v4616_v23 = vmax.f32 %v4488_v0, %v10291_v57  ;;  %v10292_v34 = vld [vmem:[#allocation76_spill] sm:$0xff]  ;;  %v4490_v3 = vld [vmem:[%s6994_s3 + $0x378] sm:$0xff]  ;;  %v4491_v58 = vld [vmem:[%s6994_s3 + $0x380] sm:$0xff] }
 0x783   : > { %v4617_v2 = vmax.f32 %v4489_v15, %v10292_v34  ;;  %v4492_v22 = vld [vmem:[%s6994_s3 + $0x388] sm:$0xff]  ;;  %4741 = vst.msk [vmem:[%s6994_s3 + $0x348] sm:$0xff] %vm4635_vm3, %v4612_v33  ;;  %4742 = vst.msk [vmem:[%s6994_s3 + $0x350] sm:$0xff] %vm4635_vm3, %v4613_v31  ;;  %v10293_v53 = vld [vmem:[#allocation30_spill] sm:$0xff] }
 0x784   : > { %4743 = vst.msk [vmem:[%s6994_s3 + $0x358] sm:$0xff] %vm4635_vm3, %v4614_v46  ;;  %v4618_v41 = vmax.f32 %v4490_v3, %v10293_v53  ;;  %v10294_v43 = vld [vmem:[#allocation34_spill] sm:$0xff]  ;;  %v4493_v63 = vld [vmem:[%s6994_s3 + $0x390] sm:$0xff]  ;;  %v4495_v60 = vld [vmem:[%s6994_s3 + $0x3a0] sm:$0xff] }
 0x785   : > { %v4619_v32 = vmax.f32 %v4491_v58, %v10294_v43  ;;  %v10295_v35 = vld [vmem:[#allocation38_spill] sm:$0xff]  ;;  %4744 = vst.msk [vmem:[%s6994_s3 + $0x360] sm:$0xff] %vm4635_vm3, %v4615_v49  ;;  %4745 = vst.msk [vmem:[%s6994_s3 + $0x368] sm:$0xff] %vm4635_vm3, %v4616_v23  ;;  %v10296_v36 = vld [vmem:[#allocation37_spill] sm:$0xff] }
 0x786   : > { %v4620_v4 = vmax.f32 %v4492_v22, %v10295_v35  ;;  %v4494_v61 = vld [vmem:[%s6994_s3 + $0x398] sm:$0xff]  ;;  %4746 = vst.msk [vmem:[%s6994_s3 + $0x370] sm:$0xff] %vm4635_vm3, %v4617_v2  ;;  %v4621_v18 = vmax.f32 %v4493_v63, %v10296_v36  ;;  %v10297_v51 = vld [vmem:[#allocation41_spill] sm:$0xff]  ;;  %v4496_v38 = vld [vmem:[%s6994_s3 + $0x3a8] sm:$0xff] }
 0x787   : > { %v4622_v29 = vmax.f32 %v4494_v61, %v10297_v51  ;;  %v10298_v6 = vld [vmem:[#allocation81_spill] sm:$0xff]  ;;  %v4498_v44 = vld [vmem:[%s6994_s3 + $0x3b8] sm:$0xff]  ;;  %4747 = vst.msk [vmem:[%s6994_s3 + $0x378] sm:$0xff] %vm4635_vm3, %v4618_v41  ;;  %4748 = vst.msk [vmem:[%s6994_s3 + $0x380] sm:$0xff] %vm4635_vm3, %v4619_v32 }
 0x788   : > { %v4623_v8 = vmax.f32 %v4495_v60, %v10298_v6  ;;  %v4497_v50 = vld [vmem:[%s6994_s3 + $0x3b0] sm:$0xff]  ;;  %4749 = vst.msk [vmem:[%s6994_s3 + $0x388] sm:$0xff] %vm4635_vm3, %v4620_v4  ;;  %v10299_v25 = vld [vmem:[#allocation86_spill] sm:$0xff]  ;;  %v10300_v13 = vld [vmem:[#allocation40_spill] sm:$0xff] }
 0x789   : > { %v4624_v62 = vmax.f32 %v4496_v38, %v10299_v25  ;;  %v4625_v54 = vmax.f32 %v4497_v50, %v10300_v13  ;;  %v10301_v30 = vld [vmem:[#allocation82_spill] sm:$0xff]  ;;  %v4499_v55 = vld [vmem:[%s6994_s3 + $0x3c0] sm:$0xff]  ;;  %v4500_v12 = vld [vmem:[%s6994_s3 + $0x3c8] sm:$0xff]  ;;  %4750 = vst.msk [vmem:[%s6994_s3 + $0x390] sm:$0xff] %vm4635_vm3, %v4621_v18 }
 0x78a   : > { %v4626_v37 = vmax.f32 %v4498_v44, %v10301_v30  ;;  %v4501_v27 = vld [vmem:[%s6994_s3 + $0x3d0] sm:$0xff]  ;;  %4751 = vst.msk [vmem:[%s6994_s3 + $0x398] sm:$0xff] %vm4635_vm3, %v4622_v29  ;;  %4752 = vst.msk [vmem:[%s6994_s3 + $0x3a0] sm:$0xff] %vm4635_vm3, %v4623_v8  ;;  %v10303_v19 = vld [vmem:[#allocation94_spill] sm:$0xff] }
 0x78b   : > { %v10302_v17 = vld [vmem:[#allocation89_spill] sm:$0xff]  ;;  %v4628_v42 = vmax.f32 %v4500_v12, %v10303_v19  ;;  %v4502_v21 = vld [vmem:[%s6994_s3 + $0x3d8] sm:$0xff]  ;;  %v4503_v52 = vld [vmem:[%s6994_s3 + $0x3e0] sm:$0xff]  ;;  %4753 = vst.msk [vmem:[%s6994_s3 + $0x3a8] sm:$0xff] %vm4635_vm3, %v4624_v62 }
 0x78c   : > { %v4627_v16 = vmax.f32 %v4499_v55, %v10302_v17  ;;  %v10304_v39 = vld [vmem:[#allocation85_spill] sm:$0xff]  ;;  %v4504_v1 = vld [vmem:[%s6994_s3 + $0x3e8] sm:$0xff]  ;;  %4754 = vst.msk [vmem:[%s6994_s3 + $0x3b0] sm:$0xff] %vm4635_vm3, %v4625_v54  ;;  %4755 = vst.msk [vmem:[%s6994_s3 + $0x3b8] sm:$0xff] %vm4635_vm3, %v4626_v37 }
 0x78d   : > { %v4629_v47 = vmax.f32 %v4501_v27, %v10304_v39  ;;  %v10305_v11 = vld [vmem:[#allocation90_spill] sm:$0xff]  ;;  %v10306_v59 = vld [vmem:[#allocation95_spill] sm:$0xff]  ;;  %v4505_v48 = vld [vmem:[%s6994_s3 + $0x3f0] sm:$0xff]  ;;  %4757 = vst.msk [vmem:[%s6994_s3 + $0x3c8] sm:$0xff] %vm4635_vm3, %v4628_v42 }
 0x78e   : > { %v4630_v5 = vmax.f32 %v4502_v21, %v10305_v11  ;;  %v4631_v10 = vmax.f32 %v4503_v52, %v10306_v59  ;;  %v10307_v26 = vld [vmem:[#allocation98_spill] sm:$0xff]  ;;  %4756 = vst.msk [vmem:[%s6994_s3 + $0x3c0] sm:$0xff] %vm4635_vm3, %v4627_v16  ;;  %v10308_v20 = vld [vmem:[#allocation101_spill] sm:$0xff]  ;;  %v10309_v40 = vld [vmem:[#allocation104_spill] sm:$0xff] }
 0x78f   : > { %v4632_v28 = vmax.f32 %v4504_v1, %v10307_v26  ;;  %v4506_v24 = vld [vmem:[%s6994_s3 + $0x3f8] sm:$0xff]  ;;  %4758 = vst.msk [vmem:[%s6994_s3 + $0x3d0] sm:$0xff] %vm4635_vm3, %v4629_v47  ;;  %v4633_v45 = vmax.f32 %v4505_v48, %v10308_v20 }
 0x790   : > { %v4634_v33 = vmax.f32 %v4506_v24, %v10309_v40  ;;  %4759 = vst.msk [vmem:[%s6994_s3 + $0x3d8] sm:$0xff] %vm4635_vm3, %v4630_v5  ;;  %4760 = vst.msk [vmem:[%s6994_s3 + $0x3e0] sm:$0xff] %vm4635_vm3, %v4631_v10 }
 0x791   : > { %4761 = vst.msk [vmem:[%s6994_s3 + $0x3e8] sm:$0xff] %vm4635_vm3, %v4632_v28  ;;  %4762 = vst.msk [vmem:[%s6994_s3 + $0x3f0] sm:$0xff] %vm4635_vm3, %v4633_v45 }
 0x792   : > { %4763 = vst.msk [vmem:[%s6994_s3 + $0x3f8] sm:$0xff] %vm4635_vm3, %v4634_v33 }
 0x793 PF: > { %s10310_s2 = sld [smem:[#allocation23_spill]]  ;;  %s10311_s6 = sld [smem:[#allocation22_spill]] }
 0x794   : > { %s10312_s1 = sld [smem:[#allocation26_spill]]  ;;  %s4784_s20 = sshll.u32 %s7393_s24, 4  ;;  %s9589_s20 = int_to_ptr.vmem [resolvable:$true] %s4784_s20 }
 0x795   : > { %s10313_s16 = sld [smem:[#allocation111_spill]]  ;;  %s4765_s3 = scalar_lea.sflag [#allocation5], %s6970_s17 }
 0x796   : > { %s6506_s29 = scalar_lea.vmem %s9589_s20, 8192  ;;  %s6630_s30 = smov [#allocation15]  }
 0x797   : > { %p6507_p4 = scmp.ne.s32.totalorder %s9589_s20, %s6506_s29  ;;  %s6510_s21 = sshll.u32 %s6630_s30, 4  ;;  %s6511_s21 = int_to_ptr.vmem [resolvable:$false] %s6510_s21 }
 0x798   : > { %s6512_s24 = scalar_lea.vmem %s6511_s21, 16384  ;;  %p6513_p11 = scmp.lt.s32.totalorder %s9589_s20, %s6511_s21 }
 0x799   : > { %s5226_s15 = sshll.u32 %s10310_s2, 8  ;;  %p6514_p12 = scmp.lt.s32.totalorder %s6512_s24, %s6506_s29 }
 0x79a   : > { %s4781_s18 = sadd.s32 %s10311_s6, %s5226_s15  ;;  %p10314_p6 = scmp.ne.s32.totalorder %s10312_s1, 0 }
 0x79b   : > { %s5227_s4 = sshll.u32 %s4781_s18, 6  ;;  %p6515_p1 = por %p6514_p12, %p6513_p11 }
 0x79c   : > { %s9594_s25 = scalar_lea.hbm %s10313_s16, %s5227_s4  ;;  %p6508_p7 = pnand %p6507_p4, %p10314_p6 }
 0x79e   : > { %p6509_p10 = pneg %p6508_p7 }
 0x7a0   : > { %p6516_p3 = pnand %p6515_p1, %p6509_p10 }
 0x7a2   : > { %6519 = shalt.err (!%p6516_p3)
}
 0x7a3   : > { %s6520_s14 = scalar_lea.hbm %s9594_s25, 8192  ;;  %s6524_s15 = scalar_lea.hbm %s10313_s16, 32768 }
 0x7a4   : > { %p6521_p5 = scmp.ne.s32.totalorder %s9594_s25, %s6520_s14  ;;  %p6525_p9 = scmp.lt.u32.totalorder %s9594_s25, %s10313_s16 }
 0x7a5   : > { %p6526_p13 = scmp.lt.u32.totalorder %s6524_s15, %s6520_s14  ;;  %p6528_p4 = scmp.lt.u32.totalorder %s6520_s14, %s9594_s25 }
 0x7a6   : > { %p6522_p2 = pnand %p6521_p5, %p10314_p6 }
 0x7a7   : > { %p6527_p0 = por %p6526_p13, %p6525_p9 }
 0x7a8   : > { %p6523_p8 = pneg %p6522_p2 }
 0x7a9   : > { %p6529_p7 = por %p6528_p4, %p6527_p0 }
 0x7ab   : > { %p6530_p10 = pnand %p6529_p7, %p6523_p8 }
 0x7ad   : > { %6533 = shalt.err (!%p6530_p10)
}
 0x7ae   : > { %s6631_s11 = smov 64   ;;  %s6632_s19 = smov 128  }
 0x7af   : > { %s6633_s29 = smov 4  }
 0x7b0   : > { %6101 = dma.vmem_to_hbm [thread:$0]  (%p10314_p6), %s9589_s20, 8192, %s9594_s25, %s4765_s3, %s6631_s11, %s6632_s19, %s6633_s29  }
 0x7b1 PF: > { %s10315_s30 = sld [smem:[#allocation21_spill]]  ;;  %s10316_s21 = sld [smem:[#allocation27_spill]] }
 0x7b2   : > { %p6143_p11 = scmp.ge.s32.totalorder %s6616_s28, 2 }
 0x7b7   : > { %s4802_s24 = sand.u32 1, %s10315_s30   ;;  %p10317_p12 = scmp.ne.s32.totalorder %s10316_s21, 0 }
 0x7b8   : > { %s4803_s14 = scalar_lea.sflag [#allocation5], %s4802_s24 }
 0x7b9   : > { %p6126_p1 = pnand %p6143_p11, %p10317_p12 }
 0x7bb   : > { %6583 = dma.done.wait (!%p6126_p1), %s4803_s14, 8192  }
 0x7bc   : > { %6585 = vsyncadd (!%p6126_p1), %s4803_s14, 4294959104  ;;  %s30_s28 = sadd.s32 1, %s6616_s28   ;;  %s10318_s2 = sld [smem:[#allocation28_spill]] }
 0x7bd   : > { %p27_p3 = scmp.ge.s32.totalorder %s30_s28, 6   ;;  %s10319_s17 = sld [smem:[#allocation24_spill]] }
 0x7be   : > { %s10320_s1 = sld [smem:[#allocation25_spill]]  ;;  %s10321_s21 = smov %s6592_s22 }
 0x7bf   : > { %s10322_s22 = smov %s6596_s23  ;;  %s10324_s24 = smov %s6608_s26 }
 0x7c0   : > { %s10325_s25 = smov %s6612_s27  ;;  %29 = sbr.rel (!%p27_p3) target bundleno = 18 (0x12), region = 194 }
 0x7c2   : > { %s10323_s23 = smov %s10318_s2 }
 0x7c3   : > { %s10326_s26 = smov %s10319_s17 }
 0x7c4   : > { %s10327_s27 = smov %s10320_s1 }
 0x7c7   :  { %4816 = vsyncpa [#allocation4], 1 }
 0x7c8   :  { %4818 = vsyncpa [#allocation4 + $0x1], 1 }
 0x7c9   :  { %4819 = vsyncpa [#allocation7], 1 }
 0x7ca   :  { %4820 = vsyncpa [#allocation10], 1 }
 0x7cb   :  { %4821 = vsyncpa [#allocation13], 1 }
 0x7cc   :  { %4822 = vsyncpa [#allocation5], 1 }
 0x7cd   :  { %4824 = vsyncpa [#allocation5 + $0x1], 1 }

</bundles_post_ra>
